<compile_context>
chip_gen: v6e
topology: v6e:2x2x1
jax: 0.10.0
libtpu: 0.0.40
codegen_flags: <defaults>
</compile_context>

<pallas_src>
import functools
import numpy as np

import jax
import jax.numpy as jnp
from jax import lax
from jax.experimental import pallas as pl
from jax.experimental.pallas import tpu as pltpu


_STREAM_VMEM_LIMIT = 32 * 1024 * 1024   # safe scoped-VMEM cap on v5e/v6e/v7x


# ----------------------------------------------------------------------------
# Tile-size helpers
# ----------------------------------------------------------------------------

def _pick_hw_tile(hw, target=1024):
    """Pick (tm, hw_pad) for the pixel (lane) axis.

    tm is either == hw_pad (full-extent block) or a multiple of 128 dividing hw_pad.
    When no aligned divisor of hw exists, hw is padded up (padded pixels are masked
    out of the graph accumulation inside the kernel and sliced off in the wrapper),
    so a single grid step never has to hold the whole (C, HW) slab in VMEM.
    """
    if hw <= target:
        return hw, hw
    t = (min(target, hw) // 128) * 128
    while t >= 128:
        if hw % t == 0:
            return t, hw
        t -= 128
    tm = max(128, (target // 128) * 128)
    hw_pad = ((hw + tm - 1) // tm) * tm
    return tm, hw_pad


def _pick_row_tile(n, target=256):
    """Largest multiple-of-8 divisor of n <= target (upsample output-row tiling)."""
    if n <= target:
        return n
    t = min(target, n) - (min(target, n) % 8)
    while t >= 8:
        if n % t == 0:
            return t
        t -= 8
    return n


# ----------------------------------------------------------------------------
# Kernel 1: FUSED stem 1x1 conv (+ReLU) and FeatureMap -> Graph projection.
#   Per HW tile (pixels on the lane axis):
#     emb   = relu(W_stem^T x + b)                      (Cmid, TM)   f32 + bf16 copies
#     y     = emb^T [W_node | P_assign]                 (TM, F+N)    one MXU pass
#     attn  = softmax(y[:, F:F+N], over nodes)
#     acc  += attn^T @ y[:, :F]                         (N, F)       VMEM accumulator
#   Grid is (B, chunks, steps): the 'chunks' axis is parallel so both v7x TensorCores
#   work the reduction even at B=1; per-chunk partial sums are combined (and relu'd)
#   in the graph-stack kernel.
# ----------------------------------------------------------------------------

def _stem_f2g_kernel(x_ref, wst_ref, bst_ref, wf2g_ref,
                     emb_ref, emb16_ref, gpart_ref, acc_ref,
                     *, n_in, n_feat, n_nodes, tm, steps, hw_real, need_mask):
    s = pl.program_id(2)

    @pl.when(s == 0)
    def _():
        acc_ref[...] = jnp.zeros_like(acc_ref)

    x = x_ref[0]                                           # (Cin, TM) f32
    wst = wst_ref[...]                                     # (Cmid, Cin)
    # stem 1x1 conv: Cin is tiny (e.g. 3), so do it on the VPU as Cin broadcast FMAs
    # instead of a K=3 MXU matmul (which would pad K to 128).
    acc = wst[:, 0:1] * x[0:1, :]
    for k in range(1, n_in):                               # static unroll
        acc = acc + wst[:, k:k + 1] * x[k:k + 1, :]
    emb = jnp.maximum(acc + bst_ref[...], 0.0)             # (Cmid, TM)
    emb_ref[0] = emb
    emb16 = emb.astype(jnp.bfloat16)
    emb16_ref[0] = emb16

    # fused node-feature + node-assignment projection: one (Cmid x (F+N)) MXU pass
    y = lax.dot_general(emb16, wf2g_ref[...],
                        dimension_numbers=(((0,), (0,)), ((), ())),
                        preferred_element_type=jnp.float32)          # (TM, F+N)
    fea = y[:, :n_feat]                                              # (TM, F)
    logits = y[:, n_feat:n_feat + n_nodes]                           # (TM, N)
    logits = logits - jnp.max(logits, axis=-1, keepdims=True)
    e = jnp.exp(logits)
    attn = e * pl.reciprocal(jnp.sum(e, axis=-1, keepdims=True), approx=True)
    if need_mask:  # zero out padded pixels so they never touch the graph accumulation
        start = (pl.program_id(1) * steps + s) * tm
        pix = lax.broadcasted_iota(jnp.int32, (tm, 1), 0) + start
        attn = jnp.where(pix < hw_real, attn, 0.0)
    # sum over pixels of attn^T @ fea (contract the pixel axis of both -> no transpose)
    acc_ref[...] += lax.dot_general(
        attn.astype(jnp.bfloat16), fea.astype(jnp.bfloat16),
        dimension_numbers=(((0,), (0,)), ((), ())),
        preferred_element_type=jnp.float32)

    @pl.when(s == pl.num_programs(2) - 1)
    def _():
        gpart_ref[0, 0] = acc_ref[...]


def stem_and_feature_to_graph(x_cm, wstem_t, bstem_col, wf2g16,
                              *, tm, hw_real, n_nodes, n_feat, n_chunks, steps):
    B, Cin, HWp = x_cm.shape
    Cmid = wstem_t.shape[0]
    kern = functools.partial(
        _stem_f2g_kernel, n_in=Cin, n_feat=n_feat, n_nodes=n_nodes,
        tm=tm, steps=steps, hw_real=hw_real, need_mask=(HWp != hw_real))
    return pl.pallas_call(
        kern,
        out_shape=(jax.ShapeDtypeStruct((B, Cmid, HWp), jnp.float32),
                   jax.ShapeDtypeStruct((B, Cmid, HWp), jnp.bfloat16),
                   jax.ShapeDtypeStruct((B, n_chunks, n_nodes, n_feat), jnp.float32)),
        grid=(B, n_chunks, steps),
        in_specs=[
            pl.BlockSpec((1, Cin, tm), lambda b, c, s, S=steps: (b, 0, c * S + s)),
            pl.BlockSpec((Cmid, Cin), lambda b, c, s: (0, 0)),
            pl.BlockSpec((Cmid, 1), lambda b, c, s: (0, 0)),
            pl.BlockSpec((Cmid, n_feat + n_nodes), lambda b, c, s: (0, 0)),
        ],
        out_specs=(
            pl.BlockSpec((1, Cmid, tm), lambda b, c, s, S=steps: (b, 0, c * S + s)),
            pl.BlockSpec((1, Cmid, tm), lambda b, c, s, S=steps: (b, 0, c * S + s)),
            pl.BlockSpec((1, 1, n_nodes, n_feat), lambda b, c, s: (b, c, 0, 0)),
        ),
        scratch_shapes=[pltpu.VMEM((n_nodes, n_feat), jnp.float32)],
        compiler_params=pltpu.CompilerParams(
            dimension_semantics=("parallel", "parallel", "arbitrary"),
            vmem_limit_bytes=_STREAM_VMEM_LIMIT),
    )(x_cm, wstem_t, bstem_col, wf2g16)


# ----------------------------------------------------------------------------
# Kernel 2: per-batch graph stack (tiny, overhead-dominated -> keep simple).
#   - combine chunked partial sums, relu -> graph0
#   - three GraphConvolutions (graph_conv1 reused, activate=True)
#   - Graph->FeatureMap attention hoist: softmax over nodes of the per-pixel score is
#     shift-invariant in the pixel term, so attn = softmax(a_graph^T g) per batch;
#     reproj_row = relu(attn @ (g W_out)) is the (constant-per-pixel) reprojection,
#     and "skip + reproj" is folded into an effective semantic-conv bias.
# ----------------------------------------------------------------------------

def _graph_stack_kernel(gpart_ref, wgc_ref, adj_ref, ag_ref, wout_ref, wsem_ref, bsem_ref,
                        g_ref, rrow_ref, beff_ref):
    g = jnp.maximum(jnp.sum(gpart_ref[0], axis=0), 0.0)               # (N, F)
    wgc = wgc_ref[...]
    adj = adj_ref[...]
    for _ in range(3):                                                # static unroll
        support = jnp.dot(g, wgc, preferred_element_type=jnp.float32)
        g = jnp.maximum(jnp.dot(adj, support, preferred_element_type=jnp.float32), 0.0)
    g_ref[0] = g

    nod = lax.dot_general(ag_ref[...], g,
                          dimension_numbers=(((1,), (1,)), ((), ())),
                          preferred_element_type=jnp.float32)         # (1, N)
    nod = nod - jnp.max(nod, axis=-1, keepdims=True)
    e = jnp.exp(nod)
    attn = e / jnp.sum(e, axis=-1, keepdims=True)                     # (1, N)
    nproj = jnp.dot(g, wout_ref[...], preferred_element_type=jnp.float32)       # (N, Cout)
    rrow = jnp.maximum(jnp.dot(attn, nproj, preferred_element_type=jnp.float32), 0.0)
    rrow_ref[0] = rrow                                                # (1, Cout)
    # semantic_conv(skip + reproj) == semantic_conv(skip) + W_sem^T reproj  (affine)
    beff_ref[0] = (jnp.dot(rrow, wsem_ref[...], preferred_element_type=jnp.float32)
                   + bsem_ref[...])                                   # (1, n_out)


def graph_stack(gpart, w_gc, adj, a_graph_row, w_gout, w_sem, b_sem):
    B, NC, N, F_ = gpart.shape
    Cout = w_gout.shape[1]
    n_out = w_sem.shape[1]
    return pl.pallas_call(
        _graph_stack_kernel,
        out_shape=(jax.ShapeDtypeStruct((B, N, F_), jnp.float32),
                   jax.ShapeDtypeStruct((B, 1, Cout), jnp.float32),
                   jax.ShapeDtypeStruct((B, 1, n_out), jnp.float32)),
        grid=(B,),
        in_specs=[
            pl.BlockSpec((1, NC, N, F_), lambda b: (b, 0, 0, 0)),
            pl.BlockSpec((F_, F_), lambda b: (0, 0)),
            pl.BlockSpec((N, N), lambda b: (0, 0)),
            pl.BlockSpec((1, F_), lambda b: (0, 0)),
            pl.BlockSpec((F_, Cout), lambda b: (0, 0)),
            pl.BlockSpec((Cout, n_out), lambda b: (0, 0)),
            pl.BlockSpec((1, n_out), lambda b: (0, 0)),
        ],
        out_specs=(
            pl.BlockSpec((1, N, F_), lambda b: (b, 0, 0)),
            pl.BlockSpec((1, 1, Cout), lambda b: (b, 0, 0)),
            pl.BlockSpec((1, 1, n_out), lambda b: (b, 0, 0)),
        ),
        compiler_params=pltpu.CompilerParams(dimension_semantics=("parallel",)),
    )(gpart, w_gc, adj, a_graph_row, w_gout, w_sem, b_sem)


# ----------------------------------------------------------------------------
# Kernel 3: skip conv + semantic conv (channel-major stream).
#   skip_t = relu(W_skip^T emb + b_skip)            (Cmid, TM)
#   sem_t  = W_sem^T skip_t + b_eff                 (n_out, TM)  -- reproj folded in
#   Output is written directly as (B, n_out, HW): lane-dense, no channel padding,
#   no wrapper NHWC->NCHW pass.
# ----------------------------------------------------------------------------

def _skip_sem_kernel(emb16_ref, wskip_ref, bskip_ref, wsem_ref, beff_ref, sem_ref):
    x = emb16_ref[0]                                                  # (Cmid, TM) bf16
    skip = lax.dot_general(wskip_ref[...], x,
                           dimension_numbers=(((0,), (0,)), ((), ())),
                           preferred_element_type=jnp.float32)        # (Cmid, TM)
    skip = jnp.maximum(skip + bskip_ref[...], 0.0)
    sem = lax.dot_general(wsem_ref[...], skip.astype(jnp.bfloat16),
                          dimension_numbers=(((0,), (0,)), ((), ())),
                          preferred_element_type=jnp.float32)         # (n_out, TM)
    sem_ref[0] = sem + beff_ref[0]


def skip_and_semantic(emb16_cm, w_skip16, b_skip_col, w_sem16, beff_col, *, tm):
    B, Cmid, HWp = emb16_cm.shape
    n_out = w_sem16.shape[1]
    n_tiles = HWp // tm
    return pl.pallas_call(
        _skip_sem_kernel,
        out_shape=jax.ShapeDtypeStruct((B, n_out, HWp), jnp.float32),
        grid=(B, n_tiles),
        in_specs=[
            pl.BlockSpec((1, Cmid, tm), lambda b, m: (b, 0, m)),
            pl.BlockSpec((Cmid, Cmid), lambda b, m: (0, 0)),
            pl.BlockSpec((Cmid, 1), lambda b, m: (0, 0)),
            pl.BlockSpec((Cmid, n_out), lambda b, m: (0, 0)),
            pl.BlockSpec((1, n_out, 1), lambda b, m: (b, 0, 0)),
        ],
        out_specs=pl.BlockSpec((1, n_out, tm), lambda b, m: (b, 0, m)),
        compiler_params=pltpu.CompilerParams(
            dimension_semantics=("parallel", "parallel"),
            vmem_limit_bytes=_STREAM_VMEM_LIMIT),
    )(emb16_cm, w_skip16, b_skip_col, w_sem16, beff_col)


# ----------------------------------------------------------------------------
# Kernel 4: bilinear upsample (align_corners=True) as Uh @ S @ Uw^T.
#   Grid (B, C, row-tiles): channel axis is a parallel grid axis (megacore-friendly,
#   no 20-way static unroll); the width pass S @ Uw^T is computed once per (b, c)
#   into a VMEM scratch (pl.when(r == 0)) and reused by every output-row tile, and
#   every matmul has a lane-dense W-wide output.
# ----------------------------------------------------------------------------

def _bilinear_kernel(s_ref, uh_ref, uwt_ref, o_ref, t_ref):
    @pl.when(pl.program_id(2) == 0)
    def _():
        t_ref[...] = jnp.dot(s_ref[0, 0], uwt_ref[...],
                             preferred_element_type=jnp.float32)      # (h, W)
    o_ref[0, 0] = jnp.dot(uh_ref[...], t_ref[...],
                          preferred_element_type=jnp.float32)         # (th, W)


def bilinear_upsample(x_nchw, uh, uwt):
    B, C, h, w = x_nchw.shape
    H, W = uh.shape[0], uwt.shape[1]
    th = _pick_row_tile(H)
    return pl.pallas_call(
        _bilinear_kernel,
        out_shape=jax.ShapeDtypeStruct((B, C, H, W), jnp.float32),
        grid=(B, C, H // th),
        in_specs=[
            pl.BlockSpec((1, 1, h, w), lambda b, c, r: (b, c, 0, 0)),
            pl.BlockSpec((th, h), lambda b, c, r: (r, 0)),
            pl.BlockSpec((w, W), lambda b, c, r: (0, 0)),
        ],
        out_specs=pl.BlockSpec((1, 1, th, W), lambda b, c, r: (b, c, r, 0)),
        scratch_shapes=[pltpu.VMEM((h, W), jnp.float32)],
        compiler_params=pltpu.CompilerParams(
            dimension_semantics=("parallel", "parallel", "arbitrary"),
            vmem_limit_bytes=_STREAM_VMEM_LIMIT),
    )(x_nchw, uh, uwt)


# ----------------------------------------------------------------------------
# Glue: parameters, interp matrices, forward pass
# ----------------------------------------------------------------------------

@functools.lru_cache(maxsize=None)
def _interp_matrix(out_size, in_size):
    """PyTorch F.interpolate(mode='bilinear', align_corners=True) as a matrix."""
    m = np.zeros((out_size, in_size), dtype=np.float32)
    if out_size == 1:
        m[0, 0] = 1.0
        return m
    scale = (in_size - 1) / (out_size - 1)
    for i in range(out_size):
        src = i * scale
        i0 = min(int(np.floor(src)), in_size - 1)
        i1 = min(i0 + 1, in_size - 1)
        w1 = src - i0
        m[i, i0] += 1.0 - w1
        m[i, i1] += w1
    return m


def init_params(key, n_in=3, n_classes=20, n_node_features=128, n_out=20, mid=256):
    keys = jax.random.split(key, 9)
    s = 0.05

    def rnd(k, shape):
        return jax.random.normal(k, shape, jnp.float32) * s

    return {
        # stand-in stem (see TODO in graphonomy_forward)
        "w_stem": rnd(keys[0], (n_in, mid)),
        "b_stem": jnp.zeros((1, mid), jnp.float32),
        # FeatureMaptoGraphProjection(in=256, out=128, n_nodes=20)
        "p_assign": rnd(keys[1], (mid, n_classes)),
        "w_node": rnd(keys[2], (mid, n_node_features)),
        # GraphConvolution(128, 128) -- forward reuses graph_conv1 three times
        "w_gc1": rnd(keys[3], (n_node_features, n_node_features)),
        # GraphtoFeatureMapProjection(in=256, out=256, hidden=128, n_nodes=20)
        "a_feat": rnd(keys[4], (mid, 1)),
        "a_graph": rnd(keys[5], (n_node_features, 1)),
        "w_gout": rnd(keys[6], (n_node_features, mid)),
        # skip_conv: Conv2d(256,256,1)+ReLU ; semantic_conv: Conv2d(256,n_out,1)
        "w_skip": rnd(keys[7], (mid, mid)),
        "b_skip": jnp.zeros((1, mid), jnp.float32),
        "w_sem": rnd(keys[8], (mid, n_out)),
        "b_sem": jnp.zeros((1, n_out), jnp.float32),
    }


def graphonomy_forward(params, x_nchw, adj_matrix=None, *, tm=None):
    B, Cin, H, W = x_nchw.shape
    n_classes = params["p_assign"].shape[1]
    mid = params["w_stem"].shape[1]
    n_feat = params["w_node"].shape[1]
    n_out = params["w_sem"].shape[1]

    if adj_matrix is None:
        # adj=None in GraphConvolution means "no propagation" == identity adjacency
        adj_matrix = jnp.eye(n_classes, dtype=jnp.float32)

    # TODO(synk): ResNet-101 backbone + ASPP + DeepLab Decoder are external modules not
    # included in the prompt; they are stood in by a stride-4 average pool and a 1x1
    # conv (n_in -> 256) + ReLU producing the stride-4 "embedded" feature map.
    h4, w4 = H // 4, W // 4
    hw = h4 * w4
    if tm is None:
        tm, hw_pad = _pick_hw_tile(hw)
    else:
        assert tm == hw or tm % 128 == 0, "tm must be a multiple of 128 (or == HW)"
        hw_pad = ((hw + tm - 1) // tm) * tm

    pooled = x_nchw.reshape(B, Cin, h4, 4, w4, 4).mean(axis=(3, 5))    # (B, Cin, h4, w4)
    x_cm = pooled.reshape(B, Cin, hw)                                  # channel-major, free reshape
    if hw_pad != hw:
        x_cm = jnp.pad(x_cm, ((0, 0), (0, 0), (0, hw_pad - hw)))

    n_tiles = hw_pad // tm
    if n_tiles % 2 == 0 and n_tiles >= 2:
        n_chunks, steps = 2, n_tiles // 2   # second parallel axis: both v7x TCs share the reduction
    else:
        n_chunks, steps = 1, n_tiles

    # weight prep (tiny transforms, negligible vs the streams)
    wstem_t = params["w_stem"].T                                       # (mid, Cin)
    bstem_col = params["b_stem"].reshape(mid, 1)
    wf2g16 = jnp.concatenate([params["w_node"], params["p_assign"]],
                             axis=1).astype(jnp.bfloat16)              # (mid, F+N)
    w_skip16 = params["w_skip"].astype(jnp.bfloat16)
    b_skip_col = params["b_skip"].reshape(mid, 1)
    w_sem16 = params["w_sem"].astype(jnp.bfloat16)

    # fused stem conv + feature->graph projection (single HBM pass over the pixels)
    emb_cm, emb16_cm, gpart = stem_and_feature_to_graph(
        x_cm, wstem_t, bstem_col, wf2g16, tm=tm, hw_real=hw,
        n_nodes=n_classes, n_feat=n_feat, n_chunks=n_chunks, steps=steps)

    # 3x graph conv + hoisted graph->feature attention + effective semantic bias
    graph, rrow, beff = graph_stack(
        gpart, params["w_gc1"], adj_matrix,
        params["a_graph"].reshape(1, n_feat), params["w_gout"],
        params["w_sem"], params["b_sem"])
    beff_col = jnp.swapaxes(beff, 1, 2)                                # (B, n_out, 1) tiny

    # skip conv + semantic conv, channel-major output (no padding / transpose)
    sem_cm = skip_and_semantic(emb16_cm, w_skip16, b_skip_col, w_sem16, beff_col, tm=tm)

    if hw_pad != hw:                                                   # rare fallback path
        sem_cm = sem_cm[:, :, :hw]
        emb_cm = emb_cm[:, :, :hw]
    sem_low = sem_cm.reshape(B, n_out, h4, w4)

    # bilinear upsample (align_corners=True) to the input resolution
    uh = jnp.asarray(_interp_matrix(H, h4))
    uwt = jnp.asarray(_interp_matrix(W, w4).T)
    semantic = bilinear_upsample(sem_low, uh, uwt)                     # (B, n_out, H, W)
    if n_out == 1:
        semantic = jnp.tanh(semantic)                                  # Tanh branch

    embedded_nchw = emb_cm.reshape(B, mid, h4, w4)                     # free reshape (channel-major)
    # graph->feature reprojection is constant across pixels (softmax shift-invariance),
    # so the NCHW reproj output is a broadcast of the per-batch row.
    reproj_nchw = jnp.broadcast_to(rrow.reshape(B, mid, 1, 1), (B, mid, h4, w4))
    return semantic, embedded_nchw, graph, reproj_nchw


# ----------------------------------------------------------------------------
# Main
# ----------------------------------------------------------------------------

if __name__ == "__main__":
    key = jax.random.PRNGKey(0)
    k_x, k_p = jax.random.split(key)

    n_classes = 20
    # 64x128 input -> stride-4 feature map 16x32 (HW=512); with tm=128 the fused
    # stem+projection kernel runs 2 chunks x 2 accumulation steps, exercising the
    # chunked-reduction, multi-tile and accumulator paths on a small problem.
    x = jax.random.normal(k_x, (2, 3, 64, 128), jnp.float32)           # NCHW input
    params = init_params(k_p, n_in=3, n_classes=n_classes,
                         n_node_features=128, n_out=20, mid=256)
    adj = jnp.ones((n_classes, n_classes), jnp.float32) / n_classes    # row-normalized adjacency

    fwd = jax.jit(graphonomy_forward, static_argnames=("tm",))
    semantic, embedded, graph, reproj = fwd(params, x, adj, tm=128)
    jax.block_until_ready((semantic, embedded, graph, reproj))

    assert semantic.shape == (2, 20, 64, 128)
    assert embedded.shape == (2, 256, 16, 32)
    assert graph.shape == (2, 20, 128)
    assert reproj.shape == (2, 256, 16, 32)
    print("KERNEL_OK")
</pallas_src>

<mosaic_0001>
module attributes {stable_mosaic.version = 11 : i64} {
  func.func @_stem_f2g_kernel(%arg0: i32, %arg1: i32, %arg2: i32, %arg3: memref<1x3x128xf32, #tpu.memory_space<vmem>>, %arg4: memref<256x3xf32, #tpu.memory_space<vmem>>, %arg5: memref<256x1xf32, #tpu.memory_space<vmem>>, %arg6: memref<256x148xbf16, #tpu.memory_space<vmem>>, %arg7: memref<1x256x128xf32, #tpu.memory_space<vmem>>, %arg8: memref<1x256x128xbf16, #tpu.memory_space<vmem>>, %arg9: memref<1x1x20x128xf32, #tpu.memory_space<vmem>>, %arg10: memref<20x128xf32, #tpu.memory_space<vmem>>) attributes {dimension_semantics = [#tpu.dimension_semantics<parallel>, #tpu.dimension_semantics<parallel>, #tpu.dimension_semantics<arbitrary>], iteration_bounds = array<i64: 2, 2, 2>, scalar_prefetch = 0 : i64, scratch_operands = 1 : i64, tpu.core_type = #tpu.core_type<tc>, window_params = [{transform_indices = @transform_0, window_bounds = array<i64: 1, 3, 128>}, {pipeline_mode = #tpu.pipeline_mode<synchronous>, transform_indices = @transform_1, window_bounds = array<i64: 256, 3>}, {pipeline_mode = #tpu.pipeline_mode<synchronous>, transform_indices = @transform_2, window_bounds = array<i64: 256, 1>}, {pipeline_mode = #tpu.pipeline_mode<synchronous>, transform_indices = @transform_3, window_bounds = array<i64: 256, 148>}, {transform_indices = @transform_4, window_bounds = array<i64: 1, 256, 128>}, {transform_indices = @transform_5, window_bounds = array<i64: 1, 256, 128>}, {transform_indices = @transform_6, window_bounds = array<i64: 1, 1, 20, 128>}]} {
    %c0_i32 = arith.constant 0 : i32
    %0 = arith.cmpi eq, %arg2, %c0_i32 : i32
    %1 = arith.extui %0 : i1 to i32
    %c0_i32_0 = arith.constant 0 : i32
    %2 = arith.cmpi ne, %1, %c0_i32_0 : i32
    scf.if %2 {
      %cst_24 = arith.constant 0.000000e+00 : f32
      %58 = vector.broadcast %cst_24 : f32 to vector<20x128xf32>
      %c0_25 = arith.constant 0 : index
      %c0_26 = arith.constant 0 : index
      %59 = vector.load %arg10[%c0_25, %c0_26] : memref<20x128xf32, #tpu.memory_space<vmem>>, vector<20x128xf32>
      tpu.vector_store %arg10[%c0_25, %c0_26], %58 {strides = array<i32>} : memref<20x128xf32, #tpu.memory_space<vmem>>, vector<20x128xf32>,
    } else {
    }
    %c0 = arith.constant 0 : index
    %c0_1 = arith.constant 0 : index
    %c0_2 = arith.constant 0 : index
    %3 = vector.load %arg3[%c0, %c0_1, %c0_2] : memref<1x3x128xf32, #tpu.memory_space<vmem>>, vector<1x3x128xf32>
    %4 = vector.shape_cast %3 : vector<1x3x128xf32> to vector<3x128xf32>
    %c0_3 = arith.constant 0 : index
    %c0_4 = arith.constant 0 : index
    %5 = vector.load %arg4[%c0_3, %c0_4] : memref<256x3xf32, #tpu.memory_space<vmem>>, vector<256x3xf32>
    %6 = vector.extract_strided_slice %5 {offsets = [0, 0], sizes = [256, 1], strides = [1, 1]} : vector<256x3xf32> to vector<256x1xf32>
    %7 = vector.extract_strided_slice %4 {offsets = [0, 0], sizes = [1, 128], strides = [1, 1]} : vector<3x128xf32> to vector<1x128xf32>
    %8 = vector.broadcast %6 : vector<256x1xf32> to vector<256x128xf32>
    %9 = vector.broadcast %7 : vector<1x128xf32> to vector<256x128xf32>
    %10 = arith.mulf %8, %9 : vector<256x128xf32>
    %11 = vector.extract_strided_slice %5 {offsets = [0, 1], sizes = [256, 1], strides = [1, 1]} : vector<256x3xf32> to vector<256x1xf32>
    %12 = vector.extract_strided_slice %4 {offsets = [1, 0], sizes = [1, 128], strides = [1, 1]} : vector<3x128xf32> to vector<1x128xf32>
    %13 = vector.broadcast %11 : vector<256x1xf32> to vector<256x128xf32>
    %14 = vector.broadcast %12 : vector<1x128xf32> to vector<256x128xf32>
    %15 = arith.mulf %13, %14 : vector<256x128xf32>
    %16 = arith.addf %10, %15 : vector<256x128xf32>
    %17 = vector.extract_strided_slice %5 {offsets = [0, 2], sizes = [256, 1], strides = [1, 1]} : vector<256x3xf32> to vector<256x1xf32>
    %18 = vector.extract_strided_slice %4 {offsets = [2, 0], sizes = [1, 128], strides = [1, 1]} : vector<3x128xf32> to vector<1x128xf32>
    %19 = vector.broadcast %17 : vector<256x1xf32> to vector<256x128xf32>
    %20 = vector.broadcast %18 : vector<1x128xf32> to vector<256x128xf32>
    %21 = arith.mulf %19, %20 : vector<256x128xf32>
    %22 = arith.addf %16, %21 : vector<256x128xf32>
    %c0_5 = arith.constant 0 : index
    %c0_6 = arith.constant 0 : index
    %23 = vector.load %arg5[%c0_5, %c0_6] : memref<256x1xf32, #tpu.memory_space<vmem>>, vector<256x1xf32>
    %24 = vector.broadcast %23 : vector<256x1xf32> to vector<256x128xf32>
    %25 = arith.addf %22, %24 : vector<256x128xf32>
    %cst = arith.constant 0.000000e+00 : f32
    %26 = vector.broadcast %cst : f32 to vector<256x128xf32>
    %27 = arith.maximumf %25, %26 : vector<256x128xf32>
    %c0_7 = arith.constant 0 : index
    %c0_8 = arith.constant 0 : index
    %c0_9 = arith.constant 0 : index
    %28 = vector.load %arg7[%c0_7, %c0_8, %c0_9] : memref<1x256x128xf32, #tpu.memory_space<vmem>>, vector<1x256x128xf32>
    %29 = vector.shape_cast %28 : vector<1x256x128xf32> to vector<256x128xf32>
    %30 = vector.shape_cast %27 : vector<256x128xf32> to vector<1x256x128xf32>
    tpu.vector_store %arg7[%c0_7, %c0_8, %c0_9], %30 {strides = array<i32>} : memref<1x256x128xf32, #tpu.memory_space<vmem>>, vector<1x256x128xf32>,
    %31 = arith.truncf %27 : vector<256x128xf32> to vector<256x128xbf16>
    %c0_10 = arith.constant 0 : index
    %c0_11 = arith.constant 0 : index
    %c0_12 = arith.constant 0 : index
    %32 = vector.load %arg8[%c0_10, %c0_11, %c0_12] : memref<1x256x128xbf16, #tpu.memory_space<vmem>>, vector<1x256x128xbf16>
    %33 = vector.shape_cast %32 : vector<1x256x128xbf16> to vector<256x128xbf16>
    %34 = vector.shape_cast %31 : vector<256x128xbf16> to vector<1x256x128xbf16>
    tpu.vector_store %arg8[%c0_10, %c0_11, %c0_12], %34 {strides = array<i32>} : memref<1x256x128xbf16, #tpu.memory_space<vmem>>, vector<1x256x128xbf16>,
    %c0_13 = arith.constant 0 : index
    %c0_14 = arith.constant 0 : index
    %35 = vector.load %arg6[%c0_13, %c0_14] : memref<256x148xbf16, #tpu.memory_space<vmem>>, vector<256x148xbf16>
    %cst_15 = arith.constant dense<0.000000e+00> : vector<128x148xf32>
    %36 = tpu.matmul %31, %35, %cst_15 {dimension_numbers = #tpu.dot_dimension_numbers<[0], [0], [1], [1], [0, 1, 1, 1], [], []>} : vector<256x128xbf16>, vector<256x148xbf16>, vector<128x148xf32> -> vector<128x148xf32>
    %37 = vector.extract_strided_slice %36 {offsets = [0, 0], sizes = [128, 128], strides = [1, 1]} : vector<128x148xf32> to vector<128x128xf32>
    %38 = vector.extract_strided_slice %36 {offsets = [0, 128], sizes = [128, 20], strides = [1, 1]} : vector<128x148xf32> to vector<128x20xf32>
    %cst_16 = arith.constant dense<0xFF800000> : vector<128xf32>
    %39 = vector.multi_reduction <maximumf>, %38, %cst_16 [1] : vector<128x20xf32> to vector<128xf32>
    %40 = vector.shape_cast %39 : vector<128xf32> to vector<128x1xf32>
    %41 = vector.broadcast %40 : vector<128x1xf32> to vector<128x20xf32>
    %42 = arith.subf %38, %41 : vector<128x20xf32>
    %43 = math.exp %42 : vector<128x20xf32>
    %cst_17 = arith.constant dense<0.000000e+00> : vector<128xf32>
    %44 = vector.multi_reduction <add>, %43, %cst_17 [1] : vector<128x20xf32> to vector<128xf32>
    %45 = vector.shape_cast %44 : vector<128xf32> to vector<128x1xf32>
    %46 = tpu.reciprocal %45 {approx = true} : vector<128x1xf32> -> vector<128x1xf32>
    %47 = vector.broadcast %46 : vector<128x1xf32> to vector<128x20xf32>
    %48 = arith.mulf %43, %47 : vector<128x20xf32>
    %c0_18 = arith.constant 0 : index
    %c0_19 = arith.constant 0 : index
    %49 = vector.load %arg10[%c0_18, %c0_19] : memref<20x128xf32, #tpu.memory_space<vmem>>, vector<20x128xf32>
    %50 = arith.truncf %48 : vector<128x20xf32> to vector<128x20xbf16>
    %51 = arith.truncf %37 : vector<128x128xf32> to vector<128x128xbf16>
    %cst_20 = arith.constant dense<0.000000e+00> : vector<20x128xf32>
    %52 = tpu.matmul %50, %51, %cst_20 {dimension_numbers = #tpu.dot_dimension_numbers<[0], [0], [1], [1], [0, 1, 1, 1], [], []>} : vector<128x20xbf16>, vector<128x128xbf16>, vector<20x128xf32> -> vector<20x128xf32>
    %53 = arith.addf %49, %52 : vector<20x128xf32>
    %c0_21 = arith.constant 0 : index
    %c0_22 = arith.constant 0 : index
    %54 = vector.load %arg10[%c0_21, %c0_22] : memref<20x128xf32, #tpu.memory_space<vmem>>, vector<20x128xf32>
    tpu.vector_store %arg10[%c0_21, %c0_22], %53 {strides = array<i32>} : memref<20x128xf32, #tpu.memory_space<vmem>>, vector<20x128xf32>,
    %c1_i32 = arith.constant 1 : i32
    %55 = arith.cmpi eq, %arg2, %c1_i32 : i32
    %56 = arith.extui %55 : i1 to i32
    %c0_i32_23 = arith.constant 0 : i32
    %57 = arith.cmpi ne, %56, %c0_i32_23 : i32
    scf.if %57 {
      %c0_24 = arith.constant 0 : index
      %c0_25 = arith.constant 0 : index
      %58 = vector.load %arg10[%c0_24, %c0_25] : memref<20x128xf32, #tpu.memory_space<vmem>>, vector<20x128xf32>
      %c0_26 = arith.constant 0 : index
      %c0_27 = arith.constant 0 : index
      %c0_28 = arith.constant 0 : index
      %c0_29 = arith.constant 0 : index
      %59 = vector.load %arg9[%c0_26, %c0_27, %c0_28, %c0_29] : memref<1x1x20x128xf32, #tpu.memory_space<vmem>>, vector<1x1x20x128xf32>
      %60 = vector.shape_cast %59 : vector<1x1x20x128xf32> to vector<20x128xf32>
      %61 = vector.shape_cast %58 : vector<20x128xf32> to vector<1x1x20x128xf32>
      tpu.vector_store %arg9[%c0_26, %c0_27, %c0_28, %c0_29], %61 {strides = array<i32>} : memref<1x1x20x128xf32, #tpu.memory_space<vmem>>, vector<1x1x20x128xf32>,
    } else {
    }
    return
  }
  func.func @transform_0(%arg0: i32, %arg1: i32, %arg2: i32) -> (i32, i32, i32) {
    %c2_i32 = arith.constant 2 : i32
    %0 = arith.muli %arg1, %c2_i32 : i32
    %1 = arith.addi %0, %arg2 : i32
    %c0_i32 = arith.constant 0 : i32
    %c0_i32_0 = arith.constant 0 : i32
    return %arg0, %c0_i32, %1 : i32, i32, i32
  }
  func.func @transform_1(%arg0: i32, %arg1: i32, %arg2: i32) -> (i32, i32) {
    %c0_i32 = arith.constant 0 : i32
    %c0_i32_0 = arith.constant 0 : i32
    %c0_i32_1 = arith.constant 0 : i32
    return %c0_i32, %c0_i32_0 : i32, i32
  }
  func.func @transform_2(%arg0: i32, %arg1: i32, %arg2: i32) -> (i32, i32) {
    %c0_i32 = arith.constant 0 : i32
    %c0_i32_0 = arith.constant 0 : i32
    %c0_i32_1 = arith.constant 0 : i32
    return %c0_i32, %c0_i32_0 : i32, i32
  }
  func.func @transform_3(%arg0: i32, %arg1: i32, %arg2: i32) -> (i32, i32) {
    %c0_i32 = arith.constant 0 : i32
    %c0_i32_0 = arith.constant 0 : i32
    %c0_i32_1 = arith.constant 0 : i32
    return %c0_i32, %c0_i32_0 : i32, i32
  }
  func.func @transform_4(%arg0: i32, %arg1: i32, %arg2: i32) -> (i32, i32, i32) {
    %c2_i32 = arith.constant 2 : i32
    %0 = arith.muli %arg1, %c2_i32 : i32
    %1 = arith.addi %0, %arg2 : i32
    %c0_i32 = arith.constant 0 : i32
    %c0_i32_0 = arith.constant 0 : i32
    return %arg0, %c0_i32, %1 : i32, i32, i32
  }
  func.func @transform_5(%arg0: i32, %arg1: i32, %arg2: i32) -> (i32, i32, i32) {
    %c2_i32 = arith.constant 2 : i32
    %0 = arith.muli %arg1, %c2_i32 : i32
    %1 = arith.addi %0, %arg2 : i32
    %c0_i32 = arith.constant 0 : i32
    %c0_i32_0 = arith.constant 0 : i32
    return %arg0, %c0_i32, %1 : i32, i32, i32
  }
  func.func @transform_6(%arg0: i32, %arg1: i32, %arg2: i32) -> (i32, i32, i32, i32) {
    %c0_i32 = arith.constant 0 : i32
    %c0_i32_0 = arith.constant 0 : i32
    %c0_i32_1 = arith.constant 0 : i32
    return %arg0, %arg1, %c0_i32, %c0_i32_0 : i32, i32, i32, i32
  }
}

module attributes {stable_mosaic.version = 11 : i64} {
  func.func @_graph_stack_kernel(%arg0: i32, %arg1: memref<1x2x20x128xf32, #tpu.memory_space<vmem>>, %arg2: memref<128x128xf32, #tpu.memory_space<vmem>>, %arg3: memref<20x20xf32, #tpu.memory_space<vmem>>, %arg4: memref<1x128xf32, #tpu.memory_space<vmem>>, %arg5: memref<128x256xf32, #tpu.memory_space<vmem>>, %arg6: memref<256x20xf32, #tpu.memory_space<vmem>>, %arg7: memref<1x20xf32, #tpu.memory_space<vmem>>, %arg8: memref<1x20x128xf32, #tpu.memory_space<vmem>>, %arg9: memref<1x1x256xf32, #tpu.memory_space<vmem>>, %arg10: memref<1x1x20xf32, #tpu.memory_space<vmem>>) attributes {dimension_semantics = [#tpu.dimension_semantics<parallel>], iteration_bounds = array<i64: 2>, scalar_prefetch = 0 : i64, scratch_operands = 0 : i64, tpu.core_type = #tpu.core_type<tc>, window_params = [{transform_indices = @transform_0, window_bounds = array<i64: 1, 2, 20, 128>}, {pipeline_mode = #tpu.pipeline_mode<synchronous>, transform_indices = @transform_1, window_bounds = array<i64: 128, 128>}, {pipeline_mode = #tpu.pipeline_mode<synchronous>, transform_indices = @transform_2, window_bounds = array<i64: 20, 20>}, {pipeline_mode = #tpu.pipeline_mode<synchronous>, transform_indices = @transform_3, window_bounds = array<i64: 1, 128>}, {pipeline_mode = #tpu.pipeline_mode<synchronous>, transform_indices = @transform_4, window_bounds = array<i64: 128, 256>}, {pipeline_mode = #tpu.pipeline_mode<synchronous>, transform_indices = @transform_5, window_bounds = array<i64: 256, 20>}, {pipeline_mode = #tpu.pipeline_mode<synchronous>, transform_indices = @transform_6, window_bounds = array<i64: 1, 20>}, {transform_indices = @transform_7, window_bounds = array<i64: 1, 20, 128>}, {transform_indices = @transform_8, window_bounds = array<i64: 1, 1, 256>}, {transform_indices = @transform_9, window_bounds = array<i64: 1, 1, 20>}]} {
    %c0 = arith.constant 0 : index
    %c0_0 = arith.constant 0 : index
    %c0_1 = arith.constant 0 : index
    %c0_2 = arith.constant 0 : index
    %0 = vector.load %arg1[%c0, %c0_0, %c0_1, %c0_2] : memref<1x2x20x128xf32, #tpu.memory_space<vmem>>, vector<1x2x20x128xf32>
    %1 = vector.shape_cast %0 : vector<1x2x20x128xf32> to vector<2x20x128xf32>
    %cst = arith.constant dense<0.000000e+00> : vector<20x128xf32>
    %2 = vector.multi_reduction <add>, %1, %cst [0] : vector<2x20x128xf32> to vector<20x128xf32>
    %cst_3 = arith.constant 0.000000e+00 : f32
    %3 = vector.broadcast %cst_3 : f32 to vector<20x128xf32>
    %4 = arith.maximumf %2, %3 : vector<20x128xf32>
    %c0_4 = arith.constant 0 : index
    %c0_5 = arith.constant 0 : index
    %5 = vector.load %arg2[%c0_4, %c0_5] : memref<128x128xf32, #tpu.memory_space<vmem>>, vector<128x128xf32>
    %c0_6 = arith.constant 0 : index
    %c0_7 = arith.constant 0 : index
    %6 = vector.load %arg3[%c0_6, %c0_7] : memref<20x20xf32, #tpu.memory_space<vmem>>, vector<20x20xf32>
    %cst_8 = arith.constant dense<0.000000e+00> : vector<20x128xf32>
    %7 = tpu.matmul %4, %5, %cst_8 {dimension_numbers = #tpu.dot_dimension_numbers<[1], [0], [0], [1], [0, 0, 1, 1], [], []>} : vector<20x128xf32>, vector<128x128xf32>, vector<20x128xf32> -> vector<20x128xf32>
    %cst_9 = arith.constant dense<0.000000e+00> : vector<20x128xf32>
    %8 = tpu.matmul %6, %7, %cst_9 {dimension_numbers = #tpu.dot_dimension_numbers<[1], [0], [0], [1], [0, 0, 1, 1], [], []>} : vector<20x20xf32>, vector<20x128xf32>, vector<20x128xf32> -> vector<20x128xf32>
    %cst_10 = arith.constant 0.000000e+00 : f32
    %9 = vector.broadcast %cst_10 : f32 to vector<20x128xf32>
    %10 = arith.maximumf %8, %9 : vector<20x128xf32>
    %cst_11 = arith.constant dense<0.000000e+00> : vector<20x128xf32>
    %11 = tpu.matmul %10, %5, %cst_11 {dimension_numbers = #tpu.dot_dimension_numbers<[1], [0], [0], [1], [0, 0, 1, 1], [], []>} : vector<20x128xf32>, vector<128x128xf32>, vector<20x128xf32> -> vector<20x128xf32>
    %cst_12 = arith.constant dense<0.000000e+00> : vector<20x128xf32>
    %12 = tpu.matmul %6, %11, %cst_12 {dimension_numbers = #tpu.dot_dimension_numbers<[1], [0], [0], [1], [0, 0, 1, 1], [], []>} : vector<20x20xf32>, vector<20x128xf32>, vector<20x128xf32> -> vector<20x128xf32>
    %cst_13 = arith.constant 0.000000e+00 : f32
    %13 = vector.broadcast %cst_13 : f32 to vector<20x128xf32>
    %14 = arith.maximumf %12, %13 : vector<20x128xf32>
    %cst_14 = arith.constant dense<0.000000e+00> : vector<20x128xf32>
    %15 = tpu.matmul %14, %5, %cst_14 {dimension_numbers = #tpu.dot_dimension_numbers<[1], [0], [0], [1], [0, 0, 1, 1], [], []>} : vector<20x128xf32>, vector<128x128xf32>, vector<20x128xf32> -> vector<20x128xf32>
    %cst_15 = arith.constant dense<0.000000e+00> : vector<20x128xf32>
    %16 = tpu.matmul %6, %15, %cst_15 {dimension_numbers = #tpu.dot_dimension_numbers<[1], [0], [0], [1], [0, 0, 1, 1], [], []>} : vector<20x20xf32>, vector<20x128xf32>, vector<20x128xf32> -> vector<20x128xf32>
    %cst_16 = arith.constant 0.000000e+00 : f32
    %17 = vector.broadcast %cst_16 : f32 to vector<20x128xf32>
    %18 = arith.maximumf %16, %17 : vector<20x128xf32>
    %c0_17 = arith.constant 0 : index
    %c0_18 = arith.constant 0 : index
    %c0_19 = arith.constant 0 : index
    %19 = vector.load %arg8[%c0_17, %c0_18, %c0_19] : memref<1x20x128xf32, #tpu.memory_space<vmem>>, vector<1x20x128xf32>
    %20 = vector.shape_cast %19 : vector<1x20x128xf32> to vector<20x128xf32>
    %21 = vector.shape_cast %18 : vector<20x128xf32> to vector<1x20x128xf32>
    tpu.vector_store %arg8[%c0_17, %c0_18, %c0_19], %21 {strides = array<i32>} : memref<1x20x128xf32, #tpu.memory_space<vmem>>, vector<1x20x128xf32>,
    %c0_20 = arith.constant 0 : index
    %c0_21 = arith.constant 0 : index
    %22 = vector.load %arg4[%c0_20, %c0_21] : memref<1x128xf32, #tpu.memory_space<vmem>>, vector<1x128xf32>
    %cst_22 = arith.constant dense<0.000000e+00> : vector<1x20xf32>
    %23 = tpu.matmul %22, %18, %cst_22 {dimension_numbers = #tpu.dot_dimension_numbers<[1], [1], [0], [0], [0, 0, 1, 0], [], []>} : vector<1x128xf32>, vector<20x128xf32>, vector<1x20xf32> -> vector<1x20xf32>
    %cst_23 = arith.constant dense<0xFF800000> : vector<1xf32>
    %24 = vector.multi_reduction <maximumf>, %23, %cst_23 [1] : vector<1x20xf32> to vector<1xf32>
    %25 = vector.shape_cast %24 : vector<1xf32> to vector<1x1xf32>
    %26 = vector.broadcast %25 : vector<1x1xf32> to vector<1x20xf32>
    %27 = arith.subf %23, %26 : vector<1x20xf32>
    %28 = math.exp %27 : vector<1x20xf32>
    %cst_24 = arith.constant dense<0.000000e+00> : vector<1xf32>
    %29 = vector.multi_reduction <add>, %28, %cst_24 [1] : vector<1x20xf32> to vector<1xf32>
    %30 = vector.shape_cast %29 : vector<1xf32> to vector<1x1xf32>
    %31 = vector.broadcast %30 : vector<1x1xf32> to vector<1x20xf32>
    %32 = arith.divf %28, %31 : vector<1x20xf32>
    %c0_25 = arith.constant 0 : index
    %c0_26 = arith.constant 0 : index
    %33 = vector.load %arg5[%c0_25, %c0_26] : memref<128x256xf32, #tpu.memory_space<vmem>>, vector<128x256xf32>
    %cst_27 = arith.constant dense<0.000000e+00> : vector<20x256xf32>
    %34 = tpu.matmul %18, %33, %cst_27 {dimension_numbers = #tpu.dot_dimension_numbers<[1], [0], [0], [1], [0, 0, 1, 1], [], []>} : vector<20x128xf32>, vector<128x256xf32>, vector<20x256xf32> -> vector<20x256xf32>
    %cst_28 = arith.constant dense<0.000000e+00> : vector<1x256xf32>
    %35 = tpu.matmul %32, %34, %cst_28 {dimension_numbers = #tpu.dot_dimension_numbers<[1], [0], [0], [1], [0, 0, 1, 1], [], []>} : vector<1x20xf32>, vector<20x256xf32>, vector<1x256xf32> -> vector<1x256xf32>
    %cst_29 = arith.constant 0.000000e+00 : f32
    %36 = vector.broadcast %cst_29 : f32 to vector<1x256xf32>
    %37 = arith.maximumf %35, %36 : vector<1x256xf32>
    %c0_30 = arith.constant 0 : index
    %c0_31 = arith.constant 0 : index
    %c0_32 = arith.constant 0 : index
    %38 = vector.load %arg9[%c0_30, %c0_31, %c0_32] : memref<1x1x256xf32, #tpu.memory_space<vmem>>, vector<1x1x256xf32>
    %39 = vector.shape_cast %38 : vector<1x1x256xf32> to vector<1x256xf32>
    %40 = vector.shape_cast %37 : vector<1x256xf32> to vector<1x1x256xf32>
    tpu.vector_store %arg9[%c0_30, %c0_31, %c0_32], %40 {strides = array<i32>} : memref<1x1x256xf32, #tpu.memory_space<vmem>>, vector<1x1x256xf32>,
    %c0_33 = arith.constant 0 : index
    %c0_34 = arith.constant 0 : index
    %41 = vector.load %arg6[%c0_33, %c0_34] : memref<256x20xf32, #tpu.memory_space<vmem>>, vector<256x20xf32>
    %cst_35 = arith.constant dense<0.000000e+00> : vector<1x20xf32>
    %42 = tpu.matmul %37, %41, %cst_35 {dimension_numbers = #tpu.dot_dimension_numbers<[1], [0], [0], [1], [0, 0, 1, 1], [], []>} : vector<1x256xf32>, vector<256x20xf32>, vector<1x20xf32> -> vector<1x20xf32>
    %c0_36 = arith.constant 0 : index
    %c0_37 = arith.constant 0 : index
    %43 = vector.load %arg7[%c0_36, %c0_37] : memref<1x20xf32, #tpu.memory_space<vmem>>, vector<1x20xf32>
    %44 = arith.addf %42, %43 : vector<1x20xf32>
    %c0_38 = arith.constant 0 : index
    %c0_39 = arith.constant 0 : index
    %c0_40 = arith.constant 0 : index
    %45 = vector.load %arg10[%c0_38, %c0_39, %c0_40] : memref<1x1x20xf32, #tpu.memory_space<vmem>>, vector<1x1x20xf32>
    %46 = vector.shape_cast %45 : vector<1x1x20xf32> to vector<1x20xf32>
    %47 = vector.shape_cast %44 : vector<1x20xf32> to vector<1x1x20xf32>
    tpu.vector_store %arg10[%c0_38, %c0_39, %c0_40], %47 {strides = array<i32>} : memref<1x1x20xf32, #tpu.memory_space<vmem>>, vector<1x1x20xf32>,
    return
  }
  func.func @transform_0(%arg0: i32) -> (i32, i32, i32, i32) {
    %c0_i32 = arith.constant 0 : i32
    %c0_i32_0 = arith.constant 0 : i32
    %c0_i32_1 = arith.constant 0 : i32
    %c0_i32_2 = arith.constant 0 : i32
    return %arg0, %c0_i32, %c0_i32_0, %c0_i32_1 : i32, i32, i32, i32
  }
  func.func @transform_1(%arg0: i32) -> (i32, i32) {
    %c0_i32 = arith.constant 0 : i32
    %c0_i32_0 = arith.constant 0 : i32
    %c0_i32_1 = arith.constant 0 : i32
    return %c0_i32, %c0_i32_0 : i32, i32
  }
  func.func @transform_2(%arg0: i32) -> (i32, i32) {
    %c0_i32 = arith.constant 0 : i32
    %c0_i32_0 = arith.constant 0 : i32
    %c0_i32_1 = arith.constant 0 : i32
    return %c0_i32, %c0_i32_0 : i32, i32
  }
  func.func @transform_3(%arg0: i32) -> (i32, i32) {
    %c0_i32 = arith.constant 0 : i32
    %c0_i32_0 = arith.constant 0 : i32
    %c0_i32_1 = arith.constant 0 : i32
    return %c0_i32, %c0_i32_0 : i32, i32
  }
  func.func @transform_4(%arg0: i32) -> (i32, i32) {
    %c0_i32 = arith.constant 0 : i32
    %c0_i32_0 = arith.constant 0 : i32
    %c0_i32_1 = arith.constant 0 : i32
    return %c0_i32, %c0_i32_0 : i32, i32
  }
  func.func @transform_5(%arg0: i32) -> (i32, i32) {
    %c0_i32 = arith.constant 0 : i32
    %c0_i32_0 = arith.constant 0 : i32
    %c0_i32_1 = arith.constant 0 : i32
    return %c0_i32, %c0_i32_0 : i32, i32
  }
  func.func @transform_6(%arg0: i32) -> (i32, i32) {
    %c0_i32 = arith.constant 0 : i32
    %c0_i32_0 = arith.constant 0 : i32
    %c0_i32_1 = arith.constant 0 : i32
    return %c0_i32, %c0_i32_0 : i32, i32
  }
  func.func @transform_7(%arg0: i32) -> (i32, i32, i32) {
    %c0_i32 = arith.constant 0 : i32
    %c0_i32_0 = arith.constant 0 : i32
    %c0_i32_1 = arith.constant 0 : i32
    return %arg0, %c0_i32, %c0_i32_0 : i32, i32, i32
  }
  func.func @transform_8(%arg0: i32) -> (i32, i32, i32) {
    %c0_i32 = arith.constant 0 : i32
    %c0_i32_0 = arith.constant 0 : i32
    %c0_i32_1 = arith.constant 0 : i32
    return %arg0, %c0_i32, %c0_i32_0 : i32, i32, i32
  }
  func.func @transform_9(%arg0: i32) -> (i32, i32, i32) {
    %c0_i32 = arith.constant 0 : i32
    %c0_i32_0 = arith.constant 0 : i32
    %c0_i32_1 = arith.constant 0 : i32
    return %arg0, %c0_i32, %c0_i32_0 : i32, i32, i32
  }
}

module attributes {stable_mosaic.version = 11 : i64} {
  func.func @_skip_sem_kernel(%arg0: i32, %arg1: i32, %arg2: memref<1x256x128xbf16, #tpu.memory_space<vmem>>, %arg3: memref<256x256xbf16, #tpu.memory_space<vmem>>, %arg4: memref<256x1xf32, #tpu.memory_space<vmem>>, %arg5: memref<256x20xbf16, #tpu.memory_space<vmem>>, %arg6: memref<1x20x1xf32, #tpu.memory_space<vmem>>, %arg7: memref<1x20x128xf32, #tpu.memory_space<vmem>>) attributes {dimension_semantics = [#tpu.dimension_semantics<parallel>, #tpu.dimension_semantics<parallel>], iteration_bounds = array<i64: 2, 4>, scalar_prefetch = 0 : i64, scratch_operands = 0 : i64, tpu.core_type = #tpu.core_type<tc>, window_params = [{transform_indices = @transform_0, window_bounds = array<i64: 1, 256, 128>}, {pipeline_mode = #tpu.pipeline_mode<synchronous>, transform_indices = @transform_1, window_bounds = array<i64: 256, 256>}, {pipeline_mode = #tpu.pipeline_mode<synchronous>, transform_indices = @transform_2, window_bounds = array<i64: 256, 1>}, {pipeline_mode = #tpu.pipeline_mode<synchronous>, transform_indices = @transform_3, window_bounds = array<i64: 256, 20>}, {transform_indices = @transform_4, window_bounds = array<i64: 1, 20, 1>}, {transform_indices = @transform_5, window_bounds = array<i64: 1, 20, 128>}]} {
    %c0 = arith.constant 0 : index
    %c0_0 = arith.constant 0 : index
    %c0_1 = arith.constant 0 : index
    %0 = vector.load %arg2[%c0, %c0_0, %c0_1] : memref<1x256x128xbf16, #tpu.memory_space<vmem>>, vector<1x256x128xbf16>
    %1 = vector.shape_cast %0 : vector<1x256x128xbf16> to vector<256x128xbf16>
    %c0_2 = arith.constant 0 : index
    %c0_3 = arith.constant 0 : index
    %2 = vector.load %arg3[%c0_2, %c0_3] : memref<256x256xbf16, #tpu.memory_space<vmem>>, vector<256x256xbf16>
    %cst = arith.constant dense<0.000000e+00> : vector<256x128xf32>
    %3 = tpu.matmul %2, %1, %cst {dimension_numbers = #tpu.dot_dimension_numbers<[0], [0], [1], [1], [0, 1, 1, 1], [], []>} : vector<256x256xbf16>, vector<256x128xbf16>, vector<256x128xf32> -> vector<256x128xf32>
    %c0_4 = arith.constant 0 : index
    %c0_5 = arith.constant 0 : index
    %4 = vector.load %arg4[%c0_4, %c0_5] : memref<256x1xf32, #tpu.memory_space<vmem>>, vector<256x1xf32>
    %5 = vector.broadcast %4 : vector<256x1xf32> to vector<256x128xf32>
    %6 = arith.addf %3, %5 : vector<256x128xf32>
    %cst_6 = arith.constant 0.000000e+00 : f32
    %7 = vector.broadcast %cst_6 : f32 to vector<256x128xf32>
    %8 = arith.maximumf %6, %7 : vector<256x128xf32>
    %c0_7 = arith.constant 0 : index
    %c0_8 = arith.constant 0 : index
    %9 = vector.load %arg5[%c0_7, %c0_8] : memref<256x20xbf16, #tpu.memory_space<vmem>>, vector<256x20xbf16>
    %10 = arith.truncf %8 : vector<256x128xf32> to vector<256x128xbf16>
    %cst_9 = arith.constant dense<0.000000e+00> : vector<20x128xf32>
    %11 = tpu.matmul %9, %10, %cst_9 {dimension_numbers = #tpu.dot_dimension_numbers<[0], [0], [1], [1], [0, 1, 1, 1], [], []>} : vector<256x20xbf16>, vector<256x128xbf16>, vector<20x128xf32> -> vector<20x128xf32>
    %c0_10 = arith.constant 0 : index
    %c0_11 = arith.constant 0 : index
    %c0_12 = arith.constant 0 : index
    %12 = vector.load %arg6[%c0_10, %c0_11, %c0_12] : memref<1x20x1xf32, #tpu.memory_space<vmem>>, vector<1x20x1xf32>
    %13 = vector.shape_cast %12 : vector<1x20x1xf32> to vector<20x1xf32>
    %14 = vector.broadcast %13 : vector<20x1xf32> to vector<20x128xf32>
    %15 = arith.addf %11, %14 : vector<20x128xf32>
    %c0_13 = arith.constant 0 : index
    %c0_14 = arith.constant 0 : index
    %c0_15 = arith.constant 0 : index
    %16 = vector.load %arg7[%c0_13, %c0_14, %c0_15] : memref<1x20x128xf32, #tpu.memory_space<vmem>>, vector<1x20x128xf32>
    %17 = vector.shape_cast %16 : vector<1x20x128xf32> to vector<20x128xf32>
    %18 = vector.shape_cast %15 : vector<20x128xf32> to vector<1x20x128xf32>
    tpu.vector_store %arg7[%c0_13, %c0_14, %c0_15], %18 {strides = array<i32>} : memref<1x20x128xf32, #tpu.memory_space<vmem>>, vector<1x20x128xf32>,
    return
  }
  func.func @transform_0(%arg0: i32, %arg1: i32) -> (i32, i32, i32) {
    %c0_i32 = arith.constant 0 : i32
    %c0_i32_0 = arith.constant 0 : i32
    return %arg0, %c0_i32, %arg1 : i32, i32, i32
  }
  func.func @transform_1(%arg0: i32, %arg1: i32) -> (i32, i32) {
    %c0_i32 = arith.constant 0 : i32
    %c0_i32_0 = arith.constant 0 : i32
    %c0_i32_1 = arith.constant 0 : i32
    return %c0_i32, %c0_i32_0 : i32, i32
  }
  func.func @transform_2(%arg0: i32, %arg1: i32) -> (i32, i32) {
    %c0_i32 = arith.constant 0 : i32
    %c0_i32_0 = arith.constant 0 : i32
    %c0_i32_1 = arith.constant 0 : i32
    return %c0_i32, %c0_i32_0 : i32, i32
  }
  func.func @transform_3(%arg0: i32, %arg1: i32) -> (i32, i32) {
    %c0_i32 = arith.constant 0 : i32
    %c0_i32_0 = arith.constant 0 : i32
    %c0_i32_1 = arith.constant 0 : i32
    return %c0_i32, %c0_i32_0 : i32, i32
  }
  func.func @transform_4(%arg0: i32, %arg1: i32) -> (i32, i32, i32) {
    %c0_i32 = arith.constant 0 : i32
    %c0_i32_0 = arith.constant 0 : i32
    %c0_i32_1 = arith.constant 0 : i32
    return %arg0, %c0_i32, %c0_i32_0 : i32, i32, i32
  }
  func.func @transform_5(%arg0: i32, %arg1: i32) -> (i32, i32, i32) {
    %c0_i32 = arith.constant 0 : i32
    %c0_i32_0 = arith.constant 0 : i32
    return %arg0, %c0_i32, %arg1 : i32, i32, i32
  }
}

module attributes {stable_mosaic.version = 11 : i64} {
  func.func @_bilinear_kernel(%arg0: i32, %arg1: i32, %arg2: i32, %arg3: memref<1x1x16x32xf32, #tpu.memory_space<vmem>>, %arg4: memref<64x16xf32, #tpu.memory_space<vmem>>, %arg5: memref<32x128xf32, #tpu.memory_space<vmem>>, %arg6: memref<1x1x64x128xf32, #tpu.memory_space<vmem>>, %arg7: memref<16x128xf32, #tpu.memory_space<vmem>>) attributes {dimension_semantics = [#tpu.dimension_semantics<parallel>, #tpu.dimension_semantics<parallel>, #tpu.dimension_semantics<arbitrary>], iteration_bounds = array<i64: 2, 20, 1>, scalar_prefetch = 0 : i64, scratch_operands = 1 : i64, tpu.core_type = #tpu.core_type<tc>, window_params = [{transform_indices = @transform_0, window_bounds = array<i64: 1, 1, 16, 32>}, {transform_indices = @transform_1, window_bounds = array<i64: 64, 16>}, {pipeline_mode = #tpu.pipeline_mode<synchronous>, transform_indices = @transform_2, window_bounds = array<i64: 32, 128>}, {transform_indices = @transform_3, window_bounds = array<i64: 1, 1, 64, 128>}]} {
    %c0_i32 = arith.constant 0 : i32
    %0 = arith.cmpi eq, %arg2, %c0_i32 : i32
    %1 = arith.extui %0 : i1 to i32
    %c0_i32_0 = arith.constant 0 : i32
    %2 = arith.cmpi ne, %1, %c0_i32_0 : i32
    scf.if %2 {
      %c0_8 = arith.constant 0 : index
      %c0_9 = arith.constant 0 : index
      %c0_10 = arith.constant 0 : index
      %c0_11 = arith.constant 0 : index
      %9 = vector.load %arg3[%c0_8, %c0_9, %c0_10, %c0_11] : memref<1x1x16x32xf32, #tpu.memory_space<vmem>>, vector<1x1x16x32xf32>
      %10 = vector.shape_cast %9 : vector<1x1x16x32xf32> to vector<16x32xf32>
      %c0_12 = arith.constant 0 : index
      %c0_13 = arith.constant 0 : index
      %11 = vector.load %arg5[%c0_12, %c0_13] : memref<32x128xf32, #tpu.memory_space<vmem>>, vector<32x128xf32>
      %cst_14 = arith.constant dense<0.000000e+00> : vector<16x128xf32>
      %12 = tpu.matmul %10, %11, %cst_14 {dimension_numbers = #tpu.dot_dimension_numbers<[1], [0], [0], [1], [0, 0, 1, 1], [], []>} : vector<16x32xf32>, vector<32x128xf32>, vector<16x128xf32> -> vector<16x128xf32>
      %c0_15 = arith.constant 0 : index
      %c0_16 = arith.constant 0 : index
      %13 = vector.load %arg7[%c0_15, %c0_16] : memref<16x128xf32, #tpu.memory_space<vmem>>, vector<16x128xf32>
      tpu.vector_store %arg7[%c0_15, %c0_16], %12 {strides = array<i32>} : memref<16x128xf32, #tpu.memory_space<vmem>>, vector<16x128xf32>,
    } else {
    }
    %c0 = arith.constant 0 : index
    %c0_1 = arith.constant 0 : index
    %3 = vector.load %arg4[%c0, %c0_1] : memref<64x16xf32, #tpu.memory_space<vmem>>, vector<64x16xf32>
    %c0_2 = arith.constant 0 : index
    %c0_3 = arith.constant 0 : index
    %4 = vector.load %arg7[%c0_2, %c0_3] : memref<16x128xf32, #tpu.memory_space<vmem>>, vector<16x128xf32>
    %cst = arith.constant dense<0.000000e+00> : vector<64x128xf32>
    %5 = tpu.matmul %3, %4, %cst {dimension_numbers = #tpu.dot_dimension_numbers<[1], [0], [0], [1], [0, 0, 1, 1], [], []>} : vector<64x16xf32>, vector<16x128xf32>, vector<64x128xf32> -> vector<64x128xf32>
    %c0_4 = arith.constant 0 : index
    %c0_5 = arith.constant 0 : index
    %c0_6 = arith.constant 0 : index
    %c0_7 = arith.constant 0 : index
    %6 = vector.load %arg6[%c0_4, %c0_5, %c0_6, %c0_7] : memref<1x1x64x128xf32, #tpu.memory_space<vmem>>, vector<1x1x64x128xf32>
    %7 = vector.shape_cast %6 : vector<1x1x64x128xf32> to vector<64x128xf32>
    %8 = vector.shape_cast %5 : vector<64x128xf32> to vector<1x1x64x128xf32>
    tpu.vector_store %arg6[%c0_4, %c0_5, %c0_6, %c0_7], %8 {strides = array<i32>} : memref<1x1x64x128xf32, #tpu.memory_space<vmem>>, vector<1x1x64x128xf32>,
    return
  }
  func.func @transform_0(%arg0: i32, %arg1: i32, %arg2: i32) -> (i32, i32, i32, i32) {
    %c0_i32 = arith.constant 0 : i32
    %c0_i32_0 = arith.constant 0 : i32
    %c0_i32_1 = arith.constant 0 : i32
    return %arg0, %arg1, %c0_i32, %c0_i32_0 : i32, i32, i32, i32
  }
  func.func @transform_1(%arg0: i32, %arg1: i32, %arg2: i32) -> (i32, i32) {
    %c0_i32 = arith.constant 0 : i32
    %c0_i32_0 = arith.constant 0 : i32
    return %arg2, %c0_i32 : i32, i32
  }
  func.func @transform_2(%arg0: i32, %arg1: i32, %arg2: i32) -> (i32, i32) {
    %c0_i32 = arith.constant 0 : i32
    %c0_i32_0 = arith.constant 0 : i32
    %c0_i32_1 = arith.constant 0 : i32
    return %c0_i32, %c0_i32_0 : i32, i32
  }
  func.func @transform_3(%arg0: i32, %arg1: i32, %arg2: i32) -> (i32, i32, i32, i32) {
    %c0_i32 = arith.constant 0 : i32
    %c0_i32_0 = arith.constant 0 : i32
    return %arg0, %arg1, %arg2, %c0_i32 : i32, i32, i32, i32
  }
}

</mosaic_0001>

<bundles_post_ra>
// kernel: graphonomy_forward.5
= control target key start
LH: loop header
LB: loop body
LE: loop exit
PB: predicated region body
PF: predicated region fallthrough
CT: control target
= control target key end

     0   :  { %s1809_s30 = smov 0   ;;  %s2325_s0 = inlined_call_operand.vmem [shape: f32[2,2,20,128], index: 0, kind: input, shape index: {}]   ;;  %s2326_s1 = inlined_call_operand.vmem [shape: f32[128,128], index: 1, kind: input, shape index: {}]   ;;  %s2327_s2 = inlined_call_operand.vmem [shape: f32[20,20], index: 2, kind: input, shape index: {}]   ;;  %s2328_s3 = inlined_call_operand.vmem [shape: f32[1,128], index: 3, kind: input, shape index: {}]   ;;  %s2329_s4 = inlined_call_operand.vmem [shape: f32[128,256], index: 4, kind: input, shape index: {}]   ;;  %s2330_s5 = inlined_call_operand.vmem [shape: f32[256,20], index: 5, kind: input, shape index: {}]   ;;  %s2331_s6 = inlined_call_operand.vmem [shape: f32[1,20], index: 6, kind: input, shape index: {}]   ;;  %s2332_s7 = inlined_call_operand.vmem [shape: f32[2,20,128], index: 7, kind: output, shape index: {0}]   ;;  %s2333_s8 = inlined_call_operand.vmem [shape: f32[2,1,256], index: 8, kind: output, shape index: {1}]   ;;  %s2334_s9 = inlined_call_operand.vmem [shape: f32[2,1,20], index: 9, kind: output, shape index: {2}]  }
   0x1 LB: > { %s1415_s10 = sadd.s32 4294967295, %s1754_s30   ;;  %p1419_p0 = scmp.ge.s32.totalorder %s1754_s30, 1  ;;  %s1754_s30 = sphi %s1809_s30, %s20_s30  }
   0x2   : > { %p292_p1 = scmp.lt.s32.totalorder %s1754_s30, 3 }
   0x4   : > { %p293_p2 = pnand %p1419_p0, %p292_p1 }
   0x5   : > { %p335_p3 = scmp.lt.s32.totalorder (!%p293_p2), %s1415_s10, 1 }
   0x6   : > { %296 = sbr.rel (%p293_p2) target bundleno = 2169 (0x879), region = 48 }
   0xb   : > { %v1820_v0 = vld [vmem:[%s2326_s1 + $0x78] sm:$0xff]  ;;  %v1756_v1 = vmov 0.0   ;;  %v1826_v2 = vld [vmem:[%s2326_s1 + $0x70] sm:$0xff]  ;;  %vm1757_vm0 = vmmov 0   ;;  %v1836_v3 = vld [vmem:[%s2326_s1 + $0x68] sm:$0xff]  ;;  %s2336_s10 = smov (!%p335_p3, %s1415_s10), 1 }
   0xc   : > { %1554 = vmatprep.subr.mxu0 %v1756_v1  ;;  %1586 = vmatprep.mubr.msk.f32.mxu0 %vm1757_vm0, %v1756_v1  ;;  %v1845_v4 = vld [vmem:[%s2326_s1 + $0x60] sm:$0xff]  ;;  %v1852_v5 = vld [vmem:[%s2326_s1 + $0x58] sm:$0xff]  ;;  %v1859_v6 = vld [vmem:[%s2326_s1 + $0x50] sm:$0xff]  ;;  %s1731_s29 = smul.u32 48, %s2336_s10  ;;  %vm360_vm1 = vcmask 1043456   ;;  %vm466_vm2 = vcmask 162816   ;;  %s351_s24 = scalar_lea.vmem %s2334_s9, %s2336_s10 }
   0xd   : > { %1555 = vmatpush3.msra.mxu0 %v1820_v0  ;;  %1595 = vmatprep.subr.mxu1 %v1756_v1  ;;  %v1866_v7 = vld [vmem:[%s2326_s1 + $0x48] sm:$0xff]  ;;  %v1875_v8 = vld [vmem:[%s2326_s1 + $0x40] sm:$0xff]  ;;  %v1882_v9 = vld [vmem:[%s2326_s1 + $0x38] sm:$0xff]  ;;  %s1732_s15 = smul.u32 24, %s2336_s10  ;;  %vm968_vm3 = vcmask 155648   ;;  %s1422_s16 = sshll.u32 %s2336_s10, 1 }
   0xe   : > { %1556 = vmatprep.subr.mxu0 %v1756_v1  ;;  %1601 = vmatprep.mubr.msk.f32.mxu1 %vm1757_vm0, %v1756_v1  ;;  %v1890_v10 = vld [vmem:[%s2326_s1 + $0x30] sm:$0xff]  ;;  %v1897_v11 = vld [vmem:[%s2326_s1 + $0x28] sm:$0xff]  ;;  %s339_s17 = scalar_lea.vmem %s2325_s0, %s1731_s29  ;;  %v1907_v12 = vld [vmem:[%s2326_s1 + $0x20] sm:$0xff]  ;;  %s348_s19 = scalar_lea.vmem %s2333_s8, %s1422_s16 }
   0xf   : > { %1557 = vmatpush3.msra.mxu0 %v1826_v2  ;;  %v352_v13 = vld [vmem:[%s339_s17] sm:$0xff]  ;;  %v355_v14 = vld [vmem:[%s339_s17 + $0x18] sm:$0xff]  ;;  %v1921_v16 = vld [vmem:[%s2326_s1 + $0x10] sm:$0xff]  ;;  %s344_s18 = scalar_lea.vmem %s2332_s7, %s1732_s15 }
  0x10   : > { %1558 = vmatprep.subr.mxu0 %v1756_v1  ;;  %v1914_v15 = vld [vmem:[%s2326_s1 + $0x18] sm:$0xff]  ;;  %v358_v17 = vadd.f32 %v355_v14, %v352_v13  ;;  %v353_v18 = vld [vmem:[%s339_s17 + $0x8] sm:$0xff]  ;;  %v356_v19 = vld [vmem:[%s339_s17 + $0x20] sm:$0xff] }
  0x11   : > { %1559 = vmatpush3.msra.mxu0 %v1836_v3  ;;  %v1928_v20 = vld [vmem:[%s2326_s1 + $0x8] sm:$0xff]  ;;  %v354_v21 = vld [vmem:[%s339_s17 + $0x10] sm:$0xf]  ;;  %v1935_v23 = vld [vmem:[%s2326_s1] sm:$0xff]  ;;  %v359_v25 = vadd.f32 %v356_v19, %v353_v18 }
  0x12   : > { %1560 = vmatprep.subr.mxu0 %v1756_v1  ;;  %v357_v22 = vld [vmem:[%s339_s17 + $0x28] sm:$0xf]  ;;  %v364_v24 = vmax.f32 %v358_v17, 0.0  ;;  %v361_v26 = vsel %vm360_vm1, %v354_v21, 0.0  ;;  %v1954_v37 = vld [vmem:[%s2327_s2] sm:$0xff]  ;;  %v1010_v18 = vld [vmem:[%s2329_s4 + $0xf0] sm:$0xff] }
  0x13   : > { %1561 = vmatpush3.msra.mxu0 %v1845_v4  ;;  %v362_v27 = vsel %vm360_vm1, %v357_v22, 0.0  ;;  %v365_v28 = vmax.f32 %v359_v25, 0.0  ;;  %v1965_v38 = vld [vmem:[%s2327_s2 + $0x8] sm:$0xff]  ;;  %v1978_v39 = vld [vmem:[%s2327_s2 + $0x10] sm:$0xf]  ;;  %v1007_v21 = vld [vmem:[%s2329_s4 + $0xd8] sm:$0xff] }
  0x14   : > { %1562 = vmatprep.subr.mxu0 %v1756_v1  ;;  %v363_v29 = vadd.f32 %v362_v27, %v361_v26  ;;  %v897_v17 = vld [vmem:[%s2328_s3] sm:$0x1]  ;;  %v1009_v19 = vld [vmem:[%s2329_s4 + $0xe8] sm:$0xff]  ;;  %v1006_v22 = vld [vmem:[%s2329_s4 + $0xd0] sm:$0xff] }
  0x15   : > { %1563 = vmatpush3.msra.mxu0 %v1852_v5  ;;  %v1003_v25 = vld [vmem:[%s2329_s4 + $0xb8] sm:$0xff]  ;;  %v1002_v26 = vld [vmem:[%s2329_s4 + $0xb0] sm:$0xff]  ;;  %v1001_v27 = vld [vmem:[%s2329_s4 + $0xa8] sm:$0xff] }
  0x16   : > { %1564 = vmatprep.subr.mxu0 %v1756_v1  ;;  %v366_v30 = vmax.f32 %v363_v29, 0.0  ;;  %v999_v29 = vld [vmem:[%s2329_s4 + $0x98] sm:$0xff] }
  0x17   : > { %1565 = vmatpush3.msra.mxu0 %v1859_v6 }
  0x18   : > { %1566 = vmatprep.subr.mxu0 %v1756_v1 }
  0x19   : > { %1567 = vmatpush3.msra.mxu0 %v1866_v7 }
  0x1a   : > { %1568 = vmatprep.subr.mxu0 %v1756_v1 }
  0x1b   : > { %1569 = vmatpush3.msra.mxu0 %v1875_v8 }
  0x1c   : > { %1570 = vmatprep.subr.mxu0 %v1756_v1 }
  0x1d   : > { %1571 = vmatpush3.msra.mxu0 %v1882_v9 }
  0x1e   : > { %1572 = vmatprep.subr.mxu0 %v1756_v1 }
  0x1f   : > { %1573 = vmatpush3.msra.mxu0 %v1890_v10 }
  0x20   : > { %1574 = vmatprep.subr.mxu0 %v1756_v1 }
  0x21   : > { %1575 = vmatpush3.msra.mxu0 %v1897_v11 }
  0x22   : > { %1576 = vmatprep.subr.mxu0 %v1756_v1 }
  0x23   : > { %1577 = vmatpush3.msra.mxu0 %v1907_v12 }
  0x24   : > { %1578 = vmatprep.subr.mxu0 %v1756_v1 }
  0x25   : > { %1579 = vmatpush3.msra.mxu0 %v1914_v15 }
  0x26   : > { %1580 = vmatprep.subr.mxu0 %v1756_v1 }
  0x27   : > { %1581 = vmatpush3.msra.mxu0 %v1921_v16 }
  0x28   : > { %1582 = vmatprep.subr.mxu0 %v1756_v1 }
  0x29   : > { %1583 = vmatpush3.msra.mxu0 %v1928_v20 }
  0x2a   : > { %1584 = vmatprep.subr.mxu0 %v1756_v1 }
  0x2b   : > { %1585 = vmatpush3.msra.mxu0 %v1935_v23 }
  0x2c   : > { %1587 = vmatmul.mubr.f32.vlgmr.msra.gmra.mxu0 %v364_v24  ;;  %1651 = vmatprep.subr.mxu0 %v1756_v1  ;;  %v1004_v24 = vld [vmem:[%s2329_s4 + $0xc0] sm:$0xff] }
  0x2d   : > { %1589 = vmatprep.mubr.msk.f32.mxu0 %vm1757_vm0, %v1756_v1 }
  0x30   : > { %1590 = vmatmul.mubr.f32.gmra.mxu0 %v365_v28  ;;  %v1000_v28 = vld [vmem:[%s2329_s4 + $0xa0] sm:$0xff] }
  0x31   : > { %1592 = vmatprep.mubr.msk.f32.mxu0 %vm1757_vm0, %v1756_v1 }
  0x34   : > { %1593 = vmatmul.mubr.f32.gmra.mxu0 %v366_v30  ;;  %v998_v30 = vld [vmem:[%s2329_s4 + $0x90] sm:$0xff] }
  0x35   : > { %1657 = vmatprep.mubr.msk.f32.mxu0 %vm1757_vm0, %v1756_v1 }
  0xec   : > { %v452_v31 = vpop.f32.mrf.mxu0 }
  0xee   : > { %v1588_v32 = vpop.f32.mrf.mxu0 }
  0xef   : > { %v996_v32 = vld [vmem:[%s2329_s4 + $0x80] sm:$0xff] }
  0xf0   : > { %v457_v33 = vpop.f32.mrf.mxu0 }
  0xf2   : > { %v1591_v34 = vpop.f32.mrf.mxu0 }
  0xf3   : > { %v994_v34 = vld [vmem:[%s2329_s4 + $0x70] sm:$0xff] }
  0xf4   : > { %v462_v35 = vpop.f32.mrf.mxu0 }
  0xf5   : > { %1596 = vmatpush3.msk.msra.mxu1 %vm360_vm1, %v462_v35  ;;  %v993_v35 = vld [vmem:[%s2329_s4 + $0x68] sm:$0xff] }
  0xf6   : > { %v1594_v36 = vpop.f32.mrf.mxu0  ;;  %1597 = vmatprep.subr.mxu1 %v1756_v1 }
  0xf7   : > { %1598 = vmatpush3.msra.mxu1 %v457_v33  ;;  %v995_v33 = vld [vmem:[%s2329_s4 + $0x78] sm:$0xff]  ;;  %v992_v36 = vld [vmem:[%s2329_s4 + $0x60] sm:$0xff] }
  0xf8   : > { %1599 = vmatprep.subr.mxu1 %v1756_v1 }
  0xf9   : > { %1600 = vmatpush3.msra.mxu1 %v452_v31  ;;  %v997_v31 = vld [vmem:[%s2329_s4 + $0x88] sm:$0xff] }
  0xfa   : > { %1602 = vmatmul.mubr.msk.f32.vlgmr.msra.gmra.mxu1 %vm466_vm2, %v1954_v37  ;;  %1610 = vmatprep.subr.mxu1 %v1756_v1 }
  0xfb   : > { %1604 = vmatprep.mubr.msk.f32.mxu1 %vm1757_vm0, %v1756_v1  ;;  %1611 = vmatpush3.msra.mxu1 %v1820_v0 }
  0xfc   : > { %1612 = vmatprep.subr.mxu1 %v1756_v1 }
  0xfd   : > { %1613 = vmatpush3.msra.mxu1 %v1826_v2 }
  0xfe   : > { %1605 = vmatmul.mubr.msk.f32.gmra.mxu1 %vm466_vm2, %v1965_v38  ;;  %1614 = vmatprep.subr.mxu1 %v1756_v1 }
  0xff   : > { %1607 = vmatprep.mubr.msk.f32.mxu1 %vm1757_vm0, %v1756_v1  ;;  %1615 = vmatpush3.msra.mxu1 %v1836_v3 }
 0x100   : > { %1616 = vmatprep.subr.mxu1 %v1756_v1 }
 0x101   : > { %1617 = vmatpush3.msra.mxu1 %v1845_v4 }
 0x102   : > { %1608 = vmatmul.mubr.msk.f32.gmra.mxu1 %vm466_vm2, %v1978_v39  ;;  %1618 = vmatprep.subr.mxu1 %v1756_v1 }
 0x103   : > { %1619 = vmatpush3.msra.mxu1 %v1852_v5  ;;  %1642 = vmatprep.mubr.msk.f32.mxu1 %vm1757_vm0, %v1756_v1 }
 0x104   : > { %1620 = vmatprep.subr.mxu1 %v1756_v1 }
 0x105   : > { %1621 = vmatpush3.msra.mxu1 %v1859_v6 }
 0x106   : > { %1622 = vmatprep.subr.mxu1 %v1756_v1 }
 0x107   : > { %1623 = vmatpush3.msra.mxu1 %v1866_v7 }
 0x108   : > { %1624 = vmatprep.subr.mxu1 %v1756_v1 }
 0x109   : > { %1625 = vmatpush3.msra.mxu1 %v1875_v8 }
 0x10a   : > { %1626 = vmatprep.subr.mxu1 %v1756_v1 }
 0x10b   : > { %1627 = vmatpush3.msra.mxu1 %v1882_v9 }
 0x10c   : > { %1628 = vmatprep.subr.mxu1 %v1756_v1 }
 0x10d   : > { %1629 = vmatpush3.msra.mxu1 %v1890_v10 }
 0x10e   : > { %1630 = vmatprep.subr.mxu1 %v1756_v1 }
 0x10f   : > { %1631 = vmatpush3.msra.mxu1 %v1897_v11 }
 0x110   : > { %1632 = vmatprep.subr.mxu1 %v1756_v1 }
 0x111   : > { %1633 = vmatpush3.msra.mxu1 %v1907_v12 }
 0x112   : > { %1634 = vmatprep.subr.mxu1 %v1756_v1 }
 0x113   : > { %1635 = vmatpush3.msra.mxu1 %v1914_v15 }
 0x114   : > { %1636 = vmatprep.subr.mxu1 %v1756_v1 }
 0x115   : > { %1637 = vmatpush3.msra.mxu1 %v1921_v16 }
 0x116   : > { %1638 = vmatprep.subr.mxu1 %v1756_v1 }
 0x117   : > { %1639 = vmatpush3.msra.mxu1 %v1928_v20 }
 0x118   : > { %1640 = vmatprep.subr.mxu1 %v1756_v1 }
 0x119   : > { %1641 = vmatpush3.msra.mxu1 %v1935_v23 }
 0x11a   : > { %1666 = vmatprep.subr.mxu1 %v1756_v1 }
 0x1ba   : > { %v545_v40 = vpop.f32.mrf.mxu1 }
 0x1bb   : > { %v559_v41 = vmax.f32 %v545_v40, 0.0  ;;  %v988_v40 = vld [vmem:[%s2329_s4 + $0x40] sm:$0xff] }
 0x1bc   : > { %v1603_v42 = vpop.f32.mrf.mxu1 }
 0x1bd   : > { %1643 = vmatmul.mubr.f32.vlgmr.msra.gmra.mxu1 %v559_v41  ;;  %v987_v41 = vld [vmem:[%s2329_s4 + $0x38] sm:$0xff]  ;;  %v986_v42 = vld [vmem:[%s2329_s4 + $0x30] sm:$0xff] }
 0x1be   : > { %v550_v43 = vpop.f32.mrf.mxu1  ;;  %1645 = vmatprep.mubr.msk.f32.mxu1 %vm1757_vm0, %v1756_v1  ;;  %1667 = vmatpush3.msra.mxu1 %v1820_v0 }
 0x1bf   : > { %v560_v44 = vmax.f32 %v550_v43, 0.0  ;;  %1668 = vmatprep.subr.mxu1 %v1756_v1  ;;  %v985_v43 = vld [vmem:[%s2329_s4 + $0x28] sm:$0xff] }
 0x1c0   : > { %v1606_v45 = vpop.f32.mrf.mxu1  ;;  %1669 = vmatpush3.msra.mxu1 %v1826_v2 }
 0x1c1   : > { %1646 = vmatmul.mubr.f32.gmra.mxu1 %v560_v44  ;;  %1670 = vmatprep.subr.mxu1 %v1756_v1  ;;  %v984_v44 = vld [vmem:[%s2329_s4 + $0x20] sm:$0xff]  ;;  %v983_v45 = vld [vmem:[%s2329_s4 + $0x18] sm:$0xff] }
 0x1c2   : > { %v555_v46 = vpop.f32.mrf.mxu1  ;;  %1648 = vmatprep.mubr.msk.f32.mxu1 %vm1757_vm0, %v1756_v1  ;;  %1671 = vmatpush3.msra.mxu1 %v1836_v3 }
 0x1c3   : > { %v561_v47 = vmax.f32 %v555_v46, 0.0  ;;  %1672 = vmatprep.subr.mxu1 %v1756_v1  ;;  %v982_v46 = vld [vmem:[%s2329_s4 + $0x10] sm:$0xff] }
 0x1c4   : > { %v1609_v48 = vpop.f32.mrf.mxu1  ;;  %1673 = vmatpush3.msra.mxu1 %v1845_v4 }
 0x1c5   : > { %1649 = vmatmul.mubr.f32.gmra.mxu1 %v561_v47  ;;  %1674 = vmatprep.subr.mxu1 %v1756_v1  ;;  %v981_v47 = vld [vmem:[%s2329_s4 + $0x8] sm:$0xff]  ;;  %v980_v48 = vld [vmem:[%s2329_s4] sm:$0xff] }
 0x1c6   : > { %1675 = vmatpush3.msra.mxu1 %v1852_v5  ;;  %1698 = vmatprep.mubr.msk.f32.mxu1 %vm1757_vm0, %v1756_v1 }
 0x1c7   : > { %1676 = vmatprep.subr.mxu1 %v1756_v1 }
 0x1c8   : > { %1677 = vmatpush3.msra.mxu1 %v1859_v6 }
 0x1c9   : > { %1678 = vmatprep.subr.mxu1 %v1756_v1 }
 0x1ca   : > { %1679 = vmatpush3.msra.mxu1 %v1866_v7 }
 0x1cb   : > { %1680 = vmatprep.subr.mxu1 %v1756_v1 }
 0x1cc   : > { %1681 = vmatpush3.msra.mxu1 %v1875_v8 }
 0x1cd   : > { %1682 = vmatprep.subr.mxu1 %v1756_v1 }
 0x1ce   : > { %1683 = vmatpush3.msra.mxu1 %v1882_v9 }
 0x1cf   : > { %1684 = vmatprep.subr.mxu1 %v1756_v1 }
 0x1d0   : > { %1685 = vmatpush3.msra.mxu1 %v1890_v10 }
 0x1d1   : > { %1686 = vmatprep.subr.mxu1 %v1756_v1 }
 0x1d2   : > { %1687 = vmatpush3.msra.mxu1 %v1897_v11 }
 0x1d3   : > { %1688 = vmatprep.subr.mxu1 %v1756_v1 }
 0x1d4   : > { %1689 = vmatpush3.msra.mxu1 %v1907_v12 }
 0x1d5   : > { %1690 = vmatprep.subr.mxu1 %v1756_v1 }
 0x1d6   : > { %1691 = vmatpush3.msra.mxu1 %v1914_v15 }
 0x1d7   : > { %1692 = vmatprep.subr.mxu1 %v1756_v1 }
 0x1d8   : > { %1693 = vmatpush3.msra.mxu1 %v1921_v16  ;;  %v1011_v16 = vld [vmem:[%s2329_s4 + $0xf8] sm:$0xff] }
 0x1d9   : > { %1694 = vmatprep.subr.mxu1 %v1756_v1 }
 0x1da   : > { %1695 = vmatpush3.msra.mxu1 %v1928_v20  ;;  %v1008_v20 = vld [vmem:[%s2329_s4 + $0xe0] sm:$0xff] }
 0x1db   : > { %1696 = vmatprep.subr.mxu1 %v1756_v1 }
 0x1dc   : > { %1697 = vmatpush3.msra.mxu1 %v1935_v23  ;;  %v1005_v23 = vld [vmem:[%s2329_s4 + $0xc8] sm:$0xff] }
 0x27d   : > { %v628_v49 = vpop.f32.mrf.mxu1 }
 0x27f   : > { %v1644_v50 = vpop.f32.mrf.mxu1 }
 0x281   : > { %v633_v51 = vpop.f32.mrf.mxu1 }
 0x283   : > { %v1647_v52 = vpop.f32.mrf.mxu1 }
 0x285   : > { %v638_v53 = vpop.f32.mrf.mxu1 }
 0x286   : > { %1652 = vmatpush3.msk.msra.mxu0 %vm360_vm1, %v638_v53 }
 0x287   : > { %v1650_v54 = vpop.f32.mrf.mxu1  ;;  %1653 = vmatprep.subr.mxu0 %v1756_v1 }
 0x288   : > { %1654 = vmatpush3.msra.mxu0 %v633_v51 }
 0x289   : > { %1655 = vmatprep.subr.mxu0 %v1756_v1 }
 0x28a   : > { %1656 = vmatpush3.msra.mxu0 %v628_v49 }
 0x28b   : > { %1658 = vmatmul.mubr.msk.f32.vlgmr.msra.gmra.mxu0 %vm466_vm2, %v1954_v37  ;;  %1707 = vmatprep.subr.mxu0 %v1756_v1 }
 0x28c   : > { %1660 = vmatprep.mubr.msk.f32.mxu0 %vm1757_vm0, %v1756_v1 }
 0x28f   : > { %1661 = vmatmul.mubr.msk.f32.gmra.mxu0 %vm466_vm2, %v1965_v38 }
 0x290   : > { %1663 = vmatprep.mubr.msk.f32.mxu0 %vm1757_vm0, %v1756_v1 }
 0x293   : > { %1664 = vmatmul.mubr.msk.f32.gmra.mxu0 %vm466_vm2, %v1978_v39 }
 0x294   : > { %1713 = vmatprep.mubr.msk.f32.mxu0 %vm1757_vm0, %v1756_v1 }
 0x34b   : > { %v711_v55 = vpop.f32.mrf.mxu0 }
 0x34c   : > { %v725_v56 = vmax.f32 %v711_v55, 0.0 }
 0x34d   : > { %v1659_v57 = vpop.f32.mrf.mxu0 }
 0x34e   : > { %1699 = vmatmul.mubr.f32.vlgmr.msra.gmra.mxu1 %v725_v56 }
 0x34f   : > { %v716_v58 = vpop.f32.mrf.mxu0  ;;  %1701 = vmatprep.mubr.msk.f32.mxu1 %vm1757_vm0, %v1756_v1 }
 0x350   : > { %v726_v59 = vmax.f32 %v716_v58, 0.0 }
 0x351   : > { %v1662_v60 = vpop.f32.mrf.mxu0 }
 0x352   : > { %1702 = vmatmul.mubr.f32.gmra.mxu1 %v726_v59 }
 0x353   : > { %v721_v61 = vpop.f32.mrf.mxu0  ;;  %1704 = vmatprep.mubr.msk.f32.mxu1 %vm1757_vm0, %v1756_v1 }
 0x354   : > { %v727_v62 = vmax.f32 %v721_v61, 0.0 }
 0x355   : > { %v1665_v63 = vpop.f32.mrf.mxu0 }
 0x356   : > { %1705 = vmatmul.mubr.f32.gmra.mxu1 %v727_v62  ;;  %v1231_v62 = vld [vmem:[%s2330_s5 + $0xf8] sm:$0xff] }
 0x357   : > { %v1215_v63 = vld [vmem:[%s2330_s5 + $0x78] sm:$0xff]  ;;  %1519 = vmatprep.subr.mxu1 %v1231_v62 }
 0x358   : > { %1520 = vmatpush3.msra.mxu1 %v1215_v63 }
 0x40e   : > { %v794_v0 = vpop.f32.mrf.mxu1 }
 0x410   : > { %v1700_v2 = vpop.f32.mrf.mxu1 }
 0x411   : > { %v1214_v2 = vld [vmem:[%s2330_s5 + $0x70] sm:$0xff] }
 0x412   : > { %v799_v3 = vpop.f32.mrf.mxu1 }
 0x414   : > { %v1703_v4 = vpop.f32.mrf.mxu1 }
 0x415   : > { %v1213_v4 = vld [vmem:[%s2330_s5 + $0x68] sm:$0xff] }
 0x416   : > { %v804_v5 = vpop.f32.mrf.mxu1 }
 0x417   : > { %1708 = vmatpush3.msk.msra.mxu0 %vm360_vm1, %v804_v5  ;;  %v1228_v5 = vld [vmem:[%s2330_s5 + $0xe0] sm:$0xff] }
 0x418   : > { %v1706_v6 = vpop.f32.mrf.mxu1  ;;  %1709 = vmatprep.subr.mxu0 %v1756_v1 }
 0x419   : > { %1710 = vmatpush3.msra.mxu0 %v799_v3  ;;  %v1229_v3 = vld [vmem:[%s2330_s5 + $0xe8] sm:$0xff]  ;;  %v1212_v6 = vld [vmem:[%s2330_s5 + $0x60] sm:$0xff] }
 0x41a   : > { %1711 = vmatprep.subr.mxu0 %v1756_v1 }
 0x41b   : > { %1712 = vmatpush3.msra.mxu0 %v794_v0  ;;  %v1230_v0 = vld [vmem:[%s2330_s5 + $0xf0] sm:$0xff] }
 0x41c   : > { %1714 = vmatmul.mubr.msk.f32.vlgmr.msra.gmra.mxu0 %vm466_vm2, %v1954_v37  ;;  %1722 = vmatprep.subr.mxu0 %v1756_v1  ;;  %v991_v37 = vld [vmem:[%s2329_s4 + $0x58] sm:$0xff] }
 0x41d   : > { %1716 = vmatprep.mubr.msk.f32.mxu0 %vm1757_vm0, %v1756_v1  ;;  %1521 = vmatprep.subr.mxu1 %v1230_v0 }
 0x41e   : > { %1522 = vmatpush3.msra.mxu1 %v1214_v2 }
 0x41f   : > { %1523 = vmatprep.subr.mxu1 %v1229_v3 }
 0x420   : > { %1717 = vmatmul.mubr.msk.f32.gmra.mxu0 %vm466_vm2, %v1965_v38  ;;  %v990_v38 = vld [vmem:[%s2329_s4 + $0x50] sm:$0xff]  ;;  %1524 = vmatpush3.msra.mxu1 %v1213_v4 }
 0x421   : > { %1719 = vmatprep.mubr.msk.f32.mxu0 %vm1757_vm0, %v1756_v1  ;;  %1525 = vmatprep.subr.mxu1 %v1228_v5 }
 0x422   : > { %1526 = vmatpush3.msra.mxu1 %v1212_v6 }
 0x424   : > { %1720 = vmatmul.mubr.msk.f32.gmra.mxu0 %vm466_vm2, %v1978_v39  ;;  %v989_v39 = vld [vmem:[%s2329_s4 + $0x48] sm:$0xff] }
 0x425   : > { %1728 = vmatprep.mubr.msk.f32.mxu0 %vm1757_vm0, %v1756_v1 }
 0x4dc   : > { %v877_v7 = vpop.f32.mrf.mxu0 }
 0x4dd   : > { %v2089_v8 = vmax.f32 %v877_v7, 0.0  ;;  %v1227_v7 = vld [vmem:[%s2330_s5 + $0xd8] sm:$0xff] }
 0x4de   : > { %v1715_v9 = vpop.f32.mrf.mxu0  ;;  %1527 = vmatprep.subr.mxu1 %v1227_v7 }
 0x4df   : > { %894 = vst [vmem:[%s344_s18] sm:$0xff] %v2089_v8  ;;  %v1226_v9 = vld [vmem:[%s2330_s5 + $0xd0] sm:$0xff] }
 0x4e0   : > { %v882_v10 = vpop.f32.mrf.mxu0 }
 0x4e1   : > { %v2092_v11 = vmax.f32 %v882_v10, 0.0  ;;  %v1210_v10 = vld [vmem:[%s2330_s5 + $0x50] sm:$0xff] }
 0x4e2   : > { %v1718_v12 = vpop.f32.mrf.mxu0 }
 0x4e3   : > { %895 = vst [vmem:[%s344_s18 + $0x8] sm:$0xff] %v2092_v11  ;;  %v1209_v12 = vld [vmem:[%s2330_s5 + $0x48] sm:$0xff] }
 0x4e4   : > { %v887_v13 = vpop.f32.mrf.mxu0 }
 0x4e5   : > { %v2095_v14 = vmax.f32 %v887_v13, 0.0  ;;  %v1224_v13 = vld [vmem:[%s2330_s5 + $0xc0] sm:$0xff] }
 0x4e6   : > { %v1721_v15 = vpop.f32.mrf.mxu0 }
 0x4e7   : > { %896 = vst [vmem:[%s344_s18 + $0x10] sm:$0xf] %v2095_v14  ;;  %1723 = vmatpush3.xpose.msra.mxu0 %v2095_v14  ;;  %v1223_v15 = vld [vmem:[%s2330_s5 + $0xb8] sm:$0xff] }
 0x4e8   : > { %1724 = vmatprep.subr.mxu0 %v1756_v1 }
 0x4eb   : > { %1725 = vmatpush3.xpose.msra.mxu0 %v2092_v11 }
 0x4ec   : > { %1726 = vmatprep.subr.mxu0 %v1756_v1 }
 0x4ef   : > { %1727 = vmatpush3.xpose.msra.mxu0 %v2089_v8 }
 0x4f0   : > { %1012 = vmatprep.subr.mxu0 %v1011_v16  ;;  %v1207_v16 = vld [vmem:[%s2330_s5 + $0x38] sm:$0xff] }
 0x4f2   : > { %1729 = vmatmul.mubr.f32.vlgmr.msra.gmra.mxu0 %v897_v17  ;;  %v1222_v17 = vld [vmem:[%s2330_s5 + $0xb0] sm:$0xff] }
 0x4f3   : > { %1013 = vmatpush1.msra.mxu0 %v1010_v18  ;;  %1076 = vmatprep.mubr.f32.mxu0 %v1756_v1  ;;  %v1206_v18 = vld [vmem:[%s2330_s5 + $0x30] sm:$0xff] }
 0x4f4   : > { %1014 = vmatprep.subr.mxu0 %v1009_v19  ;;  %v1221_v19 = vld [vmem:[%s2330_s5 + $0xa8] sm:$0xff] }
 0x4f5   : > { %1015 = vmatpush1.msra.mxu0 %v1008_v20  ;;  %v1205_v20 = vld [vmem:[%s2330_s5 + $0x28] sm:$0xff] }
 0x4f6   : > { %1016 = vmatprep.subr.mxu0 %v1007_v21  ;;  %v1220_v21 = vld [vmem:[%s2330_s5 + $0xa0] sm:$0xff] }
 0x4f7   : > { %1017 = vmatpush1.msra.mxu0 %v1006_v22  ;;  %v1204_v22 = vld [vmem:[%s2330_s5 + $0x20] sm:$0xff] }
 0x4f8   : > { %1018 = vmatprep.subr.mxu0 %v1005_v23  ;;  %v1219_v23 = vld [vmem:[%s2330_s5 + $0x98] sm:$0xff] }
 0x4f9   : > { %1019 = vmatpush1.msra.mxu0 %v1004_v24  ;;  %v1203_v24 = vld [vmem:[%s2330_s5 + $0x18] sm:$0xff] }
 0x4fa   : > { %1020 = vmatprep.subr.mxu0 %v1003_v25 }
 0x4fb   : > { %1021 = vmatpush1.msra.mxu0 %v1002_v26 }
 0x4fc   : > { %1022 = vmatprep.subr.mxu0 %v1001_v27 }
 0x4fd   : > { %1023 = vmatpush1.msra.mxu0 %v1000_v28  ;;  %v1218_v28 = vld [vmem:[%s2330_s5 + $0x90] sm:$0xff] }
 0x4fe   : > { %1024 = vmatprep.subr.mxu0 %v999_v29  ;;  %v1202_v29 = vld [vmem:[%s2330_s5 + $0x10] sm:$0xff] }
 0x4ff   : > { %1025 = vmatpush1.msra.mxu0 %v998_v30  ;;  %v1217_v30 = vld [vmem:[%s2330_s5 + $0x88] sm:$0xff] }
 0x500   : > { %1026 = vmatprep.subr.mxu0 %v997_v31  ;;  %v1201_v31 = vld [vmem:[%s2330_s5 + $0x8] sm:$0xff] }
 0x501   : > { %1027 = vmatpush1.msra.mxu0 %v996_v32  ;;  %v1216_v32 = vld [vmem:[%s2330_s5 + $0x80] sm:$0xff] }
 0x502   : > { %1028 = vmatprep.subr.mxu0 %v995_v33  ;;  %v1200_v33 = vld [vmem:[%s2330_s5] sm:$0xff] }
 0x503   : > { %1029 = vmatpush1.msra.mxu0 %v994_v34  ;;  %v1758_v34 = vmov 1966171168  }
 0x504   : > { %1030 = vmatprep.subr.mxu0 %v993_v35  ;;  %v1181_v35 = vunpack.c.l.s4 %v1758_v34 }
 0x505   : > { %1031 = vmatpush1.msra.mxu0 %v992_v36  ;;  %v1183_v36 = vlaneseq }
 0x506   : > { %1032 = vmatprep.subr.mxu0 %v991_v37  ;;  %v1182_v37 = vunpack.c.0.s8 %v1181_v35 }
 0x507   : > { %1033 = vmatpush1.msra.mxu0 %v990_v38  ;;  %v1184_v38 = vshrl.u32 %v1183_v36, 7  ;;  %vm1197_vm4 = vcmp.lt.s32.totalorder %v1183_v36, 256 }
 0x508   : > { %1034 = vmatprep.subr.mxu0 %v989_v39 }
 0x509   : > { %1035 = vmatpush1.msra.mxu0 %v988_v40 }
 0x50a   : > { %1036 = vmatprep.subr.mxu0 %v987_v41 }
 0x50b   : > { %1037 = vmatpush1.msra.mxu0 %v986_v42 }
 0x50c   : > { %1038 = vmatprep.subr.mxu0 %v985_v43  ;;  %v1185_v43 = vsub.s32 %v1182_v37, %v1184_v38 }
 0x50d   : > { %1039 = vmatpush1.msra.mxu0 %v984_v44 }
 0x50e   : > { %1040 = vmatprep.subr.mxu0 %v983_v45 }
 0x50f   : > { %1041 = vmatpush1.msra.mxu0 %v982_v46 }
 0x510   : > { %1042 = vmatprep.subr.mxu0 %v981_v47 }
 0x511   : > { %1043 = vmatpush1.msra.mxu0 %v980_v48  ;;  %v1232_v48 = vld [vmem:[%s2331_s6] sm:$0x1] }
 0x512   : > { %1077 = vmatmul.mubr.f32.vlgmr.msra.gmra.mxu0 %v2089_v8  ;;  %v1211_v8 = vld [vmem:[%s2330_s5 + $0x58] sm:$0xff] }
 0x513   : > { %1082 = vmatprep.mubr.f32.mxu0 %v1756_v1  ;;  %1528 = vmatpush3.msra.mxu1 %v1211_v8 }
 0x514   : > { %1529 = vmatprep.subr.mxu1 %v1226_v9 }
 0x515   : > { %1530 = vmatpush3.msra.mxu1 %v1210_v10 }
 0x516   : > { %1083 = vmatmul.mubr.f32.gmra.mxu0 %v2092_v11  ;;  %v1225_v11 = vld [vmem:[%s2330_s5 + $0xc8] sm:$0xff] }
 0x517   : > { %1088 = vmatprep.mubr.f32.mxu0 %v1756_v1  ;;  %1531 = vmatprep.subr.mxu1 %v1225_v11 }
 0x518   : > { %1532 = vmatpush3.msra.mxu1 %v1209_v12 }
 0x519   : > { %1533 = vmatprep.subr.mxu1 %v1224_v13 }
 0x51a   : > { %1089 = vmatmul.mubr.f32.gmra.mxu0 %v2095_v14  ;;  %v1208_v14 = vld [vmem:[%s2330_s5 + $0x40] sm:$0xff] }
 0x51b   : > { %1168 = vmatprep.mubr.f32.mxu0 %v1756_v1  ;;  %1534 = vmatpush3.msra.mxu1 %v1208_v14 }
 0x51c   : > { %1535 = vmatprep.subr.mxu1 %v1223_v15 }
 0x51d   : > { %1536 = vmatpush3.msra.mxu1 %v1207_v16 }
 0x51e   : > { %1537 = vmatprep.subr.mxu1 %v1222_v17 }
 0x51f   : > { %1538 = vmatpush3.msra.mxu1 %v1206_v18 }
 0x520   : > { %1539 = vmatprep.subr.mxu1 %v1221_v19 }
 0x521   : > { %1540 = vmatpush3.msra.mxu1 %v1205_v20 }
 0x522   : > { %1541 = vmatprep.subr.mxu1 %v1220_v21 }
 0x523   : > { %1542 = vmatpush3.msra.mxu1 %v1204_v22 }
 0x524   : > { %1543 = vmatprep.subr.mxu1 %v1219_v23 }
 0x525   : > { %1544 = vmatpush3.msra.mxu1 %v1203_v24 }
 0x526   : > { %1545 = vmatprep.subr.mxu1 %v1218_v28 }
 0x527   : > { %1546 = vmatpush3.msra.mxu1 %v1202_v29 }
 0x528   : > { %1547 = vmatprep.subr.mxu1 %v1217_v30 }
 0x529   : > { %1548 = vmatpush3.msra.mxu1 %v1201_v31 }
 0x52a   : > { %1549 = vmatprep.subr.mxu1 %v1216_v32 }
 0x52b   : > { %1550 = vmatpush3.msra.mxu1 %v1200_v33 }
 0x5b2   : > { %v964_v49 = vpop.f32.mrf.mxu0 }
 0x5b3   : > { %v969_v50 = vsel %vm968_vm3, %v964_v49, -inf }
 0x5b4   : > { %970 = vmax.xlane.f32.xlu0 %v969_v50  ;;  %v1730_v51 = vpop.f32.mrf.mxu0 }
 0x5d2   : > { %v1078_v52 = vpop.f32.mrf.mxu0 }
 0x5d4   : > { %v1080_v53 = vpop.f32.mrf.mxu0 }
 0x5d6   : > { %v1084_v54 = vpop.f32.mrf.mxu0 }
 0x5d8   : > { %v1086_v55 = vpop.f32.mrf.mxu0 }
 0x5da   : > { %v1090_v56 = vpop.f32.mrf.mxu0 }
 0x5dc   : > { %v1092_v57 = vpop.f32.mrf.mxu0 }
 0x5dd   : > { %1435 = vmatprep.subr.msk.mxu0 %vm360_vm1, %v1092_v57 }
 0x5de   : > { %1436 = vmatpush1.msk.msra.mxu0 %vm360_vm1, %v1090_v56 }
 0x5df   : > { %1132 = vmatprep.subr.mxu0 %v1086_v55 }
 0x5e0   : > { %1133 = vmatpush1.msra.mxu0 %v1084_v54 }
 0x5e1   : > { %1134 = vmatprep.subr.mxu0 %v1080_v53 }
 0x5e2   : > { %1135 = vmatpush1.msra.mxu0 %v1078_v52 }
 0x63d   : > { %v971_v1 = vpop.xlane.xlu0 %970 }
 0x63e   : > { %v972_v58 = vsub.f32 %v964_v49, %v971_v1 }
 0x640   : > { %v973_v59 = vmul.f32 1.442695, %v972_v58 }
 0x642   : > { %1744 = vpow2.f32 %v973_v59 }
 0x64f   : > { %v1745_v60 = vpop.eup %1744 }
 0x650   : > { %v975_v61 = vsel %vm968_vm3, %v1745_v60, 0.0 }
 0x651   : > { %976 = vadd.xlane.f32.xlu0 %v975_v61 }
 0x6da   : > { %v977_v25 = vpop.xlane.xlu0 %976 }
 0x6db   : > { %1746 = vrcp.f32 %v977_v25 }
 0x6e8   : > { %v1747_v26 = vpop.eup %1746 }
 0x6e9   : > { %v979_v27 = vmul.f32 %v1747_v26, %v1745_v60 }
 0x6eb   : > { %1437 = vmatmul.mubr.msk.f32.vlgmr.msra.gmra.mxu0 %vm466_vm2, %v979_v27 }
 0x7ab   : > { %v1170_v39 = vpop.f32.mrf.mxu0 }
 0x7ac   : > { %v1175_v41 = vmax.f32 %v1170_v39, 0.0 }
 0x7ad   : > { %v1172_v40 = vpop.f32.mrf.mxu0 }
 0x7ae   : > { %v1176_v42 = vmax.f32 %v1172_v40, 0.0 }
 0x7b0   : > { %v1179_v44 = vcombine.low %v1175_v41, %v1176_v42  ;;  %1297 = vmatprep.mubr.f32.mxu1 %v1176_v42 }
 0x7b1   : > { %1298 = vmatmul.mubr.f32.vlgmr.msra.gmra.mxu1 %v1175_v41 }
 0x7b2   : > { %v1186_v45 = vrot.slane %v1179_v44, %v1185_v43 }
 0x7b4   : > { %v1193_v46 = vrot.slane %v1186_v45, %v1185_v43 }
 0x7b6   : > { %1199 = vst.msk [vmem:[%s348_s19] sm:$0x3] %vm1197_vm4, %v1193_v46 }
 0x871   : > { %v1551_v47 = vpop.f32.mrf.mxu1 }
 0x873   : > { %v1552_v49 = vpop.f32.mrf.mxu1 }
 0x874   : > { %v1553_v50 = vadd.f32 %v1552_v49, %v1551_v47 }
 0x876   : > { %v1300_v51 = vadd.f32 %v1553_v50, %v1232_v48 }
 0x878   : > { %1303 = vst.msk [vmem:[%s351_s24] sm:$0x1] %vm968_vm3, %v1300_v51 }
 0x879 PF: > { %s20_s30 = sadd.s32 1, %s1754_s30  }
 0x87a   : > { %p17_p4 = scmp.ge.s32.totalorder %s20_s30, 4  }
 0x87c   :  { %19 = sbr.rel (!%p17_p4) target bundleno = 1 (0x1), region = 102 }

// kernel: graphonomy_forward.4
= control target key start
LH: loop header
LB: loop body
LE: loop exit
PB: predicated region body
PF: predicated region fallthrough
CT: control target
= control target key end

     0   :  { %s3140_s21 = smov 0   ;;  %s3142_s22 = smov 0   ;;  %s4545_s0 = inlined_call_operand.vmem [shape: f32[2,3,512], index: 0, kind: input, shape index: {}]   ;;  %s4546_s1 = inlined_call_operand.vmem [shape: f32[256,3], index: 1, kind: input, shape index: {}]   ;;  %s4547_s2 = inlined_call_operand.vmem [shape: f32[256,1], index: 2, kind: input, shape index: {}]   ;;  %s4548_s3 = inlined_call_operand.vmem [shape: bf16[256,148], index: 3, kind: input, shape index: {}]   ;;  %s4549_s4 = inlined_call_operand.vmem [shape: f32[2,256,512], index: 4, kind: output, shape index: {0}]   ;;  %s4550_s5 = inlined_call_operand.vmem [shape: bf16[2,256,512], index: 5, kind: output, shape index: {1}]   ;;  %s4551_s6 = inlined_call_operand.vmem [shape: f32[2,2,20,128], index: 6, kind: output, shape index: {2}]  }
   0x1   :  { %s3144_s23 = smov 0   ;;  %s3146_s24 = smov 0  }
   0x2   :  { %s3148_s25 = smov 0   ;;  %s3150_s26 = smov 0  }
   0x3   :  { %s3152_s27 = smov 0   ;;  %s3154_s28 = smov 0  }
   0x4   :  { %s3156_s29 = smov 0  }
   0x5 LB: > { %4566 = sst [smem:[#allocation5_spill]] %s3071_s22  ;;  %s29_s30 = sadd.s32 1, %s3087_s26  ;;  %s3099_s29 = sphi %s3156_s29, %s17_s29   ;;  %s3095_s28 = sphi %s3154_s28, %s4601_s28   ;;  %s3091_s27 = sphi %s3152_s27, %s4600_s27   ;;  %s3087_s26 = sphi %s3150_s26, %s4599_s26   ;;  %s3083_s25 = sphi %s3148_s25, %s4598_s25   ;;  %s3079_s24 = sphi %s3146_s24, %s4597_s24   ;;  %s3075_s23 = sphi %s3144_s23, %s4596_s23   ;;  %s3071_s22 = sphi %s3142_s22, %s4595_s22   ;;  %s3067_s21 = sphi %s3140_s21, %s4594_s21  }
   0x6   : > { %4567 = sst [smem:[#allocation6_spill]] %s3087_s26  ;;  %p30_p0 = scmp.ge.s32.totalorder %s29_s30, 2 }
   0x7   : > { %4568 = sst [smem:[#allocation7_spill]] %s3091_s27  ;;  %s32_s7 = sadd.s32 1, %s3091_s27 }
   0x8   : > { %4569 = sst [smem:[#allocation8_spill]] %s3095_s28  ;;  %s2536_s8 = sadd.s32 4294967295, %s3099_s29  }
   0x9   : > { %4570 = sst [smem:[#allocation9_spill]] %s3099_s29  ;;  %s2540_s9 = sshll.u32 %s3091_s27, 1 }
   0xa   : > { %s4603_s30 = smov (%p30_p0, %s29_s30), 0  ;;  %s4605_s7 = smov (!%p30_p0, %s32_s7), %s3091_s27 }
   0xb   : > { %4571 = sst [smem:[#allocation10_spill]] %s4603_s30  ;;  %s36_s10 = sadd.s32 1, %s3095_s28 }
   0xc   : > { %s136_s11 = sadd.s32 %s3087_s26, %s2540_s9  ;;  %p34_p1 = scmp.ge.s32.totalorder %s4605_s7, 2 }
   0xd   : > { %p154_p2 = scmp.ne.s32.totalorder %s3071_s22, %s3067_s21  ;;  %p155_p3 = scmp.eq.s32.totalorder %s2536_s8, 7 }
   0xe   : > { %p2546_p4 = scmp.ge.s32.totalorder %s3099_s29, 1  ;;  %s4607_s7 = smov (%p34_p1, %s4605_s7), 0 }
   0xf   : > { %4572 = sst [smem:[#allocation11_spill]] %s4607_s7  ;;  %s4609_s10 = smov (!%p34_p1, %s36_s10), %s3095_s28 }
  0x10   : > { %s2541_s12 = sshll.u32 %s4607_s7, 1  ;;  %p3201_p5 = por %p155_p3, %p154_p2 }
  0x11   : > { %p38_p6 = scmp.ge.s32.totalorder %s4609_s10, 2  ;;  %s138_s14 = sadd.s32 %s2541_s12, %s4603_s30 }
  0x12   : > { %s140_s15 = ssub.s32 %s136_s11, %s138_s14  ;;  %p263_p7 = scmp.lt.s32.totalorder %s3099_s29, 9 }
  0x13   : > { %s4611_s10 = smov (%p38_p6, %s4609_s10), 0  ;;  %s144_s18 = sadd.s32 1, %s3071_s22 }
  0x14   : > { %4574 = sst [smem:[#allocation12_spill]] %s4611_s10  ;;  %p264_p8 = pnand %p2546_p4, %p263_p7 }
  0x15   : > { %s139_s16 = ssub.s32 %s3095_s28, %s4611_s10 }
  0x16   : > { %s141_s17 = sor.u32 %s140_s15, %s139_s16 }
  0x17   : > { %p142_p9 = scmp.eq.s32.totalorder %s141_s17, 0  ;;  %267 = sbr.rel (%p264_p8) target bundleno = 1514 (0x5ea), region = 36 }
  0x19   : > { %s3213_s19 = scalar_select %p142_p9, %s3071_s22, %s144_s18  }
  0x1b   : > { %4575 = sst [smem:[#allocation13_spill]] %s3213_s19 }
  0x1c   : > { %s290_s20 = sand.u32 1, %s3067_s21   ;;  %s2549_s8 = sshll.u32 %s3079_s24, 1 }
  0x1d   : > { %s2547_s9 = sshll.u32 %s290_s20, 8  ;;  %s2548_s11 = sshll.u32 %s290_s20, 7 }
  0x1e   : > { %s3218_s12 = sadd.s32 %s3075_s23, %s2549_s8  ;;  %p312_p10 = scmp.lt.s32.totalorder %s3083_s25, 1 }
  0x1f   : > { %p314_p11 = scmp.lt.s32.totalorder %s3218_s12, 3  ;;  %p328_p12 = scmp.lt.s32.totalorder %s3079_s24, 1 }
  0x20   : > { %s313_s14 = scalar_select %p312_p10, %s3083_s25, 1 }
  0x21   : > { %s315_s15 = scalar_select %p314_p11, %s3218_s12, 3 }
  0x22   : > { %s2550_s16 = sshll.u32 %s313_s14, 2  ;;  %s2787_s21 = smul.u32 6, %s313_s14 }
  0x23   : > { %s317_s17 = sadd.s32 %s2550_s16, %s315_s15  ;;  %s4613_s24 = smov (!%p328_p12, %s3079_s24), 1 }
  0x24   : > { %s2551_s18 = sshll.u32 %s317_s17, 2  ;;  %s2786_s20 = smul.u32 3, %s4613_s24 }
  0x25   : > { %s3228_s30 = scalar_lea.vmem %s4545_s0, %s2551_s18  ;;  %s3236_s22 = scalar_lea.vmem [#allocation3], %s2547_s9 }
  0x26   : > { %s332_s8 = sadd.s32 %s2787_s21, %s2786_s20  ;;  %s3238_s29 = scalar_lea.vmem [#allocation4], %s2548_s11 }
  0x27   : > { %s2552_s28 = sshll.u32 %s332_s8, 3  ;;  %p2553_p13 = scmp.ne.s32.totalorder %s3075_s23, 0 }
  0x28   : > { %s3234_s19 = scalar_lea.vmem %s4551_s6, %s2552_s28 }
  0x29   : > { %339 = sbr.rel (%p2553_p13) target bundleno = 49 (0x31), region = 40 }
  0x2e   : > { %v3101_v0 = vmov 0.0  }
  0x2f   : > { %340 = vst [vmem:[#allocation2 + $0x10] sm:$0xff] %v3101_v0  ;;  %341 = vst [vmem:[#allocation2] sm:$0xff] %v3101_v0 }
  0x30   : > { %342 = vst [vmem:[#allocation2 + $0x8] sm:$0xf] %v3101_v0 }
  0x31 PF: > { %v3244_v1 = vld [vmem:[%s4546_s1 + $0x80] sm:$0xff]  ;;  %v4564_v3 = vmov 1   ;;  %v3258_v4 = vld [vmem:[%s4546_s1 + $0x88] sm:$0xff]  ;;  %v3263_v5 = vld [vmem:[%s4546_s1 + $0x30] sm:$0xff]  ;;  %v4560_v8 = vmov 0   ;;  %v4562_v17 = vmov 2  }
  0x32   : > { %v3249_v2 = vld [vmem:[%s4546_s1] sm:$0xff]  ;;  %2866 = vset.pattern.permute.xlu0 %v4564_v3  ;;  %2864 = vset.pattern.permute.xlu1 %v4564_v3  ;;  %v3270_v6 = vld [vmem:[%s4546_s1 + $0xc8] sm:$0xff]  ;;  %v3286_v10 = vld [vmem:[%s4546_s1 + $0xd8] sm:$0xff]  ;;  %vm1749_vm0 = vcmask 162816   ;;  %p2618_p0 = scmp.ne.s32.totalorder %s3075_s23, 1 }
  0x33   : > { %637 = vperm.xlu1 %2864, %v3244_v1   ;;  %573 = vperm.xlu0 %2866, %v3249_v2   ;;  %v345_v7 = vld [vmem:[%s4546_s1 + $0x8] sm:$0xff]  ;;  %v362_v11 = vld [vmem:[%s4546_s1 + $0x90] sm:$0xff]  ;;  %v3296_v12 = vld [vmem:[%s4546_s1 + $0x58] sm:$0xff] }
  0x34   : > { %v3280_v9 = vld [vmem:[%s4546_s1 + $0x48] sm:$0xff]  ;;  %v363_v14 = vld [vmem:[%s4546_s1 + $0x98] sm:$0xff]  ;;  %v346_v19 = vld [vmem:[%s4546_s1 + $0x10] sm:$0xff] }
  0x35   : > { %v3303_v13 = vld [vmem:[%s4546_s1 + $0xe8] sm:$0xff]  ;;  %v3319_v16 = vld [vmem:[%s4546_s1 + $0xf8] sm:$0xff]  ;;  %v364_v21 = vld [vmem:[%s4546_s1 + $0xa0] sm:$0xff] }
  0x36   : > { %v3313_v15 = vld [vmem:[%s4546_s1 + $0x68] sm:$0xff]  ;;  %v3327_v18 = vld [vmem:[%s4546_s1 + $0x78] sm:$0xff]  ;;  %v3357_v24 = vld [vmem:[%s4546_s1 + $0x70] sm:$0xff] }
  0x37   : > { %641 = vperm.xlu1 %2864, %v3258_v4   ;;  %597 = vperm.xlu0 %2866, %v3263_v5   ;;  %v347_v20 = vld [vmem:[%s4546_s1 + $0x18] sm:$0xff]  ;;  %v349_v22 = vld [vmem:[%s4546_s1 + $0x28] sm:$0xff]  ;;  %v348_v25 = vld [vmem:[%s4546_s1 + $0x20] sm:$0xff] }
  0x38   : > { %v365_v23 = vld [vmem:[%s4546_s1 + $0xa8] sm:$0xff]  ;;  %v3374_v26 = vld [vmem:[%s4546_s1 + $0xb0] sm:$0xff]  ;;  %v3382_v27 = vld [vmem:[%s4546_s1 + $0xb8] sm:$0xff] }
  0x39   : > { %v981_v28 = vld [vmem:[%s4547_s2 + $0x88] sm:$0xff]  ;;  %v3393_v29 = vld [vmem:[%s4546_s1 + $0xc0] sm:$0xff]  ;;  %v982_v31 = vld [vmem:[%s4547_s2 + $0x90] sm:$0xff] }
  0x3a   : > { %v980_v30 = vld [vmem:[%s4547_s2 + $0x80] sm:$0xff]  ;;  %v3409_v32 = vld [vmem:[%s4546_s1 + $0x38] sm:$0xff]  ;;  %v966_v33 = vld [vmem:[%s4547_s2 + $0x10] sm:$0xff] }
  0x3b   : > { %2865 = vset.pattern.permute.xlu1 %v4560_v8  ;;  %673 = vperm.xlu0 %2866, %v3270_v6   ;;  %v984_v38 = vld [vmem:[%s4547_s2 + $0xa0] sm:$0xff]  ;;  %v965_v45 = vld [vmem:[%s4547_s2 + $0x8] sm:$0xff]  ;;  %v986_v49 = vld [vmem:[%s4547_s2 + $0xb0] sm:$0xff] }
  0x3c   : > { %383 = vperm.xlu1 %2865, %v345_v7   ;;  %v964_v41 = vld [vmem:[%s4547_s2] sm:$0xff]  ;;  %v970_v54 = vld [vmem:[%s4547_s2 + $0x30] sm:$0xff]  ;;  %v983_v60 = vld [vmem:[%s4547_s2 + $0x98] sm:$0xff] }
  0x3d   : > { %v968_v43 = vld [vmem:[%s4547_s2 + $0x20] sm:$0xff] }
  0x3e   : > { %v988_v58 = vld [vmem:[%s4547_s2 + $0xc0] sm:$0xff] }
  0x3f   : > { %609 = vperm.xlu0 %2866, %v3280_v9   ;;  %v3498_v62 = vld [vmem:[%s4546_s1 + $0x40] sm:$0xff] }
  0x40   : > { %2867 = vset.pattern.permute.xlu1 %v4564_v3  ;;  %v972_v0 = vld [vmem:[%s4547_s2 + $0x40] sm:$0xff] }
  0x41   : > { %577 = vperm.xlu1 %2867, %v345_v7  }
  0x43   : > { %681 = vperm.xlu0 %2866, %v3286_v10  }
  0x45   : > { %2868 = vset.pattern.permute.xlu1 %v4560_v8 }
  0x46   : > { %468 = vperm.xlu1 %2868, %v362_v11  }
  0x47   : > { %617 = vperm.xlu0 %2866, %v3296_v12  }
  0x4a   : > { %2869 = vset.pattern.permute.xlu1 %v4564_v3 }
  0x4b   : > { %645 = vperm.xlu1 %2869, %v362_v11   ;;  %689 = vperm.xlu0 %2866, %v3303_v13  }
  0x4f   : > { %649 = vperm.xlu1 %2869, %v363_v14   ;;  %625 = vperm.xlu0 %2866, %v3313_v15  }
  0x53   : > { %2870 = vset.pattern.permute.xlu1 %v4562_v17  ;;  %697 = vperm.xlu0 %2866, %v3319_v16  }
  0x54   : > { %837 = vperm.xlu1 %2870, %v3258_v4  }
  0x57   : > { %633 = vperm.xlu0 %2866, %v3327_v18  }
  0x58   : > { %2871 = vset.pattern.permute.xlu1 %v4560_v8 }
  0x59   : > { %388 = vperm.xlu1 %2871, %v346_v19  }
  0x5b   : > { %2909 = vset.pattern.permute.xlu0 %v4562_v17 }
  0x5c   : > { %833 = vperm.xlu0 %2909, %v3244_v1  }
  0x5d   : > { %2872 = vset.pattern.permute.xlu1 %v4564_v3 }
  0x5e   : > { %581 = vperm.xlu1 %2872, %v346_v19  }
  0x60   : > { %769 = vperm.xlu0 %2909, %v3249_v2  }
  0x62   : > { %585 = vperm.xlu1 %2872, %v347_v20  }
  0x64   : > { %841 = vperm.xlu0 %2909, %v362_v11  }
  0x66   : > { %2873 = vset.pattern.permute.xlu1 %v4562_v17 }
  0x67   : > { %773 = vperm.xlu1 %2873, %v345_v7  }
  0x68   : > { %777 = vperm.xlu0 %2909, %v346_v19   ;;  %v977_v19 = vld [vmem:[%s4547_s2 + $0x68] sm:$0xff] }
  0x6b   : > { %2874 = vset.pattern.permute.xlu1 %v4560_v8 }
  0x6c   : > { %478 = vperm.xlu1 %2874, %v364_v21   ;;  %849 = vperm.xlu0 %2909, %v364_v21  }
  0x70   : > { %2875 = vset.pattern.permute.xlu1 %v4564_v3  ;;  %789 = vperm.xlu0 %2909, %v349_v22  }
  0x71   : > { %653 = vperm.xlu1 %2875, %v364_v21  }
  0x74   : > { %893 = vperm.xlu0 %2909, %v3319_v16  }
  0x75   : > { %657 = vperm.xlu1 %2875, %v365_v23  }
  0x78   : > { %825 = vperm.xlu0 %2909, %v3357_v24  }
  0x79   : > { %2876 = vset.pattern.permute.xlu1 %v4562_v17 }
  0x7a   : > { %845 = vperm.xlu1 %2876, %v363_v14  }
  0x7c   : > { %2914 = vset.pattern.permute.xlu0 %v4560_v8 }
  0x7d   : > { %458 = vperm.xlu0 %2914, %v3244_v1  }
  0x7e   : > { %2877 = vset.pattern.permute.xlu1 %v4560_v8 }
  0x7f   : > { %398 = vperm.xlu1 %2877, %v348_v25  }
  0x81   : > { %463 = vperm.xlu0 %2914, %v3258_v4   ;;  %v974_v4 = vld [vmem:[%s4547_s2 + $0x50] sm:$0xff] }
  0x83   : > { %2878 = vset.pattern.permute.xlu1 %v4564_v3 }
  0x84   : > { %589 = vperm.xlu1 %2878, %v348_v25  }
  0x85   : > { %378 = vperm.xlu0 %2914, %v3249_v2  }
  0x88   : > { %593 = vperm.xlu1 %2878, %v349_v22  }
  0x89   : > { %473 = vperm.xlu0 %2914, %v363_v14   ;;  %v993_v14 = vld [vmem:[%s4547_s2 + $0xe8] sm:$0xff] }
  0x8c   : > { %2879 = vset.pattern.permute.xlu1 %v4562_v17 }
  0x8d   : > { %781 = vperm.xlu1 %2879, %v347_v20   ;;  %393 = vperm.xlu0 %2914, %v347_v20  }
  0x91   : > { %2880 = vset.pattern.permute.xlu1 %v4560_v8  ;;  %483 = vperm.xlu0 %2914, %v365_v23  }
  0x92   : > { %488 = vperm.xlu1 %2880, %v3374_v26  }
  0x95   : > { %403 = vperm.xlu0 %2914, %v349_v22   ;;  %v995_v22 = vld [vmem:[%s4547_s2 + $0xf8] sm:$0xff] }
  0x96   : > { %2881 = vset.pattern.permute.xlu1 %v4564_v3 }
  0x97   : > { %661 = vperm.xlu1 %2881, %v3374_v26  }
  0x99   : > { %493 = vperm.xlu0 %2914, %v3382_v27  }
  0x9b   : > { %665 = vperm.xlu1 %2881, %v3382_v27  }
  0x9d   : > { %1083 = vperm.xlu0 %2914, %v981_v28   ;;  %v3554_v28 = vld [vmem:[%s4546_s1 + $0xd0] sm:$0xff] }
  0x9f   : > { %2882 = vset.pattern.permute.xlu1 %v4562_v17 }
  0xa0   : > { %853 = vperm.xlu1 %2882, %v365_v23  }
  0xa1   : > { %498 = vperm.xlu0 %2914, %v3393_v29  }
  0xa4   : > { %2883 = vset.pattern.permute.xlu1 %v4560_v8 }
  0xa5   : > { %1078 = vperm.xlu1 %2883, %v980_v30   ;;  %1088 = vperm.xlu0 %2914, %v982_v31  }
  0xa9   : > { %408 = vperm.xlu1 %2883, %v3263_v5   ;;  %423 = vperm.xlu0 %2914, %v3280_v9  }
  0xad   : > { %413 = vperm.xlu1 %2883, %v3409_v32   ;;  %1008 = vperm.xlu0 %2914, %v966_v33  }
  0xae   : > { %v3415_v34 = vpop.permute.xlu1 %637  ;;  %v3417_v35 = vpop.permute.xlu0 %573 }
  0xb1   : > { %2884 = vset.pattern.permute.xlu1 %v4564_v3  ;;  %513 = vperm.xlu0 %2914, %v3286_v10  }
  0xb2   : > { %v3421_v36 = vpop.permute.xlu1 %641  ;;  %601 = vperm.xlu1 %2884, %v3409_v32   ;;  %v3424_v37 = vpop.permute.xlu0 %597 }
  0xb5   : > { %1098 = vperm.xlu0 %2914, %v984_v38  }
  0xb6   : > { %2885 = vset.pattern.permute.xlu1 %v4562_v17  ;;  %v3430_v39 = vpop.permute.xlu0 %673 }
  0xb7   : > { %785 = vperm.xlu1 %2885, %v348_v25   ;;  %v3432_v40 = vpop.permute.xlu1 %383 }
  0xb9   : > { %433 = vperm.xlu0 %2914, %v3296_v12  }
  0xba   : > { %v3438_v42 = vpop.permute.xlu0 %609 }
  0xbb   : > { %2886 = vset.pattern.permute.xlu1 %v4560_v8 }
  0xbc   : > { %998 = vperm.xlu1 %2886, %v964_v41   ;;  %v3444_v44 = vpop.permute.xlu1 %577 }
  0xbd   : > { %1018 = vperm.xlu0 %2914, %v968_v43  }
  0xbe   : > { %v3449_v46 = vpop.permute.xlu0 %681 }
  0xc0   : > { %1003 = vperm.xlu1 %2886, %v965_v45  }
  0xc1   : > { %v3451_v47 = vpop.permute.xlu1 %468  ;;  %523 = vperm.xlu0 %2914, %v3303_v13  }
  0xc2   : > { %v3454_v48 = vpop.permute.xlu0 %617 }
  0xc4   : > { %503 = vperm.xlu1 %2886, %v3270_v6  }
  0xc5   : > { %1108 = vperm.xlu0 %2914, %v986_v49   ;;  %v985_v49 = vld [vmem:[%s4547_s2 + $0xa8] sm:$0xff] }
  0xc6   : > { %v3460_v50 = vpop.permute.xlu1 %645  ;;  %v3462_v51 = vpop.permute.xlu0 %689 }
  0xc7   : > { %4576 = vst [vmem:[#allocation14_spill] sm:$0xff] %v3462_v51 }
  0xc8   : > { %2887 = vset.pattern.permute.xlu1 %v4564_v3 }
  0xc9   : > { %669 = vperm.xlu1 %2887, %v3393_v29   ;;  %443 = vperm.xlu0 %2914, %v3313_v15  }
  0xca   : > { %v3467_v52 = vpop.permute.xlu1 %649  ;;  %v3469_v53 = vpop.permute.xlu0 %625 }
  0xcb   : > { %4577 = vst [vmem:[#allocation15_spill] sm:$0xff] %v3469_v53 }
  0xcd   : > { %2888 = vset.pattern.permute.xlu1 %v4562_v17  ;;  %1028 = vperm.xlu0 %2914, %v970_v54   ;;  %v536_v54 = vlaneseq }
  0xce   : > { %857 = vperm.xlu1 %2888, %v3374_v26   ;;  %v3476_v55 = vpop.permute.xlu0 %697  ;;  %v979_v26 = vld [vmem:[%s4547_s2 + $0x78] sm:$0xff] }
  0xcf   : > { %v3478_v56 = vpop.permute.xlu1 %837 }
  0xd1   : > { %533 = vperm.xlu0 %2914, %v3319_v16  }
  0xd2   : > { %861 = vperm.xlu1 %2888, %v3382_v27   ;;  %v3482_v57 = vpop.permute.xlu0 %633 }
  0xd3   : > { %4578 = vst [vmem:[#allocation16_spill] sm:$0xff] %v3482_v57 }
  0xd4   : > { %v3487_v59 = vpop.permute.xlu1 %388 }
  0xd5   : > { %1118 = vperm.xlu0 %2914, %v988_v58  }
  0xd6   : > { %2889 = vset.pattern.permute.xlu1 %v4560_v8 }
  0xd7   : > { %1093 = vperm.xlu1 %2889, %v983_v60   ;;  %v3493_v61 = vpop.permute.xlu0 %833 }
  0xd9   : > { %v3500_v63 = vpop.permute.xlu1 %581  ;;  %453 = vperm.xlu0 %2914, %v3327_v18  }
  0xdb   : > { %418 = vperm.xlu1 %2889, %v3498_v62   ;;  %v3507_v1 = vpop.permute.xlu0 %769 }
  0xdd   : > { %v3509_v2 = vpop.permute.xlu1 %585  ;;  %1038 = vperm.xlu0 %2914, %v972_v0  }
  0xdf   : > { %2890 = vset.pattern.permute.xlu1 %v4564_v3  ;;  %v3515_v7 = vpop.permute.xlu0 %841 }
  0xe0   : > { %605 = vperm.xlu1 %2890, %v3498_v62  }
  0xe1   : > { %1048 = vperm.xlu0 %2914, %v974_v4  }
  0xe2   : > { %v3518_v11 = vpop.permute.xlu1 %773 }
  0xe3   : > { %v3523_v16 = vpop.permute.xlu0 %777 }
  0xe4   : > { %2891 = vset.pattern.permute.xlu1 %v4562_v17 }
  0xe5   : > { %793 = vperm.xlu1 %2891, %v3263_v5   ;;  %1143 = vperm.xlu0 %2914, %v993_v14   ;;  %v967_v5 = vld [vmem:[%s4547_s2 + $0x18] sm:$0xff] }
  0xe7   : > { %v3530_v20 = vpop.permute.xlu1 %478  ;;  %v3532_v21 = vpop.permute.xlu0 %849 }
  0xe9   : > { %797 = vperm.xlu1 %2891, %v3409_v32   ;;  %1063 = vperm.xlu0 %2914, %v977_v19  }
  0xeb   : > { %v3538_v23 = vpop.permute.xlu0 %789 }
  0xec   : > { %4579 = vst [vmem:[#allocation17_spill] sm:$0xff] %v3538_v23  ;;  %v3543_v25 = vpop.permute.xlu1 %653 }
  0xed   : > { %2892 = vset.pattern.permute.xlu1 %v4560_v8  ;;  %1153 = vperm.xlu0 %2914, %v995_v22   ;;  %v343_v22 = vld [vmem:[%s3228_s30] sm:$0x7] }
  0xee   : > { %1013 = vperm.xlu1 %2892, %v967_v5  }
  0xef   : > { %v3549_v27 = vpop.permute.xlu0 %893 }
  0xf0   : > { %v3556_v30 = vpop.permute.xlu1 %657 }
  0xf1   : > { %1073 = vperm.xlu0 %2914, %v979_v26  }
  0xf2   : > { %508 = vperm.xlu1 %2892, %v3554_v28  }
  0xf3   : > { %v3559_v31 = vpop.permute.xlu0 %825 }
  0xf4   : > { %4580 = vst [vmem:[#allocation18_spill] sm:$0xff] %v3559_v31 }
  0xf5   : > { %v3561_v32 = vpop.permute.xlu1 %845 }
  0xf6   : > { %2893 = vset.pattern.permute.xlu1 %v4564_v3 }
  0xf7   : > { %677 = vperm.xlu1 %2893, %v3554_v28  }
  0xf8   : > { %v459_v33 = vpop.permute.xlu0 %458 }
  0xfa   : > { %v3565_v38 = vpop.permute.xlu1 %398 }
  0xfb   : > { %2894 = vset.pattern.permute.xlu1 %v4562_v17 }
  0xfc   : > { %865 = vperm.xlu1 %2894, %v3393_v29   ;;  %v464_v41 = vpop.permute.xlu0 %463  ;;  %v3585_v29 = vld [vmem:[%s4546_s1 + $0x50] sm:$0xff] }
  0xff   : > { %v3569_v43 = vpop.permute.xlu1 %589 }
 0x100   : > { %869 = vperm.xlu1 %2894, %v3270_v6   ;;  %v3572_v45 = vpop.permute.xlu0 %378  ;;  %v537_v6 = vshrl.u32 %v536_v54, 7 }
 0x102   : > { %v538_v14 = vsub.s32 0, %v537_v6  ;;  %v702_v19 = vsub.s32 1, %v537_v6 }
 0x103   : > { %v3577_v58 = vpop.permute.xlu1 %593 }
 0x104   : > { %4581 = vst [vmem:[#allocation19_spill] sm:$0xff] %v3577_v58  ;;  %2895 = vset.pattern.permute.xlu1 %v4560_v8  ;;  %v3580_v60 = vpop.permute.xlu0 %473  ;;  %v3595_v26 = vrot.slane %v343_v22, %v538_v14  ;;  %v3601_v54 = vrot.slane %v343_v22, %v702_v19  ;;  %v4583_v14 = vmov 2  }
 0x105   : > { %1103 = vperm.xlu1 %2895, %v985_v49   ;;  %v898_v49 = vsub.s32 2, %v537_v6 }
 0x106   : > { %v557_v17 = vmul.f32 %v3595_v26, %v464_v41  ;;  %v721_v57 = vmul.f32 %v3601_v54, %v3421_v36  ;;  %v556_v23 = vmul.f32 %v3595_v26, %v459_v33 }
 0x107   : > { %v3608_v53 = vrot.slane %v343_v22, %v898_v49  ;;  %v720_v49 = vmul.f32 %v3601_v54, %v3415_v34  ;;  %v4584_v34 = vmov 0  }
 0x108   : > { %v3587_v0 = vpop.permute.xlu1 %781  ;;  %v3589_v4 = vpop.permute.xlu0 %393 }
 0x109   : > { %428 = vperm.xlu1 %2895, %v3585_v29   ;;  %v917_v19 = vmul.f32 %v3608_v53, %v3478_v56  ;;  %v969_v56 = vld [vmem:[%s4547_s2 + $0x28] sm:$0xff]  ;;  %v752_v33 = vadd.f32 %v720_v49, %v556_v23  ;;  %v706_v49 = vmul.f32 %v3601_v54, %v3500_v63 }
 0x10c   : > { %v3593_v5 = vpop.permute.xlu0 %483 }
 0x10d   : > { %2896 = vset.pattern.permute.xlu1 %v4564_v3  ;;  %v3598_v8 = vpop.permute.xlu1 %488  ;;  %v753_v3 = vadd.f32 %v721_v57, %v557_v17  ;;  %v722_v17 = vmul.f32 %v3601_v54, %v3460_v50 }
 0x10e   : > { %613 = vperm.xlu1 %2896, %v3585_v29  }
 0x10f   : > { %v949_v36 = vadd.f32 %v917_v19, %v753_v3  ;;  %v918_v3 = vmul.f32 %v3608_v53, %v3515_v7 }
 0x110   : > { %v3604_v31 = vpop.permute.xlu0 %403 }
 0x111   : > { %4582 = vst [vmem:[#allocation20_spill] sm:$0xff] %v3604_v31 }
 0x112   : > { %2897 = vset.pattern.permute.xlu1 %v4583_v14  ;;  %v3611_v6 = vpop.permute.xlu1 %661 }
 0x113   : > { %801 = vperm.xlu1 %2897, %v3498_v62   ;;  %v558_v62 = vmul.f32 %v3595_v26, %v3451_v47  ;;  %v3644_v47 = vld [vmem:[%s4546_s1 + $0xe0] sm:$0xff] }
 0x114   : > { %v3614_v51 = vpop.permute.xlu0 %493 }
 0x116   : > { %v3618_v41 = vpop.permute.xlu1 %665 }
 0x117   : > { %805 = vperm.xlu1 %2897, %v3280_v9   ;;  %v916_v9 = vmul.f32 %v3608_v53, %v3493_v61 }
 0x118   : > { %v1084_v22 = vpop.permute.xlu0 %1083 }
 0x119   : > { %v1173_v57 = vadd.f32 %v1084_v22, %v949_v36  ;;  %v754_v36 = vadd.f32 %v722_v17, %v558_v62  ;;  %v948_v61 = vadd.f32 %v916_v9, %v752_v33  ;;  %v713_v17 = vmul.f32 %v3601_v54, %v3438_v42 }
 0x11a   : > { %v542_v62 = vmul.f32 %v3595_v26, %v3487_v59  ;;  %v902_v9 = vmul.f32 %v3608_v53, %v3523_v16  ;;  %v724_v59 = vmul.f32 %v3601_v54, %v3543_v25  ;;  %v731_v25 = vmul.f32 %v3601_v54, %v3449_v46 }
 0x11b   : > { %v1205_v19 = vmax.f32 %v1173_v57, 0.0  ;;  %2898 = vset.pattern.permute.xlu1 %v4584_v34  ;;  %v3636_v58 = vpop.permute.xlu1 %853  ;;  %v950_v22 = vadd.f32 %v918_v3, %v754_v36  ;;  %v4585_v36 = vmov 1  }
 0x11c   : > { %1023 = vperm.xlu1 %2898, %v969_v56   ;;  %v3638_v50 = vpop.permute.xlu0 %498 }
 0x11d   : > { %1237 = vst [vmem:[%s3236_s22 + $0x88] sm:$0xff] %v1205_v19 }
 0x120   : > { %518 = vperm.xlu1 %2898, %v3644_v47   ;;  %v1079_v7 = vpop.permute.xlu1 %1078  ;;  %v1089_v23 = vpop.permute.xlu0 %1088 }
 0x121   : > { %v1172_v57 = vadd.f32 %v1079_v7, %v948_v61  ;;  %v3649_v56 = vadd.f32 %v1089_v23, %v950_v22  ;;  %v738_v61 = vadd.f32 %v706_v49, %v542_v62  ;;  %v560_v49 = vmul.f32 %v3595_v26, %v3530_v20 }
 0x122   : > { %v540_v20 = vmul.f32 %v3595_v26, %v3572_v45  ;;  %v987_v45 = vld [vmem:[%s4547_s2 + $0xb8] sm:$0xff] }
 0x123   : > { %v1204_v3 = vmax.f32 %v1172_v57, 0.0  ;;  %v1206_v33 = vmax.f32 %v3649_v56, 0.0  ;;  %v934_v7 = vadd.f32 %v902_v9, %v738_v61  ;;  %v756_v62 = vadd.f32 %v724_v59, %v560_v49 }
 0x124   : > { %2899 = vset.pattern.permute.xlu1 %v4585_v36  ;;  %v3659_v31 = vpop.permute.xlu1 %408  ;;  %v424_v63 = vpop.permute.xlu0 %423  ;;  %v715_v49 = vmul.f32 %v3601_v54, %v3454_v48 }
 0x125   : > { %1236 = vst [vmem:[%s3236_s22 + $0x80] sm:$0xff] %v1204_v3  ;;  %v3662_v22 = vpack.c.bf16 %v1205_v19, %v1204_v3  ;;  %1238 = vst [vmem:[%s3236_s22 + $0x90] sm:$0xff] %v1206_v33  ;;  %v549_v42 = vmul.f32 %v3595_v26, %v424_v63  ;;  %685 = vperm.xlu1 %2899, %v3644_v47   ;;  %v704_v3 = vmul.f32 %v3601_v54, %v3417_v35 }
 0x126   : > { %v546_v56 = vmul.f32 %v3595_v26, %v3659_v31 }
 0x127   : > { %2748 = vst [vmem:[%s3238_s29 + $0x40] sm:$0xff] %v3662_v22   ;;  %v3673_v16 = vadd.f32 %v713_v17, %v549_v42  ;;  %v920_v17 = vmul.f32 %v3608_v53, %v3532_v21  ;;  %v900_v42 = vmul.f32 %v3608_v53, %v3507_v1  ;;  %v736_v35 = vadd.f32 %v704_v3, %v540_v20  ;;  %v3722_v3 = vld [vmem:[%s4546_s1 + $0x60] sm:$0xff] }
 0x128   : > { %v3675_v23 = vpop.permute.xlu1 %413  ;;  %v1009_v19 = vpop.permute.xlu0 %1008  ;;  %v544_v1 = vmul.f32 %v3595_v26, %v3565_v38  ;;  %v541_v38 = vmul.f32 %v3595_v26, %v3432_v40 }
 0x129   : > { %v3679_v57 = vadd.f32 %v1009_v19, %v934_v7  ;;  %2900 = vset.pattern.permute.xlu1 %v4583_v14  ;;  %v952_v21 = vadd.f32 %v920_v17, %v756_v62  ;;  %v708_v7 = vmul.f32 %v3601_v54, %v3569_v43  ;;  %v705_v62 = vmul.f32 %v3601_v54, %v3444_v44 }
 0x12a   : > { %873 = vperm.xlu1 %2900, %v3554_v28   ;;  %v932_v20 = vadd.f32 %v900_v42, %v736_v35  ;;  %v901_v44 = vmul.f32 %v3608_v53, %v3518_v11 }
 0x12b   : > { %v1190_v9 = vmax.f32 %v3679_v57, 0.0  ;;  %v737_v35 = vadd.f32 %v705_v62, %v541_v38  ;;  %v973_v57 = vld [vmem:[%s4547_s2 + $0x48] sm:$0xff] }
 0x12c   : > { %v514_v63 = vpop.permute.xlu0 %513 }
 0x12d   : > { %1222 = vst [vmem:[%s3236_s22 + $0x10] sm:$0xff] %v1190_v9  ;;  %v567_v28 = vmul.f32 %v3595_v26, %v514_v63  ;;  %v3696_v61 = vpop.permute.xlu1 %601  ;;  %v740_v63 = vadd.f32 %v708_v7, %v544_v1  ;;  %v933_v1 = vadd.f32 %v901_v44, %v737_v35  ;;  %v971_v35 = vld [vmem:[%s4547_s2 + $0x38] sm:$0xff] }
 0x12e   : > { %877 = vperm.xlu1 %2900, %v3286_v10  }
 0x12f   : > { %v3699_v46 = vadd.f32 %v731_v25, %v567_v28 }
 0x130   : > { %v1099_v59 = vpop.permute.xlu0 %1098 }
 0x131   : > { %v3708_v19 = vadd.f32 %v1099_v59, %v952_v21 }
 0x132   : > { %2901 = vset.pattern.permute.xlu1 %v4584_v34  ;;  %v786_v10 = vpop.permute.xlu1 %785 }
 0x133   : > { %v1208_v25 = vmax.f32 %v3708_v19, 0.0  ;;  %v904_v17 = vmul.f32 %v3608_v53, %v786_v10  ;;  %1113 = vperm.xlu1 %2901, %v987_v45   ;;  %v975_v19 = vld [vmem:[%s4547_s2 + $0x58] sm:$0xff] }
 0x134   : > { %v434_v43 = vpop.permute.xlu0 %433 }
 0x135   : > { %1240 = vst [vmem:[%s3236_s22 + $0xa0] sm:$0xff] %v1208_v25  ;;  %v551_v48 = vmul.f32 %v3595_v26, %v434_v43  ;;  %v936_v42 = vadd.f32 %v904_v17, %v740_v63  ;;  %v729_v17 = vmul.f32 %v3601_v54, %v3430_v39  ;;  %v726_v39 = vmul.f32 %v3601_v54, %v3611_v6 }
 0x136   : > { %v727_v6 = vmul.f32 %v3601_v54, %v3618_v41 }
 0x137   : > { %v3732_v28 = vadd.f32 %v715_v49, %v551_v48  ;;  %438 = vperm.xlu1 %2901, %v3722_v3   ;;  %v999_v21 = vpop.permute.xlu1 %998 }
 0x138   : > { %v1156_v59 = vadd.f32 %v999_v21, %v932_v20  ;;  %v1019_v45 = vpop.permute.xlu0 %1018 }
 0x139   : > { %v3735_v7 = vadd.f32 %v1019_v45, %v936_v42  ;;  %v559_v45 = vmul.f32 %v3595_v26, %v3580_v60  ;;  %v3780_v60 = vld [vmem:[%s4546_s1 + $0xf0] sm:$0xff] }
 0x13a   : > { %v1188_v10 = vmax.f32 %v1156_v59, 0.0 }
 0x13b   : > { %v1192_v40 = vmax.f32 %v3735_v7, 0.0  ;;  %2902 = vset.pattern.permute.xlu1 %v4585_v36  ;;  %v1004_v11 = vpop.permute.xlu1 %1003  ;;  %v2920_v7 = vld [vmem:[%s4548_s3 + $0x64] ss:$8 sps:$4 sm:$0xff]  }
 0x13c   : > { %1220 = vst [vmem:[%s3236_s22] sm:$0xff] %v1188_v10  ;;  %v1157_v49 = vadd.f32 %v1004_v11, %v933_v1  ;;  %621 = vperm.xlu1 %2902, %v3722_v3   ;;  %v3741_v43 = vpop.permute.xlu0 %523 }
 0x13d   : > { %1224 = vst [vmem:[%s3236_s22 + $0x20] sm:$0xff] %v1192_v40 }
 0x13e   : > { %v1189_v62 = vmax.f32 %v1157_v49, 0.0 }
 0x13f   : > { %v504_v20 = vpop.permute.xlu1 %503 }
 0x140   : > { %1221 = vst [vmem:[%s3236_s22 + $0x8] sm:$0xff] %v1189_v62  ;;  %v1252_v63 = vpack.c.bf16 %v1189_v62, %v1188_v10  ;;  %v565_v48 = vmul.f32 %v3595_v26, %v504_v20  ;;  %2903 = vset.pattern.permute.xlu1 %v4583_v14  ;;  %v1109_v38 = vpop.permute.xlu0 %1108 }
 0x141   : > { %809 = vperm.xlu1 %2903, %v3585_v29   ;;  %v562_v29 = vmul.f32 %v3595_v26, %v3598_v8  ;;  %v723_v8 = vmul.f32 %v3601_v54, %v3467_v52  ;;  %v919_v52 = vmul.f32 %v3608_v53, %v3561_v32 }
 0x142   : > { %2665 = vst [vmem:[%s3238_s29] sm:$0xff] %v1252_v63   ;;  %v3753_v44 = vadd.f32 %v729_v17, %v565_v48  ;;  %1444 = vxpose.xlu0.c.b16.start [1/8] %v1252_v63, 128 }
 0x143   : > { %v758_v1 = vadd.f32 %v726_v39, %v562_v29  ;;  %v755_v62 = vadd.f32 %v723_v8, %v559_v45 }
 0x144   : > { %v3755_v21 = vpop.permute.xlu1 %669  ;;  %v3757_v42 = vpop.permute.xlu0 %443 }
 0x145   : > { %813 = vperm.xlu1 %2903, %v3296_v12   ;;  %v563_v12 = vmul.f32 %v3595_v26, %v3614_v51  ;;  %v951_v29 = vadd.f32 %v919_v52, %v755_v62 }
 0x147   : > { %v759_v51 = vadd.f32 %v727_v6, %v563_v12 }
 0x148   : > { %v1029_v59 = vpop.permute.xlu0 %1028 }
 0x149   : > { %2904 = vset.pattern.permute.xlu1 %v4584_v34  ;;  %v858_v10 = vpop.permute.xlu1 %857 }
 0x14a   : > { %v922_v11 = vmul.f32 %v3608_v53, %v858_v10  ;;  %1033 = vperm.xlu1 %2904, %v971_v35  }
 0x14c   : > { %v954_v49 = vadd.f32 %v922_v11, %v758_v1  ;;  %v534_v17 = vpop.permute.xlu0 %533 }
 0x14d   : > { %v862_v20 = vpop.permute.xlu1 %861  ;;  %v571_v62 = vmul.f32 %v3595_v26, %v534_v17 }
 0x14e   : > { %v3782_v63 = vadd.f32 %v1109_v38, %v954_v49  ;;  %v923_v41 = vmul.f32 %v3608_v53, %v862_v20  ;;  %528 = vperm.xlu1 %2904, %v3780_v60   ;;  %v710_v49 = vmul.f32 %v3601_v54, %v3424_v37 }
 0x150   : > { %v3788_v48 = vpop.permute.xlu0 %1118  ;;  %v3790_v39 = vadd.f32 %v923_v41, %v759_v51  ;;  %v1210_v35 = vmax.f32 %v3782_v63, 0.0  ;;  %v742_v37 = vadd.f32 %v710_v49, %v546_v56  ;;  %v707_v41 = vmul.f32 %v3601_v54, %v3509_v2 }
 0x151   : > { %v903_v2 = vmul.f32 %v3608_v53, %v3587_v0 }
 0x152   : > { %2905 = vset.pattern.permute.xlu1 %v4585_v36  ;;  %v1094_v38 = vpop.permute.xlu1 %1093  ;;  %1242 = vst [vmem:[%s3236_s22 + $0xb0] sm:$0xff] %v1210_v35 }
 0x153   : > { %v1175_v45 = vadd.f32 %v1094_v38, %v951_v29  ;;  %693 = vperm.xlu1 %2905, %v3780_v60  }
 0x154   : > { %v3798_v10 = vpop.permute.xlu0 %453 }
 0x155   : > { %v1207_v32 = vmax.f32 %v1175_v45, 0.0 }
 0x156   : > { %v3800_v1 = vpop.permute.xlu1 %418 }
 0x157   : > { %1239 = vst [vmem:[%s3236_s22 + $0x98] sm:$0xff] %v1207_v32  ;;  %v3805_v12 = vpack.c.bf16 %v1207_v32, %v1206_v33  ;;  %2906 = vset.pattern.permute.xlu1 %v4583_v14  ;;  %v735_v33 = vmul.f32 %v3601_v54, %v3476_v55  ;;  %v931_v55 = vmul.f32 %v3608_v53, %v3549_v27 }
 0x158   : > { %881 = vperm.xlu1 %2906, %v3644_v47   ;;  %v3809_v6 = vpop.permute.xlu0 %1038  ;;  %v989_v47 = vld [vmem:[%s4547_s2 + $0xc8] sm:$0xff] }
 0x159   : > { %2749 = vst [vmem:[%s3238_s29 + $0x48] sm:$0xff] %v3805_v12   ;;  %v767_v17 = vadd.f32 %v735_v33, %v571_v62 }
 0x15b   : > { %v3813_v11 = vpop.permute.xlu1 %605  ;;  %v963_v32 = vadd.f32 %v931_v55, %v767_v17 }
 0x15c   : > { %885 = vperm.xlu1 %2906, %v3303_v13   ;;  %v3816_v8 = vpop.permute.xlu0 %1048  ;;  %v543_v13 = vmul.f32 %v3595_v26, %v3589_v4 }
 0x15e   : > { %v739_v29 = vadd.f32 %v707_v41, %v543_v13 }
 0x160   : > { %2907 = vset.pattern.permute.xlu1 %v4584_v34  ;;  %v794_v20 = vpop.permute.xlu1 %793  ;;  %v3831_v51 = vpop.permute.xlu0 %1143  ;;  %v935_v56 = vadd.f32 %v903_v2, %v739_v29 }
 0x161   : > { %v906_v31 = vmul.f32 %v3608_v53, %v794_v20  ;;  %1123 = vperm.xlu1 %2907, %v989_v47  }
 0x163   : > { %v938_v52 = vadd.f32 %v906_v31, %v742_v37  ;;  %v728_v37 = vmul.f32 %v3601_v54, %v3755_v21  ;;  %v921_v21 = vmul.f32 %v3608_v53, %v3636_v58 }
 0x164   : > { %v3838_v4 = vpop.permute.xlu1 %797  ;;  %v3840_v38 = vpop.permute.xlu0 %1063 }
 0x165   : > { %448 = vperm.xlu1 %2907, %v3357_v24   ;;  %v3843_v45 = vadd.f32 %v1029_v59, %v938_v52 }
 0x167   : > { %v1194_v27 = vmax.f32 %v3843_v45, 0.0  ;;  %v2953_v45 = vld [vmem:[%s4548_s3 + $0xb4] ss:$8 sps:$4 sm:$0xff]  }
 0x168   : > { %v1154_v49 = vpop.permute.xlu0 %1153 }
 0x169   : > { %v3848_v47 = vadd.f32 %v1154_v49, %v963_v32  ;;  %2908 = vset.pattern.permute.xlu1 %v4585_v36  ;;  %v1014_v33 = vpop.permute.xlu1 %1013  ;;  %1226 = vst [vmem:[%s3236_s22 + $0x30] sm:$0xff] %v1194_v27 }
 0x16a   : > { %v1159_v59 = vadd.f32 %v1014_v33, %v935_v56  ;;  %629 = vperm.xlu1 %2908, %v3357_v24   ;;  %v564_v24 = vmul.f32 %v3595_v26, %v3638_v50  ;;  %v725_v50 = vmul.f32 %v3601_v54, %v3556_v30  ;;  %v990_v30 = vld [vmem:[%s4547_s2 + $0xd0] sm:$0xff]  ;;  %v712_v33 = vmul.f32 %v3601_v54, %v3813_v11  ;;  %v4587_v11 = vld [vmem:[#allocation19_spill] sm:$0xff] }
 0x16b   : > { %v1219_v62 = vmax.f32 %v3848_v47, 0.0 }
 0x16c   : > { %v1191_v0 = vmax.f32 %v1159_v59, 0.0  ;;  %v548_v59 = vmul.f32 %v3595_v26, %v3800_v1  ;;  %v992_v1 = vld [vmem:[%s4547_s2 + $0xe0] sm:$0xff] }
 0x16d   : > { %1251 = vst [vmem:[%s3236_s22 + $0xf8] sm:$0xff] %v1219_v62  ;;  %v3859_v13 = vpop.permute.xlu1 %508 }
 0x16e   : > { %1223 = vst [vmem:[%s3236_s22 + $0x18] sm:$0xff] %v1191_v0  ;;  %v1253_v20 = vpack.c.bf16 %v1191_v0, %v1190_v9  ;;  %2910 = vset.pattern.permute.xlu1 %v4583_v14 }
 0x16f   : > { %817 = vperm.xlu1 %2910, %v3722_v3   ;;  %v760_v3 = vadd.f32 %v728_v37, %v564_v24  ;;  %v744_v24 = vadd.f32 %v712_v33, %v548_v59  ;;  %v2919_v33 = vld [vmem:[%s4548_s3 + $0x70] ss:$8 sps:$4 sm:$0xff]   ;;  %v2922_v59 = vld [vmem:[%s4548_s3 + $0x60] ss:$8 sps:$4 sm:$0xff]  }
 0x170   : > { %2741 = vst [vmem:[%s3238_s29 + $0x8] sm:$0xff] %v1253_v20   ;;  %1445 = vxpose.xlu0.c.b16.cont [2/8] %v1253_v20, 128 }
 0x172   : > { %v3867_v36 = vpop.permute.xlu1 %677 }
 0x173   : > { %821 = vperm.xlu1 %2910, %v3313_v15   ;;  %v561_v15 = vmul.f32 %v3595_v26, %v3593_v5 }
 0x175   : > { %v757_v52 = vadd.f32 %v725_v50, %v561_v15 }
 0x177   : > { %2911 = vset.pattern.permute.xlu1 %v4584_v34  ;;  %v866_v9 = vpop.permute.xlu1 %865  ;;  %v953_v29 = vadd.f32 %v921_v21, %v757_v52 }
 0x178   : > { %v924_v31 = vmul.f32 %v3608_v53, %v866_v9  ;;  %1043 = vperm.xlu1 %2911, %v973_v57   ;;  %v4588_v57 = vld [vmem:[#allocation17_spill] sm:$0xff] }
 0x179   : > { %v905_v9 = vmul.f32 %v3608_v53, %v4588_v57 }
 0x17a   : > { %v956_v41 = vadd.f32 %v924_v31, %v760_v3 }
 0x17b   : > { %v3885_v55 = vpop.permute.xlu1 %869 }
 0x17c   : > { %2912 = vset.pattern.permute.xlu1 %v4583_v14  ;;  %v3889_v17 = vadd.f32 %v3788_v48, %v956_v41 }
 0x17d   : > { %889 = vperm.xlu1 %2912, %v3780_v60   ;;  %v991_v60 = vld [vmem:[%s4547_s2 + $0xd8] sm:$0xff] }
 0x17e   : > { %v1212_v5 = vmax.f32 %v3889_v17, 0.0 }
 0x180   : > { %v1104_v58 = vpop.permute.xlu1 %1103  ;;  %1244 = vst [vmem:[%s3236_s22 + $0xc0] sm:$0xff] %v1212_v5 }
 0x181   : > { %v1177_v2 = vadd.f32 %v1104_v58, %v953_v29  ;;  %2913 = vset.pattern.permute.xlu1 %v4584_v34 }
 0x182   : > { %1128 = vperm.xlu1 %2913, %v990_v30  }
 0x183   : > { %v1209_v48 = vmax.f32 %v1177_v2, 0.0  ;;  %v978_v2 = vld [vmem:[%s4547_s2 + $0x70] sm:$0xff] }
 0x184   : > { %v3903_v32 = vpop.permute.xlu1 %428 }
 0x185   : > { %1241 = vst [vmem:[%s3236_s22 + $0xa8] sm:$0xff] %v1209_v48  ;;  %v3908_v49 = vpack.c.bf16 %v1209_v48, %v1208_v25  ;;  %v4586_v25 = vld [vmem:[#allocation20_spill] sm:$0xff] }
 0x186   : > { %1133 = vperm.xlu1 %2913, %v991_v60   ;;  %v545_v0 = vmul.f32 %v3595_v26, %v4586_v25  ;;  %v2917_v60 = vld [vmem:[%s4548_s3 + $0x74] ss:$8 sps:$4 sm:$0xff]  }
 0x187   : > { %2750 = vst [vmem:[%s3238_s29 + $0x50] sm:$0xff] %v3908_v49   ;;  %1636 = vmatprep.subr.bf16.mxu0 %v2917_v60 }
 0x188   : > { %1637 = vmatpush1.bf16.msra.mxu0 %v2919_v33 }
 0x189   : > { %v3912_v56 = vpop.permute.xlu1 %613  ;;  %1638 = vmatprep.subr.bf16.mxu0 %v2920_v7  ;;  %v711_v7 = vmul.f32 %v3601_v54, %v3696_v61  ;;  %v2943_v61 = vld [vmem:[%s4548_s3 + $0xf0] ss:$8 sps:$4 sm:$0xff]  }
 0x18a   : > { %2915 = vset.pattern.permute.xlu1 %v4583_v14  ;;  %v714_v63 = vmul.f32 %v3601_v54, %v3912_v56  ;;  %v2940_v56 = vld [vmem:[%s4548_s3] ss:$8 sps:$4 sm:$0xff]  }
 0x18b   : > { %829 = vperm.xlu1 %2915, %v3327_v18   ;;  %v709_v18 = vmul.f32 %v3601_v54, %v4587_v11  ;;  %v2929_v11 = vld [vmem:[%s4548_s3 + $0x34] ss:$8 sps:$4 sm:$0xff]  }
 0x18c   : > { %1639 = vmatpush1.bf16.msra.mxu0 %v2922_v59  ;;  %v2941_v59 = vld [vmem:[%s4548_s3 + $0xf4] ss:$8 sps:$4 sm:$0xff]  }
 0x18d   : > { %v741_v3 = vadd.f32 %v709_v18, %v545_v0  ;;  %v2925_v0 = vld [vmem:[%s4548_s3 + $0x50] ss:$8 sps:$4 sm:$0xff]  }
 0x18e   : > { %v802_v20 = vpop.permute.xlu1 %801 }
 0x18f   : > { %v908_v14 = vmul.f32 %v3608_v53, %v802_v20  ;;  %2916 = vset.pattern.permute.xlu1 %v4584_v34  ;;  %v976_v34 = vld [vmem:[%s4547_s2 + $0x60] sm:$0xff]  ;;  %v937_v50 = vadd.f32 %v905_v9, %v741_v3 }
 0x190   : > { %1053 = vperm.xlu1 %2916, %v975_v19   ;;  %v2923_v19 = vld [vmem:[%s4548_s3 + $0x54] ss:$8 sps:$4 sm:$0xff]   ;;  %v2926_v20 = vld [vmem:[%s4548_s3 + $0x44] ss:$8 sps:$4 sm:$0xff]  }
 0x191   : > { %v940_v37 = vadd.f32 %v908_v14, %v744_v24  ;;  %1640 = vmatprep.subr.bf16.mxu0 %v2923_v19  ;;  %v2928_v24 = vld [vmem:[%s4548_s3 + $0x40] ss:$8 sps:$4 sm:$0xff]   ;;  %v2932_v9 = vld [vmem:[%s4548_s3 + $0x24] ss:$8 sps:$4 sm:$0xff]  }
 0x192   : > { %v3934_v31 = vpop.permute.xlu1 %805  ;;  %1641 = vmatpush1.bf16.msra.mxu0 %v2925_v0  ;;  %v907_v0 = vmul.f32 %v3608_v53, %v3838_v4 }
 0x193   : > { %v3937_v15 = vadd.f32 %v3809_v6, %v940_v37  ;;  %v994_v6 = vld [vmem:[%s4547_s2 + $0xf0] sm:$0xff]  ;;  %1642 = vmatprep.subr.bf16.mxu0 %v2926_v20 }
 0x194   : > { %1138 = vperm.xlu1 %2916, %v992_v1   ;;  %v2931_v1 = vld [vmem:[%s4548_s3 + $0x30] ss:$8 sps:$4 sm:$0xff]  }
 0x195   : > { %v1196_v41 = vmax.f32 %v3937_v15, 0.0  ;;  %v4591_v15 = vld [vmem:[#allocation16_spill] sm:$0xff] }
 0x196   : > { %1643 = vmatpush1.bf16.msra.mxu0 %v2928_v24 }
 0x197   : > { %v1024_v21 = vpop.permute.xlu1 %1023  ;;  %1228 = vst [vmem:[%s3236_s22 + $0x40] sm:$0xff] %v1196_v41  ;;  %1644 = vmatprep.subr.bf16.mxu0 %v2929_v11 }
 0x198   : > { %v1161_v52 = vadd.f32 %v1024_v21, %v937_v50  ;;  %1058 = vperm.xlu1 %2916, %v976_v34   ;;  %v2935_v34 = vld [vmem:[%s4548_s3 + $0x14] ss:$8 sps:$4 sm:$0xff]  }
 0x19a   : > { %v1193_v29 = vmax.f32 %v1161_v52, 0.0  ;;  %1645 = vmatpush1.bf16.msra.mxu0 %v2931_v1  ;;  %v2946_v1 = vld [vmem:[%s4548_s3 + $0xe0] ss:$8 sps:$4 sm:$0xff]  }
 0x19b   : > { %v3949_v30 = vpop.permute.xlu1 %518  ;;  %1646 = vmatprep.subr.bf16.mxu0 %v2932_v9 }
 0x19c   : > { %1225 = vst [vmem:[%s3236_s22 + $0x28] sm:$0xff] %v1193_v29  ;;  %v1254_v58 = vpack.c.bf16 %v1193_v29, %v1192_v40  ;;  %1148 = vperm.xlu1 %2916, %v994_v6   ;;  %v2938_v29 = vld [vmem:[%s4548_s3 + $0x4] ss:$8 sps:$4 sm:$0xff]  }
 0x19e   : > { %2742 = vst [vmem:[%s3238_s29 + $0x10] sm:$0xff] %v1254_v58   ;;  %1446 = vxpose.xlu0.c.b16.cont [3/8] %v1254_v58, 128  ;;  %v550_v58 = vmul.f32 %v3595_v26, %v3903_v32  ;;  %v547_v32 = vmul.f32 %v3595_v26, %v3675_v23  ;;  %v2944_v23 = vld [vmem:[%s4548_s3 + $0xe4] ss:$8 sps:$4 sm:$0xff]  }
 0x1a0   : > { %1068 = vperm.xlu1 %2916, %v978_v2   ;;  %v3958_v48 = vpop.permute.xlu1 %685  ;;  %v746_v60 = vadd.f32 %v714_v63, %v550_v58  ;;  %v743_v11 = vadd.f32 %v711_v7, %v547_v32  ;;  %v2955_v63 = vld [vmem:[%s4548_s3 + $0xb0] ss:$8 sps:$4 sm:$0xff]  }
 0x1a1   : > { %v4589_v58 = vld [vmem:[#allocation14_spill] sm:$0xff] }
 0x1a5   : > { %v3969_v40 = vpop.permute.xlu1 %873 }
 0x1a9   : > { %v3977_v25 = vpop.permute.xlu1 %877 }
 0x1ae   : > { %v1114_v14 = vpop.permute.xlu1 %1113 }
 0x1af   : > { %v1179_v18 = vadd.f32 %v1114_v14, %v3790_v39  ;;  %v2934_v39 = vld [vmem:[%s4548_s3 + $0x20] ss:$8 sps:$4 sm:$0xff]  }
 0x1b0   : > { %1647 = vmatpush1.bf16.msra.mxu0 %v2934_v39  ;;  %v2949_v39 = vld [vmem:[%s4548_s3 + $0xd0] ss:$8 sps:$4 sm:$0xff]  }
 0x1b1   : > { %v1211_v37 = vmax.f32 %v1179_v18, 0.0  ;;  %1648 = vmatprep.subr.bf16.mxu0 %v2935_v34  ;;  %v939_v18 = vadd.f32 %v907_v0, %v743_v11  ;;  %v2962_v0 = vld [vmem:[%s4548_s3 + $0x84] ss:$8 sps:$4 sm:$0xff]   ;;  %v2964_v11 = vld [vmem:[%s4548_s3 + $0x80] ss:$8 sps:$4 sm:$0xff]  }
 0x1b2   : > { %v439_v57 = vpop.permute.xlu1 %438 }
 0x1b3   : > { %1243 = vst [vmem:[%s3236_s22 + $0xb8] sm:$0xff] %v1211_v37  ;;  %v4001_v3 = vpack.c.bf16 %v1211_v37, %v1210_v35  ;;  %v552_v21 = vmul.f32 %v3595_v26, %v439_v57  ;;  %v2937_v35 = vld [vmem:[%s4548_s3 + $0x10] ss:$8 sps:$4 sm:$0xff]  }
 0x1b4   : > { %1649 = vmatpush1.bf16.msra.mxu0 %v2937_v35  ;;  %v2956_v35 = vld [vmem:[%s4548_s3 + $0xa4] ss:$8 sps:$4 sm:$0xff]  }
 0x1b5   : > { %2751 = vst [vmem:[%s3238_s29 + $0x58] sm:$0xff] %v4001_v3   ;;  %1650 = vmatprep.subr.bf16.mxu0 %v2938_v29 }
 0x1b7   : > { %v622_v50 = vpop.permute.xlu1 %621 }
 0x1b8   : > { %v716_v52 = vmul.f32 %v3601_v54, %v622_v50  ;;  %1651 = vmatpush1.bf16.msra.mxu0 %v2940_v56  ;;  %v2950_v50 = vld [vmem:[%s4548_s3 + $0xc4] ss:$8 sps:$4 sm:$0xff]   ;;  %v925_v56 = vmul.f32 %v3608_v53, %v3885_v55 }
 0x1b9   : > { %1652 = vmatprep.subr.bf16.mxu0 %v2941_v59 }
 0x1ba   : > { %v4018_v6 = vadd.f32 %v716_v52, %v552_v21  ;;  %v957_v55 = vadd.f32 %v925_v56, %v3753_v44  ;;  %v555_v56 = vmul.f32 %v3595_v26, %v3798_v10 }
 0x1bc   : > { %v810_v2 = vpop.permute.xlu1 %809  ;;  %1653 = vmatpush2.bf16.msra.mxu0 %v2943_v61 }
 0x1bd   : > { %v910_v33 = vmul.f32 %v3608_v53, %v810_v2  ;;  %1654 = vmatprep.subr.bf16.mxu0 %v2944_v23  ;;  %v733_v2 = vmul.f32 %v3601_v54, %v4589_v58 }
 0x1bf   : > { %v942_v19 = vadd.f32 %v910_v33, %v746_v60  ;;  %v2958_v60 = vld [vmem:[%s4548_s3 + $0xa0] ss:$8 sps:$4 sm:$0xff]   ;;  %v2959_v33 = vld [vmem:[%s4548_s3 + $0x94] ss:$8 sps:$4 sm:$0xff]  }
 0x1c0   : > { %v814_v20 = vpop.permute.xlu1 %813  ;;  %1655 = vmatpush2.bf16.msra.mxu0 %v2946_v1 }
 0x1c1   : > { %v4039_v24 = vadd.f32 %v3816_v8, %v942_v19  ;;  %v911_v14 = vmul.f32 %v3608_v53, %v814_v20 }
 0x1c3   : > { %1460 = vxpose.xlu1.c.b16.start [1/8] %v3662_v22, 128  ;;  %v4050_v4 = vadd.f32 %v911_v14, %v3732_v28  ;;  %v1198_v8 = vmax.f32 %v4039_v24, 0.0  ;;  %v2947_v22 = vld [vmem:[%s4548_s3 + $0xd4] ss:$8 sps:$4 sm:$0xff]  }
 0x1c4   : > { %1656 = vmatprep.subr.bf16.mxu0 %v2947_v22 }
 0x1c5   : > { %v1034_v37 = vpop.permute.xlu1 %1033  ;;  %1230 = vst [vmem:[%s3236_s22 + $0x50] sm:$0xff] %v1198_v8  ;;  %1657 = vmatpush2.bf16.msra.mxu0 %v2949_v39 }
 0x1c6   : > { %v1163_v57 = vadd.f32 %v1034_v37, %v939_v18  ;;  %1658 = vmatprep.subr.bf16.mxu0 %v2950_v50 }
 0x1c7   : > { %1461 = vxpose.xlu1.c.b16.cont [2/8] %v3805_v12, 128  ;;  %v2952_v12 = vld [vmem:[%s4548_s3 + $0xc0] ss:$8 sps:$4 sm:$0xff]  }
 0x1c8   : > { %v1195_v28 = vmax.f32 %v1163_v57, 0.0  ;;  %v4590_v57 = vld [vmem:[#allocation15_spill] sm:$0xff] }
 0x1c9   : > { %v529_v9 = vpop.permute.xlu1 %528  ;;  %1659 = vmatpush2.bf16.msra.mxu0 %v2952_v12  ;;  %v717_v22 = vmul.f32 %v3601_v54, %v4590_v57 }
 0x1ca   : > { %1227 = vst [vmem:[%s3236_s22 + $0x38] sm:$0xff] %v1195_v28  ;;  %v1255_v34 = vpack.c.bf16 %v1195_v28, %v1194_v27  ;;  %v570_v27 = vmul.f32 %v3595_v26, %v529_v9  ;;  %1660 = vmatprep.subr.bf16.mxu0 %v2953_v45  ;;  %v553_v28 = vmul.f32 %v3595_v26, %v3757_v42 }
 0x1cb   : > { %1462 = vxpose.xlu1.c.b16.cont [3/8] %v3908_v49, 128  ;;  %v909_v9 = vmul.f32 %v3608_v53, %v3934_v31  ;;  %v730_v42 = vmul.f32 %v3601_v54, %v3867_v36  ;;  %v566_v31 = vmul.f32 %v3595_v26, %v3859_v13  ;;  %v927_v36 = vmul.f32 %v3608_v53, %v3977_v25 }
 0x1cc   : > { %2743 = vst [vmem:[%s3238_s29 + $0x18] sm:$0xff] %v1255_v34   ;;  %1447 = vxpose.xlu0.c.b16.cont [4/8] %v1255_v34, 128  ;;  %v749_v34 = vadd.f32 %v717_v22, %v553_v28 }
 0x1cd   : > { %1661 = vmatpush2.bf16.msra.mxu0 %v2955_v63  ;;  %v941_v50 = vadd.f32 %v909_v9, %v3673_v16  ;;  %v926_v16 = vmul.f32 %v3608_v53, %v3969_v40 }
 0x1ce   : > { %v694_v21 = vpop.permute.xlu1 %693  ;;  %1662 = vmatprep.subr.bf16.mxu0 %v2956_v35  ;;  %v762_v35 = vadd.f32 %v730_v42, %v566_v31 }
 0x1cf   : > { %v734_v52 = vmul.f32 %v3601_v54, %v694_v21  ;;  %1463 = vxpose.xlu1.c.b16.cont [4/8] %v4001_v3, 128  ;;  %v569_v3 = vmul.f32 %v3595_v26, %v3741_v43  ;;  %v2961_v43 = vld [vmem:[%s4548_s3 + $0x90] ss:$8 sps:$4 sm:$0xff]  }
 0x1d0   : > { %v958_v58 = vadd.f32 %v926_v16, %v762_v35 }
 0x1d1   : > { %v4083_v49 = vadd.f32 %v734_v52, %v570_v27  ;;  %v765_v59 = vadd.f32 %v733_v2, %v569_v3  ;;  %1663 = vmatpush2.bf16.msra.mxu0 %v2958_v60  ;;  %v959_v60 = vadd.f32 %v927_v36, %v3699_v46 }
 0x1d2   : > { %1664 = vmatprep.subr.bf16.mxu0 %v2959_v33 }
 0x1d3   : > { %v4091_v29 = vpop.permute.xlu1 %881 }
 0x1d4   : > { %v928_v10 = vmul.f32 %v3608_v53, %v4091_v29 }
 0x1d5   : > { %1665 = vmatpush2.bf16.msra.mxu0 %v2961_v43 }
 0x1d6   : > { %1666 = vmatprep.subr.bf16.mxu0 %v2962_v0  ;;  %v568_v0 = vmul.f32 %v3595_v26, %v3949_v30 }
 0x1d7   : > { %v886_v7 = vpop.permute.xlu1 %885 }
 0x1d8   : > { %v929_v19 = vmul.f32 %v3608_v53, %v886_v7 }
 0x1d9   : > { %1667 = vmatpush2.bf16.msra.mxu0 %v2964_v11 }
 0x1da   : > { %v961_v32 = vadd.f32 %v929_v19, %v765_v59 }
 0x1dc   : > { %v4114_v20 = vadd.f32 %v3831_v51, %v961_v32  ;;  %v1124_v14 = vpop.permute.xlu1 %1123  ;;  %v732_v32 = vmul.f32 %v3601_v54, %v3958_v48 }
 0x1dd   : > { %v1181_v61 = vadd.f32 %v1124_v14, %v957_v55  ;;  %v1074_v55 = vpop.permute.xlu0 %1073 }
 0x1de   : > { %v1217_v23 = vmax.f32 %v4114_v20, 0.0  ;;  %v764_v11 = vadd.f32 %v732_v32, %v568_v0 }
 0x1df   : > { %v1213_v18 = vmax.f32 %v1181_v61, 0.0 }
 0x1e0   : > { %v4120_v37 = vpop.permute.xlu1 %448  ;;  %1249 = vst [vmem:[%s3236_s22 + $0xe8] sm:$0xff] %v1217_v23  ;;  %v960_v22 = vadd.f32 %v928_v10, %v764_v11 }
 0x1e1   : > { %1245 = vst [vmem:[%s3236_s22 + $0xc8] sm:$0xff] %v1213_v18  ;;  %v1264_v44 = vpack.c.bf16 %v1213_v18, %v1212_v5 }
 0x1e3   : > { %2752 = vst [vmem:[%s3238_s29 + $0x60] sm:$0xff] %v1264_v44   ;;  %1464 = vxpose.xlu1.c.b16.cont [5/8] %v1264_v44, 128 }
 0x1e5   : > { %v630_v51 = vpop.permute.xlu1 %629 }
 0x1e6   : > { %v718_v9 = vmul.f32 %v3601_v54, %v630_v51 }
 0x1ea   : > { %v818_v1 = vpop.permute.xlu1 %817 }
 0x1eb   : > { %v912_v48 = vmul.f32 %v3608_v53, %v818_v1 }
 0x1ed   : > { %v944_v1 = vadd.f32 %v912_v48, %v4018_v6  ;;  %v4592_v6 = vld [vmem:[#allocation18_spill] sm:$0xff] }
 0x1ee   : > { %v822_v39 = vpop.permute.xlu1 %821 }
 0x1ef   : > { %v913_v17 = vmul.f32 %v3608_v53, %v822_v39 }
 0x1f1   : > { %v945_v5 = vadd.f32 %v913_v17, %v749_v34  ;;  %v554_v17 = vmul.f32 %v3595_v26, %v4120_v37 }
 0x1f3   : > { %v4138_v12 = vadd.f32 %v3840_v38, %v945_v5  ;;  %v1044_v21 = vpop.permute.xlu1 %1043 }
 0x1f4   : > { %v1165_v45 = vadd.f32 %v1044_v21, %v941_v50  ;;  %v914_v21 = vmul.f32 %v3608_v53, %v4592_v6 }
 0x1f5   : > { %v1201_v27 = vmax.f32 %v4138_v12, 0.0 }
 0x1f6   : > { %v1197_v52 = vmax.f32 %v1165_v45, 0.0 }
 0x1f7   : > { %1233 = vst [vmem:[%s3236_s22 + $0x68] sm:$0xff] %v1201_v27 }
 0x1f8   : > { %1229 = vst [vmem:[%s3236_s22 + $0x48] sm:$0xff] %v1197_v52  ;;  %v1256_v38 = vpack.c.bf16 %v1197_v52, %v1196_v41  ;;  %v890_v63 = vpop.permute.xlu1 %889  ;;  %v719_v41 = vmul.f32 %v3601_v54, %v4591_v15  ;;  %v750_v54 = vadd.f32 %v718_v9, %v554_v17 }
 0x1f9   : > { %v930_v39 = vmul.f32 %v3608_v53, %v890_v63 }
 0x1fa   : > { %2744 = vst [vmem:[%s3238_s29 + $0x20] sm:$0xff] %v1256_v38   ;;  %1448 = vxpose.xlu0.c.b16.cont [5/8] %v1256_v38, 128  ;;  %v751_v19 = vadd.f32 %v719_v41, %v555_v56  ;;  %v946_v37 = vadd.f32 %v914_v21, %v750_v54 }
 0x1fb   : > { %v962_v5 = vadd.f32 %v930_v39, %v4083_v49 }
 0x1fd   : > { %v1129_v2 = vpop.permute.xlu1 %1128 }
 0x1fe   : > { %v1182_v3 = vadd.f32 %v1129_v2, %v958_v58 }
 0x200   : > { %v1214_v13 = vmax.f32 %v1182_v3, 0.0 }
 0x201   : > { %v1134_v40 = vpop.permute.xlu1 %1133 }
 0x202   : > { %1246 = vst [vmem:[%s3236_s22 + $0xd0] sm:$0xff] %v1214_v13  ;;  %v1183_v33 = vadd.f32 %v1134_v40, %v959_v60 }
 0x204   : > { %v1215_v7 = vmax.f32 %v1183_v33, 0.0 }
 0x206   : > { %1247 = vst [vmem:[%s3236_s22 + $0xd8] sm:$0xff] %v1215_v7  ;;  %v1265_v59 = vpack.c.bf16 %v1215_v7, %v1214_v13  ;;  %v830_v25 = vpop.permute.xlu1 %829 }
 0x207   : > { %v915_v43 = vmul.f32 %v3608_v53, %v830_v25 }
 0x208   : > { %2753 = vst [vmem:[%s3238_s29 + $0x68] sm:$0xff] %v1265_v59   ;;  %1465 = vxpose.xlu1.c.b16.cont [6/8] %v1265_v59, 128 }
 0x209   : > { %v947_v46 = vadd.f32 %v915_v43, %v751_v19 }
 0x20b   : > { %v1171_v14 = vadd.f32 %v1074_v55, %v947_v46  ;;  %v1054_v61 = vpop.permute.xlu1 %1053 }
 0x20c   : > { %v1167_v18 = vadd.f32 %v1054_v61, %v4050_v4 }
 0x20d   : > { %v1203_v44 = vmax.f32 %v1171_v14, 0.0 }
 0x20e   : > { %v1199_v57 = vmax.f32 %v1167_v18, 0.0 }
 0x20f   : > { %v1139_v28 = vpop.permute.xlu1 %1138  ;;  %1235 = vst [vmem:[%s3236_s22 + $0x78] sm:$0xff] %v1203_v44 }
 0x210   : > { %1231 = vst [vmem:[%s3236_s22 + $0x58] sm:$0xff] %v1199_v57  ;;  %v1257_v30 = vpack.c.bf16 %v1199_v57, %v1198_v8  ;;  %v1184_v29 = vadd.f32 %v1139_v28, %v960_v22 }
 0x212   : > { %2745 = vst [vmem:[%s3238_s29 + $0x28] sm:$0xff] %v1257_v30   ;;  %v1216_v4 = vmax.f32 %v1184_v29, 0.0  ;;  %1449 = vxpose.xlu0.c.b16.cont [6/8] %v1257_v30, 128 }
 0x213   : > { %v1059_v34 = vpop.permute.xlu1 %1058 }
 0x214   : > { %1248 = vst [vmem:[%s3236_s22 + $0xe0] sm:$0xff] %v1216_v4  ;;  %v1266_v24 = vpack.c.bf16 %v1217_v23, %v1216_v4  ;;  %v1168_v8 = vadd.f32 %v1059_v34, %v944_v1 }
 0x216   : > { %2754 = vst [vmem:[%s3238_s29 + $0x70] sm:$0xff] %v1266_v24   ;;  %v1200_v51 = vmax.f32 %v1168_v8, 0.0  ;;  %1466 = vxpose.xlu1.c.b16.cont [7/8] %v1266_v24, 128 }
 0x217   : > { %v1149_v50 = vpop.permute.xlu1 %1148 }
 0x218   : > { %1232 = vst [vmem:[%s3236_s22 + $0x60] sm:$0xff] %v1200_v51  ;;  %v1258_v26 = vpack.c.bf16 %v1201_v27, %v1200_v51  ;;  %v1186_v20 = vadd.f32 %v1149_v50, %v962_v5 }
 0x21a   : > { %2746 = vst [vmem:[%s3238_s29 + $0x30] sm:$0xff] %v1258_v26   ;;  %v1218_v23 = vmax.f32 %v1186_v20, 0.0  ;;  %1450 = vxpose.xlu0.c.b16.cont [7/8] %v1258_v26, 128 }
 0x21b   : > { %v1069_v45 = vpop.permute.xlu1 %1068 }
 0x21c   : > { %1250 = vst [vmem:[%s3236_s22 + $0xf0] sm:$0xff] %v1218_v23  ;;  %v1267_v49 = vpack.c.bf16 %v1219_v62, %v1218_v23  ;;  %v1170_v42 = vadd.f32 %v1069_v45, %v946_v37 }
 0x21e   : > { %2755 = vst [vmem:[%s3238_s29 + $0x78] sm:$0xff] %v1267_v49   ;;  %v1202_v52 = vmax.f32 %v1170_v42, 0.0  ;;  %1467 = vxpose.xlu1.c.b16.end [8/8] %v1267_v49, 128 }
 0x220   : > { %1234 = vst [vmem:[%s3236_s22 + $0x70] sm:$0xff] %v1202_v52  ;;  %v1259_v53 = vpack.c.bf16 %v1203_v44, %v1202_v52 }
 0x222   : > { %2747 = vst [vmem:[%s3238_s29 + $0x38] sm:$0xff] %v1259_v53   ;;  %1451 = vxpose.xlu0.c.b16.end [8/8] %v1259_v53, 128 }
 0x264   : > { %v1468_v12 = vpop.trf.xlu1 }
 0x265   : > { %1668 = vmatprep.mubr.bf16.mxu0 %v1468_v12 }
 0x268   : > { %v1452_v27 = vpop.trf.xlu0  ;;  %v1469_v31 = vpop.trf.xlu1 }
 0x269   : > { %1669 = vmatmul.mubr.bf16.vlgmr.msra.gmra.mxu0 %v1452_v27 }
 0x26a   : > { %1678 = vmatprep.mubr.bf16.mxu0 %v1469_v31 }
 0x26c   : > { %v1453_v16 = vpop.trf.xlu0  ;;  %v1470_v38 = vpop.trf.xlu1 }
 0x270   : > { %v1454_v47 = vpop.trf.xlu0  ;;  %v1471_v62 = vpop.trf.xlu1 }
 0x271   : > { %1679 = vmatmul.mubr.bf16.gmra.mxu0 %v1453_v16 }
 0x272   : > { %1688 = vmatprep.mubr.bf16.mxu0 %v1470_v38 }
 0x274   : > { %v1455_v63 = vpop.trf.xlu0  ;;  %v1472_v35 = vpop.trf.xlu1 }
 0x278   : > { %v1456_v36 = vpop.trf.xlu0  ;;  %v1473_v58 = vpop.trf.xlu1 }
 0x279   : > { %1689 = vmatmul.mubr.bf16.gmra.mxu0 %v1454_v47 }
 0x27a   : > { %1698 = vmatprep.mubr.bf16.mxu0 %v1471_v62 }
 0x27c   : > { %v1457_v2 = vpop.trf.xlu0  ;;  %v1474_v3 = vpop.trf.xlu1 }
 0x280   : > { %v1458_v13 = vpop.trf.xlu0  ;;  %v1475_v60 = vpop.trf.xlu1 }
 0x281   : > { %1699 = vmatmul.mubr.bf16.gmra.mxu0 %v1455_v63 }
 0x282   : > { %1708 = vmatprep.mubr.bf16.mxu0 %v1472_v35 }
 0x284   : > { %v1459_v40 = vpop.trf.xlu0 }
 0x289   : > { %1709 = vmatmul.mubr.bf16.gmra.mxu0 %v1456_v36 }
 0x28a   : > { %1718 = vmatprep.mubr.bf16.mxu0 %v1473_v58 }
 0x291   : > { %1719 = vmatmul.mubr.bf16.gmra.mxu0 %v1457_v2 }
 0x292   : > { %1728 = vmatprep.mubr.bf16.mxu0 %v1474_v3 }
 0x299   : > { %1729 = vmatmul.mubr.bf16.gmra.mxu0 %v1458_v13 }
 0x29a   : > { %1738 = vmatprep.mubr.bf16.mxu0 %v1475_v60 }
 0x2a1   : > { %1739 = vmatmul.mubr.bf16.gmra.mxu0 %v1459_v40 }
 0x329   : > { %v1670_v33 = vpop.f32.mrf.mxu0 }
 0x32b   : > { %v4200_v15 = vpop.f32.mrf.mxu0 }
 0x32c   : > { %v1750_v41 = vsel %vm1749_vm0, %v4200_v15, -inf }
 0x32d   : > { %1751 = vmax.xlane.f32.xlu0 %v1750_v41  ;;  %v1674_v56 = vpop.f32.mrf.mxu0 }
 0x32e   : > { %v4204_v7 = vpack.c.bf16 %v1674_v56, %v1670_v33 }
 0x32f   : > { %v4206_v59 = vpop.f32.mrf.mxu0 }
 0x330   : > { %v1753_v25 = vsel %vm1749_vm0, %v4206_v59, -inf }
 0x331   : > { %1754 = vmax.xlane.f32.xlu1 %v1753_v25  ;;  %v1680_v19 = vpop.f32.mrf.mxu0 }
 0x333   : > { %v4210_v43 = vpop.f32.mrf.mxu0 }
 0x334   : > { %v1756_v32 = vsel %vm1749_vm0, %v4210_v43, -inf }
 0x335   : > { %1757 = vmax.xlane.f32.xlu0 %v1756_v32  ;;  %v1684_v46 = vpop.f32.mrf.mxu0 }
 0x336   : > { %v4214_v0 = vpack.c.bf16 %v1684_v46, %v1680_v19 }
 0x337   : > { %v4216_v55 = vpop.f32.mrf.mxu0 }
 0x338   : > { %v1759_v10 = vsel %vm1749_vm0, %v4216_v55, -inf }
 0x339   : > { %1760 = vmax.xlane.f32.xlu1 %v1759_v10  ;;  %v1690_v14 = vpop.f32.mrf.mxu0 }
 0x33b   : > { %v4220_v61 = vpop.f32.mrf.mxu0 }
 0x33c   : > { %v1762_v11 = vsel %vm1749_vm0, %v4220_v61, -inf }
 0x33d   : > { %1763 = vmax.xlane.f32.xlu0 %v1762_v11  ;;  %v1694_v18 = vpop.f32.mrf.mxu0 }
 0x33e   : > { %v1939_v63 = vpack.c.bf16 %v1694_v18, %v1690_v14 }
 0x33f   : > { %v4224_v44 = vpop.f32.mrf.mxu0 }
 0x340   : > { %v1765_v48 = vsel %vm1749_vm0, %v4224_v44, -inf }
 0x341   : > { %1766 = vmax.xlane.f32.xlu1 %v1765_v48  ;;  %v1700_v57 = vpop.f32.mrf.mxu0 }
 0x343   : > { %v4228_v22 = vpop.f32.mrf.mxu0 }
 0x344   : > { %v1768_v28 = vsel %vm1749_vm0, %v4228_v22, -inf }
 0x345   : > { %1769 = vmax.xlane.f32.xlu0 %v1768_v28  ;;  %v1704_v30 = vpop.f32.mrf.mxu0 }
 0x346   : > { %v1940_v62 = vpack.c.bf16 %v1704_v30, %v1700_v57 }
 0x347   : > { %v4232_v29 = vpop.f32.mrf.mxu0 }
 0x348   : > { %v1771_v9 = vsel %vm1749_vm0, %v4232_v29, -inf }
 0x349   : > { %1772 = vmax.xlane.f32.xlu1 %v1771_v9  ;;  %v1710_v39 = vpop.f32.mrf.mxu0 }
 0x34b   : > { %v4236_v4 = vpop.f32.mrf.mxu0 }
 0x34c   : > { %v1774_v1 = vsel %vm1749_vm0, %v4236_v4, -inf }
 0x34d   : > { %1775 = vmax.xlane.f32.xlu0 %v1774_v1  ;;  %v1714_v34 = vpop.f32.mrf.mxu0 }
 0x34e   : > { %v1941_v47 = vpack.c.bf16 %v1714_v34, %v1710_v39 }
 0x34f   : > { %v4240_v17 = vpop.f32.mrf.mxu0 }
 0x350   : > { %v1777_v24 = vsel %vm1749_vm0, %v4240_v17, -inf }
 0x351   : > { %1778 = vmax.xlane.f32.xlu1 %v1777_v24  ;;  %v1720_v8 = vpop.f32.mrf.mxu0 }
 0x353   : > { %v4244_v54 = vpop.f32.mrf.mxu0 }
 0x354   : > { %v1780_v51 = vsel %vm1749_vm0, %v4244_v54, -inf }
 0x355   : > { %1781 = vmax.xlane.f32.xlu0 %v1780_v51  ;;  %v1724_v5 = vpop.f32.mrf.mxu0 }
 0x356   : > { %v1942_v38 = vpack.c.bf16 %v1724_v5, %v1720_v8 }
 0x357   : > { %v4248_v50 = vpop.f32.mrf.mxu0 }
 0x358   : > { %v1783_v6 = vsel %vm1749_vm0, %v4248_v50, -inf }
 0x359   : > { %1784 = vmax.xlane.f32.xlu1 %v1783_v6  ;;  %v1730_v21 = vpop.f32.mrf.mxu0 }
 0x35b   : > { %v4252_v26 = vpop.f32.mrf.mxu0 }
 0x35c   : > { %v1786_v20 = vsel %vm1749_vm0, %v4252_v26, -inf }
 0x35d   : > { %1787 = vmax.xlane.f32.xlu0 %v1786_v20  ;;  %v1734_v23 = vpop.f32.mrf.mxu0 }
 0x35e   : > { %v1943_v31 = vpack.c.bf16 %v1734_v23, %v1730_v21 }
 0x35f   : > { %v4256_v37 = vpop.f32.mrf.mxu0 }
 0x360   : > { %v1789_v45 = vsel %vm1749_vm0, %v4256_v37, -inf }
 0x361   : > { %1790 = vmax.xlane.f32.xlu1 %v1789_v45  ;;  %v1740_v49 = vpop.f32.mrf.mxu0 }
 0x363   : > { %v4260_v42 = vpop.f32.mrf.mxu0 }
 0x364   : > { %v1792_v52 = vsel %vm1749_vm0, %v4260_v42, -inf }
 0x365   : > { %1793 = vmax.xlane.f32.xlu0 %v1792_v52  ;;  %v1744_v53 = vpop.f32.mrf.mxu0 }
 0x366   : > { %v1944_v12 = vpack.c.bf16 %v1744_v53, %v1740_v49 }
 0x367   : > { %v4264_v27 = vpop.f32.mrf.mxu0 }
 0x368   : > { %v1795_v16 = vsel %vm1749_vm0, %v4264_v27, -inf  ;;  %2766 = vmatprep.subr.bf16.mxu1 %v1944_v12 }
 0x369   : > { %2767 = vmatpush3.bf16.msra.mxu1 %v1944_v12  ;;  %1796 = vmax.xlane.f32.xlu1 %v1795_v16 }
 0x36a   : > { %2768 = vmatprep.subr.bf16.mxu1 %v1943_v31 }
 0x36d   : > { %2769 = vmatpush3.bf16.msra.mxu1 %v1943_v31 }
 0x36e   : > { %2770 = vmatprep.subr.bf16.mxu1 %v1942_v38 }
 0x371   : > { %2771 = vmatpush3.bf16.msra.mxu1 %v1942_v38 }
 0x372   : > { %2772 = vmatprep.subr.bf16.mxu1 %v1941_v47 }
 0x375   : > { %2773 = vmatpush3.bf16.msra.mxu1 %v1941_v47 }
 0x376   : > { %2774 = vmatprep.subr.bf16.mxu1 %v1940_v62 }
 0x379   : > { %2775 = vmatpush3.bf16.msra.mxu1 %v1940_v62 }
 0x37a   : > { %2776 = vmatprep.subr.bf16.mxu1 %v1939_v63 }
 0x37d   : > { %2777 = vmatpush3.bf16.msra.mxu1 %v1939_v63 }
 0x37e   : > { %2778 = vmatprep.subr.bf16.mxu1 %v4214_v0 }
 0x381   : > { %2779 = vmatpush3.bf16.msra.mxu1 %v4214_v0 }
 0x382   : > { %2780 = vmatprep.subr.bf16.mxu1 %v4204_v7 }
 0x385   : > { %2781 = vmatpush3.bf16.msra.mxu1 %v4204_v7 }
 0x3b6   : > { %v1752_v35 = vpop.xlane.xlu0 %1751 }
 0x3b7   : > { %v1798_v36 = vsub.f32 %v4200_v15, %v1752_v35 }
 0x3b9   : > { %v1814_v58 = vmul.f32 1.442695, %v1798_v36 }
 0x3ba   : > { %v1755_v2 = vpop.xlane.xlu1 %1754 }
 0x3bb   : > { %2965 = vpow2.f32 %v1814_v58  ;;  %v1799_v3 = vsub.f32 %v4206_v59, %v1755_v2 }
 0x3bd   : > { %v1816_v13 = vmul.f32 1.442695, %v1799_v3 }
 0x3be   : > { %v1758_v60 = vpop.xlane.xlu0 %1757 }
 0x3bf   : > { %2967 = vpow2.f32 %v1816_v13  ;;  %v1800_v40 = vsub.f32 %v4210_v43, %v1758_v60 }
 0x3c1   : > { %v1818_v33 = vmul.f32 1.442695, %v1800_v40 }
 0x3c2   : > { %v1761_v41 = vpop.xlane.xlu1 %1760 }
 0x3c3   : > { %2969 = vpow2.f32 %v1818_v33  ;;  %v1801_v56 = vsub.f32 %v4216_v55, %v1761_v41 }
 0x3c5   : > { %v1820_v25 = vmul.f32 1.442695, %v1801_v56 }
 0x3c6   : > { %v1764_v7 = vpop.xlane.xlu0 %1763 }
 0x3c7   : > { %2971 = vpow2.f32 %v1820_v25  ;;  %v1802_v15 = vsub.f32 %v4220_v61, %v1764_v7 }
 0x3c8   : > { %v4277_v19 = vpop.eup %2965 }
 0x3c9   : > { %v1822_v32 = vmul.f32 1.442695, %v1802_v15  ;;  %v1846_v59 = vsel %vm1749_vm0, %v4277_v19, 0.0 }
 0x3ca   : > { %v1767_v46 = vpop.xlane.xlu1 %1766  ;;  %1847 = vadd.xlane.f32.xlu0 %v1846_v59 }
 0x3cb   : > { %2973 = vpow2.f32 %v1822_v32  ;;  %v1803_v43 = vsub.f32 %v4224_v44, %v1767_v46 }
 0x3cc   : > { %v4282_v0 = vpop.eup %2967 }
 0x3cd   : > { %v1824_v10 = vmul.f32 1.442695, %v1803_v43  ;;  %v1849_v55 = vsel %vm1749_vm0, %v4282_v0, 0.0 }
 0x3ce   : > { %1850 = vadd.xlane.f32.xlu1 %v1849_v55  ;;  %v1770_v14 = vpop.xlane.xlu0 %1769 }
 0x3cf   : > { %2975 = vpow2.f32 %v1824_v10  ;;  %v1804_v61 = vsub.f32 %v4228_v22, %v1770_v14 }
 0x3d0   : > { %v4287_v11 = vpop.eup %2969 }
 0x3d1   : > { %v1826_v18 = vmul.f32 1.442695, %v1804_v61  ;;  %v1852_v48 = vsel %vm1749_vm0, %v4287_v11, 0.0 }
 0x3d2   : > { %v1773_v57 = vpop.xlane.xlu1 %1772  ;;  %1853 = vadd.xlane.f32.xlu0 %v1852_v48 }
 0x3d3   : > { %2977 = vpow2.f32 %v1826_v18  ;;  %v1805_v44 = vsub.f32 %v4232_v29, %v1773_v57 }
 0x3d4   : > { %v4292_v28 = vpop.eup %2971 }
 0x3d5   : > { %v1828_v30 = vmul.f32 1.442695, %v1805_v44  ;;  %v1855_v9 = vsel %vm1749_vm0, %v4292_v28, 0.0 }
 0x3d6   : > { %1856 = vadd.xlane.f32.xlu1 %v1855_v9  ;;  %v1776_v39 = vpop.xlane.xlu0 %1775 }
 0x3d7   : > { %2979 = vpow2.f32 %v1828_v30  ;;  %v1806_v22 = vsub.f32 %v4236_v4, %v1776_v39 }
 0x3d8   : > { %v4297_v1 = vpop.eup %2973 }
 0x3d9   : > { %v1830_v34 = vmul.f32 1.442695, %v1806_v22  ;;  %v1858_v24 = vsel %vm1749_vm0, %v4297_v1, 0.0 }
 0x3da   : > { %v1779_v8 = vpop.xlane.xlu1 %1778  ;;  %1859 = vadd.xlane.f32.xlu0 %v1858_v24 }
 0x3db   : > { %2981 = vpow2.f32 %v1830_v34  ;;  %v1807_v29 = vsub.f32 %v4240_v17, %v1779_v8 }
 0x3dc   : > { %v4302_v51 = vpop.eup %2975 }
 0x3dd   : > { %v1832_v5 = vmul.f32 1.442695, %v1807_v29  ;;  %v1861_v6 = vsel %vm1749_vm0, %v4302_v51, 0.0 }
 0x3de   : > { %1862 = vadd.xlane.f32.xlu1 %v1861_v6  ;;  %v1782_v21 = vpop.xlane.xlu0 %1781 }
 0x3df   : > { %2983 = vpow2.f32 %v1832_v5  ;;  %v1808_v4 = vsub.f32 %v4244_v54, %v1782_v21 }
 0x3e0   : > { %v4307_v20 = vpop.eup %2977 }
 0x3e1   : > { %v1834_v23 = vmul.f32 1.442695, %v1808_v4  ;;  %v1864_v45 = vsel %vm1749_vm0, %v4307_v20, 0.0 }
 0x3e2   : > { %v1785_v49 = vpop.xlane.xlu1 %1784  ;;  %1865 = vadd.xlane.f32.xlu0 %v1864_v45 }
 0x3e3   : > { %2985 = vpow2.f32 %v1834_v23  ;;  %v1809_v17 = vsub.f32 %v4248_v50, %v1785_v49 }
 0x3e4   : > { %v4312_v52 = vpop.eup %2979 }
 0x3e5   : > { %v1836_v53 = vmul.f32 1.442695, %v1809_v17  ;;  %v1867_v12 = vsel %vm1749_vm0, %v4312_v52, 0.0 }
 0x3e6   : > { %1868 = vadd.xlane.f32.xlu1 %v1867_v12  ;;  %v1788_v31 = vpop.xlane.xlu0 %1787 }
 0x3e7   : > { %2987 = vpow2.f32 %v1836_v53  ;;  %v1810_v54 = vsub.f32 %v4252_v26, %v1788_v31 }
 0x3e8   : > { %v4317_v16 = vpop.eup %2981 }
 0x3e9   : > { %v1838_v38 = vmul.f32 1.442695, %v1810_v54  ;;  %v1870_v47 = vsel %vm1749_vm0, %v4317_v16, 0.0 }
 0x3ea   : > { %v1791_v62 = vpop.xlane.xlu1 %1790  ;;  %1871 = vadd.xlane.f32.xlu0 %v1870_v47 }
 0x3eb   : > { %2989 = vpow2.f32 %v1838_v38  ;;  %v1811_v50 = vsub.f32 %v4256_v37, %v1791_v62 }
 0x3ec   : > { %v4322_v63 = vpop.eup %2983 }
 0x3ed   : > { %v1840_v35 = vmul.f32 1.442695, %v1811_v50  ;;  %v1873_v36 = vsel %vm1749_vm0, %v4322_v63, 0.0 }
 0x3ee   : > { %1874 = vadd.xlane.f32.xlu1 %v1873_v36  ;;  %v1794_v58 = vpop.xlane.xlu0 %1793 }
 0x3ef   : > { %2991 = vpow2.f32 %v1840_v35  ;;  %v1812_v26 = vsub.f32 %v4260_v42, %v1794_v58 }
 0x3f0   : > { %v4327_v2 = vpop.eup %2985 }
 0x3f1   : > { %v1842_v3 = vmul.f32 1.442695, %v1812_v26  ;;  %v1876_v13 = vsel %vm1749_vm0, %v4327_v2, 0.0 }
 0x3f2   : > { %v1797_v60 = vpop.xlane.xlu1 %1796  ;;  %1877 = vadd.xlane.f32.xlu0 %v1876_v13 }
 0x3f3   : > { %2993 = vpow2.f32 %v1842_v3  ;;  %v1813_v37 = vsub.f32 %v4264_v27, %v1797_v60 }
 0x3f4   : > { %v4332_v40 = vpop.eup %2987 }
 0x3f5   : > { %v1844_v33 = vmul.f32 1.442695, %v1813_v37  ;;  %v1879_v41 = vsel %vm1749_vm0, %v4332_v40, 0.0 }
 0x3f6   : > { %1880 = vadd.xlane.f32.xlu1 %v1879_v41 }
 0x3f7   : > { %2995 = vpow2.f32 %v1844_v33 }
 0x3f8   : > { %v4336_v42 = vpop.eup %2989 }
 0x3f9   : > { %v1882_v56 = vsel %vm1749_vm0, %v4336_v42, 0.0 }
 0x3fa   : > { %1883 = vadd.xlane.f32.xlu0 %v1882_v56 }
 0x3fc   : > { %v4340_v25 = vpop.eup %2991 }
 0x3fd   : > { %v1885_v7 = vsel %vm1749_vm0, %v4340_v25, 0.0 }
 0x3fe   : > { %1886 = vadd.xlane.f32.xlu1 %v1885_v7 }
 0x400   : > { %v4344_v27 = vpop.eup %2993 }
 0x401   : > { %v1888_v15 = vsel %vm1749_vm0, %v4344_v27, 0.0 }
 0x402   : > { %1889 = vadd.xlane.f32.xlu0 %v1888_v15  ;;  %v1928_v15 = vld [vmem:[#allocation2 + $0x8] sm:$0xf] }
 0x404   : > { %v4348_v32 = vpop.eup %2995 }
 0x405   : > { %v1891_v59 = vsel %vm1749_vm0, %v4348_v32, 0.0 }
 0x406   : > { %1892 = vadd.xlane.f32.xlu1 %v1891_v59 }
 0x453   : > { %v1848_v46 = vpop.xlane.xlu0 %1847 }
 0x454   : > { %2997 = vrcp.f32 %v1848_v46  ;;  %v1926_v46 = vld [vmem:[#allocation2 + $0x10] sm:$0xff] }
 0x457   : > { %v1851_v43 = vpop.xlane.xlu1 %1850 }
 0x458   : > { %2999 = vrcp.f32 %v1851_v43 }
 0x45b   : > { %v1854_v10 = vpop.xlane.xlu0 %1853 }
 0x45c   : > { %3001 = vrcp.f32 %v1854_v10 }
 0x45f   : > { %v1857_v55 = vpop.xlane.xlu1 %1856 }
 0x460   : > { %3003 = vrcp.f32 %v1857_v55  ;;  %v1927_v55 = vld [vmem:[#allocation2] sm:$0xff] }
 0x461   : > { %v2998_v14 = vpop.eup %2997 }
 0x462   : > { %v1910_v48 = vmul.f32 %v2998_v14, %v4277_v19 }
 0x463   : > { %v1860_v61 = vpop.xlane.xlu0 %1859 }
 0x464   : > { %3005 = vrcp.f32 %v1860_v61 }
 0x465   : > { %v3000_v18 = vpop.eup %2999 }
 0x466   : > { %v1911_v57 = vmul.f32 %v3000_v18, %v4282_v0 }
 0x467   : > { %v1863_v44 = vpop.xlane.xlu1 %1862 }
 0x468   : > { %3007 = vrcp.f32 %v1863_v44  ;;  %v1929_v30 = vpack.c.bf16 %v1911_v57, %v1910_v48 }
 0x469   : > { %v3002_v9 = vpop.eup %3001 }
 0x46a   : > { %1945 = vxpose.xlu0.c.b16.start [1/8] (narrow) %v1929_v30, 32  ;;  %v1912_v34 = vmul.f32 %v3002_v9, %v4287_v11 }
 0x46b   : > { %v1866_v39 = vpop.xlane.xlu0 %1865 }
 0x46c   : > { %3009 = vrcp.f32 %v1866_v39 }
 0x46d   : > { %v3004_v22 = vpop.eup %3003 }
 0x46e   : > { %v1913_v24 = vmul.f32 %v3004_v22, %v4292_v28 }
 0x46f   : > { %v1869_v8 = vpop.xlane.xlu1 %1868 }
 0x470   : > { %3011 = vrcp.f32 %v1869_v8  ;;  %v1930_v29 = vpack.c.bf16 %v1913_v24, %v1912_v34 }
 0x471   : > { %v3006_v5 = vpop.eup %3005 }
 0x472   : > { %1946 = vxpose.xlu0.c.b16.cont [2/8] (narrow) %v1930_v29, 32  ;;  %v1914_v0 = vmul.f32 %v3006_v5, %v4297_v1 }
 0x473   : > { %v1872_v19 = vpop.xlane.xlu0 %1871 }
 0x474   : > { %3013 = vrcp.f32 %v1872_v19 }
 0x475   : > { %v3008_v6 = vpop.eup %3007 }
 0x476   : > { %v1915_v21 = vmul.f32 %v3008_v6, %v4302_v51 }
 0x477   : > { %v1875_v4 = vpop.xlane.xlu1 %1874 }
 0x478   : > { %3015 = vrcp.f32 %v1875_v4  ;;  %v1931_v23 = vpack.c.bf16 %v1915_v21, %v1914_v0 }
 0x479   : > { %v3010_v45 = vpop.eup %3009 }
 0x47a   : > { %1947 = vxpose.xlu0.c.b16.cont [3/8] (narrow) %v1931_v23, 32  ;;  %v1916_v28 = vmul.f32 %v3010_v45, %v4307_v20 }
 0x47b   : > { %v1878_v11 = vpop.xlane.xlu0 %1877 }
 0x47c   : > { %3017 = vrcp.f32 %v1878_v11 }
 0x47d   : > { %v3012_v49 = vpop.eup %3011 }
 0x47e   : > { %v1917_v17 = vmul.f32 %v3012_v49, %v4312_v52 }
 0x47f   : > { %v1881_v53 = vpop.xlane.xlu1 %1880 }
 0x480   : > { %3019 = vrcp.f32 %v1881_v53  ;;  %v1932_v12 = vpack.c.bf16 %v1917_v17, %v1916_v28 }
 0x481   : > { %v3014_v31 = vpop.eup %3013 }
 0x482   : > { %1948 = vxpose.xlu0.c.b16.cont [4/8] (narrow) %v1932_v12, 32  ;;  %v1918_v51 = vmul.f32 %v3014_v31, %v4317_v16 }
 0x483   : > { %v1884_v1 = vpop.xlane.xlu0 %1883 }
 0x484   : > { %3021 = vrcp.f32 %v1884_v1 }
 0x485   : > { %v3016_v54 = vpop.eup %3015 }
 0x486   : > { %v1919_v38 = vmul.f32 %v3016_v54, %v4322_v63 }
 0x487   : > { %v1887_v47 = vpop.xlane.xlu1 %1886 }
 0x488   : > { %3023 = vrcp.f32 %v1887_v47  ;;  %v1933_v62 = vpack.c.bf16 %v1919_v38, %v1918_v51 }
 0x489   : > { %v3018_v50 = vpop.eup %3017 }
 0x48a   : > { %1949 = vxpose.xlu0.c.b16.cont [5/8] (narrow) %v1933_v62, 32  ;;  %v1920_v52 = vmul.f32 %v3018_v50, %v4327_v2 }
 0x48b   : > { %v1890_v20 = vpop.xlane.xlu0 %1889 }
 0x48c   : > { %3025 = vrcp.f32 %v1890_v20 }
 0x48d   : > { %v3020_v35 = vpop.eup %3019 }
 0x48e   : > { %v1921_v36 = vmul.f32 %v3020_v35, %v4332_v40 }
 0x48f   : > { %v1893_v58 = vpop.xlane.xlu1 %1892 }
 0x490   : > { %3027 = vrcp.f32 %v1893_v58  ;;  %v1934_v26 = vpack.c.bf16 %v1921_v36, %v1920_v52 }
 0x491   : > { %v3022_v3 = vpop.eup %3021 }
 0x492   : > { %1950 = vxpose.xlu0.c.b16.cont [6/8] (narrow) %v1934_v26, 32  ;;  %v1922_v63 = vmul.f32 %v3022_v3, %v4336_v42 }
 0x495   : > { %v3024_v16 = vpop.eup %3023 }
 0x496   : > { %v1923_v13 = vmul.f32 %v3024_v16, %v4340_v25 }
 0x498   : > { %v1935_v60 = vpack.c.bf16 %v1923_v13, %v1922_v63 }
 0x499   : > { %v3026_v37 = vpop.eup %3025 }
 0x49a   : > { %1951 = vxpose.xlu0.c.b16.cont [7/8] (narrow) %v1935_v60, 32  ;;  %v1924_v2 = vmul.f32 %v3026_v37, %v4344_v27 }
 0x49d   : > { %v3028_v33 = vpop.eup %3027 }
 0x49e   : > { %v1925_v41 = vmul.f32 %v3028_v33, %v4348_v32 }
 0x4a0   : > { %v1936_v56 = vpack.c.bf16 %v1925_v41, %v1924_v2 }
 0x4a2   : > { %1952 = vxpose.xlu0.c.b16.end [8/8] (narrow) %v1936_v56, 32 }
 0x4e8   : > { %v1953_v40 = vpop.trf.xlu0 }
 0x4e9   : > { %2782 = vmatprep.mubr.bf16.mxu1 %v1953_v40 }
 0x4ec   : > { %v1954_v7 = vpop.trf.xlu0 }
 0x4ed   : > { %2783 = vmatmul.mubr.bf16.vlgmr.msra.gmra.mxu1 %v1954_v7 }
 0x5ad   : > { %v2784_v59 = vpop.f32.mrf.mxu1 }
 0x5ae   : > { %v2011_v42 = vadd.f32 %v2784_v59, %v1928_v15 }
 0x5af   : > { %v1995_v43 = vpop.f32.mrf.mxu1 }
 0x5b0   : > { %2014 = vst [vmem:[#allocation2 + $0x8] sm:$0xf] %v2011_v42  ;;  %v2009_v25 = vadd.f32 %v1995_v43, %v1926_v46 }
 0x5b1   : > { %v2785_v10 = vpop.f32.mrf.mxu1 }
 0x5b2   : > { %2012 = vst [vmem:[#allocation2 + $0x10] sm:$0xff] %v2009_v25  ;;  %2018 = sbr.rel (%p2618_p0) target bundleno = 1471 (0x5bf), region = 44 }
 0x5b3   : > { %v1998_v14 = vpop.f32.mrf.mxu1 }
 0x5b4   : > { %v2010_v32 = vadd.f32 %v1998_v14, %v1927_v55 }
 0x5b6   : > { %2013 = vst [vmem:[#allocation2] sm:$0xff] %v2010_v32 }
 0x5b7   : > { %v2021_v18 = vld [vmem:[#allocation2 + $0x8] sm:$0xf] }
 0x5b8   : > { %2024 = vst [vmem:[%s3234_s19 + $0x10] sm:$0xf] %v2021_v18 }
 0x5b9   : > { %v2019_v27 = vld [vmem:[#allocation2 + $0x10] sm:$0xff] }
 0x5ba   : > { %2022 = vst [vmem:[%s3234_s19] sm:$0xff] %v2019_v27 }
 0x5bd   : > { %v2020_v61 = vld [vmem:[#allocation2] sm:$0xff] }
 0x5be   : > { %2023 = vst [vmem:[%s3234_s19 + $0x8] sm:$0xff] %v2020_v61 }
 0x5bf PF: > { %2044 = sbr.rel (!%p3201_p5) target bundleno = 1491 (0x5d3), region = 48  ;;  %s2622_s23 = sshll.u32 (%p3201_p5), %s3083_s25, 7  ;;  %v2141_v48 = vld [vmem:[%s3236_s22] sm:$0xff] (%p3201_p5)  ;;  %v2143_v57 = vld [vmem:[%s3236_s22 + $0x8] sm:$0xff] (%p3201_p5)  ;;  %v2145_v44 = vld [vmem:[%s3236_s22 + $0x10] sm:$0xff] (%p3201_p5) }
 0x5c0   : > { %s2048_s19 = sadd.s32 (%p3201_p5), %s2622_s23, %s3218_s12  ;;  %v2147_v30 = vld [vmem:[%s3236_s22 + $0x18] sm:$0xff] (%p3201_p5)  ;;  %v2149_v9 = vld [vmem:[%s3236_s22 + $0x20] sm:$0xff] (%p3201_p5)  ;;  %v2151_v39 = vld [vmem:[%s3236_s22 + $0x28] sm:$0xff] (%p3201_p5) }
 0x5c1   : > { %s2623_s16 = sshll.u32 (%p3201_p5), %s2048_s19, 3  ;;  %v2153_v22 = vld [vmem:[%s3236_s22 + $0x30] sm:$0xff] (%p3201_p5)  ;;  %v2155_v34 = vld [vmem:[%s3236_s22 + $0x38] sm:$0xff] (%p3201_p5)  ;;  %v2157_v24 = vld [vmem:[%s3236_s22 + $0x40] sm:$0xff] (%p3201_p5) }
 0x5c2   : > { %s4388_s21 = scalar_lea.vmem (%p3201_p5), %s4549_s4, %s2623_s16  ;;  %v2159_v8 = vld [vmem:[%s3236_s22 + $0x48] sm:$0xff] (%p3201_p5)  ;;  %v2161_v29 = vld [vmem:[%s3236_s22 + $0x50] sm:$0xff] (%p3201_p5)  ;;  %v2163_v5 = vld [vmem:[%s3236_s22 + $0x58] sm:$0xff] (%p3201_p5) }
 0x5c3   : > { %2142 = vst [vmem:[%s4388_s21] sm:$0xff] (%p3201_p5), %v2141_v48  ;;  %2144 = vst [vmem:[%s4388_s21 + $0x20] sm:$0xff] (%p3201_p5), %v2143_v57  ;;  %v2165_v19 = vld [vmem:[%s3236_s22 + $0x60] sm:$0xff] (%p3201_p5)  ;;  %v2167_v6 = vld [vmem:[%s3236_s22 + $0x68] sm:$0xff] (%p3201_p5) }
 0x5c4   : > { %2146 = vst [vmem:[%s4388_s21 + $0x40] sm:$0xff] %v2145_v44  ;;  %2148 = vst [vmem:[%s4388_s21 + $0x60] sm:$0xff] %v2147_v30  ;;  %v2169_v0 = vld [vmem:[%s3236_s22 + $0x70] sm:$0xff]  ;;  %v2171_v21 = vld [vmem:[%s3236_s22 + $0x78] sm:$0xff] }
 0x5c5   : > { %2150 = vst [vmem:[%s4388_s21 + $0x80] sm:$0xff] %v2149_v9  ;;  %2152 = vst [vmem:[%s4388_s21 + $0xa0] sm:$0xff] %v2151_v39  ;;  %v2173_v4 = vld [vmem:[%s3236_s22 + $0x80] sm:$0xff]  ;;  %v2175_v23 = vld [vmem:[%s3236_s22 + $0x88] sm:$0xff] }
 0x5c6   : > { %2154 = vst [vmem:[%s4388_s21 + $0xc0] sm:$0xff] %v2153_v22  ;;  %2156 = vst [vmem:[%s4388_s21 + $0xe0] sm:$0xff] %v2155_v34  ;;  %v2177_v45 = vld [vmem:[%s3236_s22 + $0x90] sm:$0xff]  ;;  %v2179_v11 = vld [vmem:[%s3236_s22 + $0x98] sm:$0xff] }
 0x5c7   : > { %2158 = vst [vmem:[%s4388_s21 + $0x100] sm:$0xff] %v2157_v24  ;;  %2160 = vst [vmem:[%s4388_s21 + $0x120] sm:$0xff] %v2159_v8  ;;  %v2181_v49 = vld [vmem:[%s3236_s22 + $0xa0] sm:$0xff]  ;;  %v2183_v28 = vld [vmem:[%s3236_s22 + $0xa8] sm:$0xff] }
 0x5c8   : > { %2162 = vst [vmem:[%s4388_s21 + $0x140] sm:$0xff] %v2161_v29  ;;  %2164 = vst [vmem:[%s4388_s21 + $0x160] sm:$0xff] %v2163_v5  ;;  %v2185_v17 = vld [vmem:[%s3236_s22 + $0xb0] sm:$0xff]  ;;  %v2187_v53 = vld [vmem:[%s3236_s22 + $0xb8] sm:$0xff] }
 0x5c9   : > { %2166 = vst [vmem:[%s4388_s21 + $0x180] sm:$0xff] %v2165_v19  ;;  %2168 = vst [vmem:[%s4388_s21 + $0x1a0] sm:$0xff] %v2167_v6  ;;  %v2189_v12 = vld [vmem:[%s3236_s22 + $0xc0] sm:$0xff]  ;;  %v2191_v31 = vld [vmem:[%s3236_s22 + $0xc8] sm:$0xff] }
 0x5ca   : > { %2170 = vst [vmem:[%s4388_s21 + $0x1c0] sm:$0xff] %v2169_v0  ;;  %2172 = vst [vmem:[%s4388_s21 + $0x1e0] sm:$0xff] %v2171_v21  ;;  %v2193_v1 = vld [vmem:[%s3236_s22 + $0xd0] sm:$0xff]  ;;  %v2195_v54 = vld [vmem:[%s3236_s22 + $0xd8] sm:$0xff] }
 0x5cb   : > { %2174 = vst [vmem:[%s4388_s21 + $0x200] sm:$0xff] %v2173_v4  ;;  %2176 = vst [vmem:[%s4388_s21 + $0x220] sm:$0xff] %v2175_v23  ;;  %v2197_v51 = vld [vmem:[%s3236_s22 + $0xe0] sm:$0xff]  ;;  %v2199_v38 = vld [vmem:[%s3236_s22 + $0xe8] sm:$0xff] }
 0x5cc   : > { %2178 = vst [vmem:[%s4388_s21 + $0x240] sm:$0xff] %v2177_v45  ;;  %2180 = vst [vmem:[%s4388_s21 + $0x260] sm:$0xff] %v2179_v11  ;;  %v2201_v47 = vld [vmem:[%s3236_s22 + $0xf0] sm:$0xff]  ;;  %v2203_v62 = vld [vmem:[%s3236_s22 + $0xf8] sm:$0xff] }
 0x5cd   : > { %2182 = vst [vmem:[%s4388_s21 + $0x280] sm:$0xff] %v2181_v49  ;;  %2184 = vst [vmem:[%s4388_s21 + $0x2a0] sm:$0xff] %v2183_v28 }
 0x5ce   : > { %2186 = vst [vmem:[%s4388_s21 + $0x2c0] sm:$0xff] %v2185_v17  ;;  %2188 = vst [vmem:[%s4388_s21 + $0x2e0] sm:$0xff] %v2187_v53 }
 0x5cf   : > { %2190 = vst [vmem:[%s4388_s21 + $0x300] sm:$0xff] %v2189_v12  ;;  %2192 = vst [vmem:[%s4388_s21 + $0x320] sm:$0xff] %v2191_v31 }
 0x5d0   : > { %2194 = vst [vmem:[%s4388_s21 + $0x340] sm:$0xff] %v2193_v1  ;;  %2196 = vst [vmem:[%s4388_s21 + $0x360] sm:$0xff] %v2195_v54 }
 0x5d1   : > { %2198 = vst [vmem:[%s4388_s21 + $0x380] sm:$0xff] %v2197_v51  ;;  %2200 = vst [vmem:[%s4388_s21 + $0x3a0] sm:$0xff] %v2199_v38 }
 0x5d2   : > { %2202 = vst [vmem:[%s4388_s21 + $0x3c0] sm:$0xff] %v2201_v47  ;;  %2204 = vst [vmem:[%s4388_s21 + $0x3e0] sm:$0xff] %v2203_v62 }
 0x5d3 PF: > { %2210 = sbr.rel (!%p3201_p5) target bundleno = 1514 (0x5ea), region = 86  ;;  %s2625_s20 = sshll.u32 (%p3201_p5), %s3083_s25, 7  ;;  %v2233_v50 = vld [vmem:[%s3238_s29] sm:$0xf] (%p3201_p5)  ;;  %v2235_v20 = vld [vmem:[%s3238_s29 + $0x4] sm:$0xf] (%p3201_p5) }
 0x5d4   : > { %s2214_s22 = sadd.s32 (%p3201_p5), %s2625_s20, %s3218_s12  ;;  %v2237_v35 = vld [vmem:[%s3238_s29 + $0x8] sm:$0xf] (%p3201_p5)  ;;  %v2239_v52 = vld [vmem:[%s3238_s29 + $0xc] sm:$0xf] (%p3201_p5)  ;;  %v2241_v36 = vld [vmem:[%s3238_s29 + $0x10] sm:$0xf] (%p3201_p5) }
 0x5d5   : > { %s2626_s13 = sshll.u32 (%p3201_p5), %s2214_s22, 2  ;;  %v2243_v58 = vld [vmem:[%s3238_s29 + $0x14] sm:$0xf] (%p3201_p5)  ;;  %v2245_v26 = vld [vmem:[%s3238_s29 + $0x18] sm:$0xf] (%p3201_p5) }
 0x5d6   : > { %s4459_s7 = scalar_lea.vmem (%p3201_p5), %s4550_s5, %s2626_s13  ;;  %v2247_v3 = vld [vmem:[%s3238_s29 + $0x1c] sm:$0xf] (%p3201_p5)  ;;  %v2249_v16 = vld [vmem:[%s3238_s29 + $0x20] sm:$0xf] (%p3201_p5)  ;;  %v2251_v63 = vld [vmem:[%s3238_s29 + $0x24] sm:$0xf] (%p3201_p5) }
 0x5d7   : > { %2234 = vst [vmem:[%s4459_s7] sm:$0xf] (%p3201_p5), %v2233_v50  ;;  %2236 = vst [vmem:[%s4459_s7 + $0x10] sm:$0xf] (%p3201_p5), %v2235_v20  ;;  %v2253_v13 = vld [vmem:[%s3238_s29 + $0x28] sm:$0xf] (%p3201_p5) }
 0x5d8   : > { %2238 = vst [vmem:[%s4459_s7 + $0x20] sm:$0xf] %v2237_v35  ;;  %2240 = vst [vmem:[%s4459_s7 + $0x30] sm:$0xf] %v2239_v52  ;;  %v2255_v60 = vld [vmem:[%s3238_s29 + $0x2c] sm:$0xf] }
 0x5d9   : > { %2242 = vst [vmem:[%s4459_s7 + $0x40] sm:$0xf] %v2241_v36  ;;  %2244 = vst [vmem:[%s4459_s7 + $0x50] sm:$0xf] %v2243_v58  ;;  %v2257_v37 = vld [vmem:[%s3238_s29 + $0x30] sm:$0xf] }
 0x5da   : > { %2246 = vst [vmem:[%s4459_s7 + $0x60] sm:$0xf] %v2245_v26  ;;  %2248 = vst [vmem:[%s4459_s7 + $0x70] sm:$0xf] %v2247_v3  ;;  %v2259_v33 = vld [vmem:[%s3238_s29 + $0x34] sm:$0xf] }
 0x5db   : > { %2250 = vst [vmem:[%s4459_s7 + $0x80] sm:$0xf] %v2249_v16  ;;  %2252 = vst [vmem:[%s4459_s7 + $0x90] sm:$0xf] %v2251_v63  ;;  %v2261_v41 = vld [vmem:[%s3238_s29 + $0x38] sm:$0xf] }
 0x5dc   : > { %2254 = vst [vmem:[%s4459_s7 + $0xa0] sm:$0xf] %v2253_v13  ;;  %2256 = vst [vmem:[%s4459_s7 + $0xb0] sm:$0xf] %v2255_v60  ;;  %v2263_v2 = vld [vmem:[%s3238_s29 + $0x3c] sm:$0xf] }
 0x5dd   : > { %2258 = vst [vmem:[%s4459_s7 + $0xc0] sm:$0xf] %v2257_v37  ;;  %2260 = vst [vmem:[%s4459_s7 + $0xd0] sm:$0xf] %v2259_v33  ;;  %v2265_v56 = vld [vmem:[%s3238_s29 + $0x40] sm:$0xf] }
 0x5de   : > { %2262 = vst [vmem:[%s4459_s7 + $0xe0] sm:$0xf] %v2261_v41  ;;  %2264 = vst [vmem:[%s4459_s7 + $0xf0] sm:$0xf] %v2263_v2  ;;  %v2267_v40 = vld [vmem:[%s3238_s29 + $0x44] sm:$0xf] }
 0x5df   : > { %v2269_v7 = vld [vmem:[%s3238_s29 + $0x48] sm:$0xf]  ;;  %2266 = vst [vmem:[%s4459_s7 + $0x100] sm:$0xf] %v2265_v56  ;;  %2268 = vst [vmem:[%s4459_s7 + $0x110] sm:$0xf] %v2267_v40 }
 0x5e0   : > { %2270 = vst [vmem:[%s4459_s7 + $0x120] sm:$0xf] %v2269_v7  ;;  %v2271_v15 = vld [vmem:[%s3238_s29 + $0x4c] sm:$0xf]  ;;  %v2273_v59 = vld [vmem:[%s3238_s29 + $0x50] sm:$0xf] }
 0x5e1   : > { %v2275_v46 = vld [vmem:[%s3238_s29 + $0x54] sm:$0xf]  ;;  %2272 = vst [vmem:[%s4459_s7 + $0x130] sm:$0xf] %v2271_v15  ;;  %2274 = vst [vmem:[%s4459_s7 + $0x140] sm:$0xf] %v2273_v59 }
 0x5e2   : > { %2276 = vst [vmem:[%s4459_s7 + $0x150] sm:$0xf] %v2275_v46  ;;  %v2277_v42 = vld [vmem:[%s3238_s29 + $0x58] sm:$0xf]  ;;  %v2279_v43 = vld [vmem:[%s3238_s29 + $0x5c] sm:$0xf] }
 0x5e3   : > { %v2281_v25 = vld [vmem:[%s3238_s29 + $0x60] sm:$0xf]  ;;  %2278 = vst [vmem:[%s4459_s7 + $0x160] sm:$0xf] %v2277_v42  ;;  %2280 = vst [vmem:[%s4459_s7 + $0x170] sm:$0xf] %v2279_v43 }
 0x5e4   : > { %2282 = vst [vmem:[%s4459_s7 + $0x180] sm:$0xf] %v2281_v25  ;;  %v2283_v10 = vld [vmem:[%s3238_s29 + $0x64] sm:$0xf]  ;;  %v2285_v55 = vld [vmem:[%s3238_s29 + $0x68] sm:$0xf] }
 0x5e5   : > { %v2287_v14 = vld [vmem:[%s3238_s29 + $0x6c] sm:$0xf]  ;;  %2284 = vst [vmem:[%s4459_s7 + $0x190] sm:$0xf] %v2283_v10  ;;  %2286 = vst [vmem:[%s4459_s7 + $0x1a0] sm:$0xf] %v2285_v55 }
 0x5e6   : > { %2288 = vst [vmem:[%s4459_s7 + $0x1b0] sm:$0xf] %v2287_v14  ;;  %v2289_v32 = vld [vmem:[%s3238_s29 + $0x70] sm:$0xf]  ;;  %v2291_v27 = vld [vmem:[%s3238_s29 + $0x74] sm:$0xf] }
 0x5e7   : > { %v2293_v61 = vld [vmem:[%s3238_s29 + $0x78] sm:$0xf]  ;;  %2290 = vst [vmem:[%s4459_s7 + $0x1c0] sm:$0xf] %v2289_v32  ;;  %2292 = vst [vmem:[%s4459_s7 + $0x1d0] sm:$0xf] %v2291_v27 }
 0x5e8   : > { %2294 = vst [vmem:[%s4459_s7 + $0x1e0] sm:$0xf] %v2293_v61  ;;  %v2295_v18 = vld [vmem:[%s3238_s29 + $0x7c] sm:$0xf] }
 0x5e9   : > { %2296 = vst [vmem:[%s4459_s7 + $0x1f0] sm:$0xf] %v2295_v18 }
 0x5ea PF: > { %s4593_s25 = sld [smem:[#allocation9_spill]] }
 0x5eb   : > { %s4594_s21 = sld [smem:[#allocation5_spill]] }
 0x5ec   : > { %s4595_s22 = sld [smem:[#allocation13_spill]] }
 0x5ed   : > { %s4596_s23 = sld [smem:[#allocation6_spill]] }
 0x5ee   : > { %s4597_s24 = sld [smem:[#allocation7_spill]] }
 0x5ef   : > { %s4599_s26 = sld [smem:[#allocation10_spill]] }
 0x5f0   : > { %s17_s29 = sadd.s32 1, %s4593_s25   ;;  %s4598_s25 = sld [smem:[#allocation8_spill]] }
 0x5f1   : > { %p14_p1 = scmp.ge.s32.totalorder %s17_s29, 10   ;;  %s4600_s27 = sld [smem:[#allocation11_spill]] }
 0x5f2   : > { %s4601_s28 = sld [smem:[#allocation12_spill]] }
 0x5f3   :  { %16 = sbr.rel (!%p14_p1) target bundleno = 5 (0x5), region = 177 }

// kernel: graphonomy_forward.6
= control target key start
LH: loop header
LB: loop body
LE: loop exit
PB: predicated region body
PF: predicated region fallthrough
CT: control target
= control target key end

     0   :  { %s2037_s18 = smov 0   ;;  %s2039_s19 = smov 0   ;;  %s2615_s0 = inlined_call_operand.vmem [shape: bf16[2,256,512], index: 0, kind: input, shape index: {}]   ;;  %s2616_s1 = inlined_call_operand.vmem [shape: bf16[256,256], index: 1, kind: input, shape index: {}]   ;;  %s2617_s2 = inlined_call_operand.vmem [shape: f32[256,1], index: 2, kind: input, shape index: {}]   ;;  %s2618_s3 = inlined_call_operand.vmem [shape: bf16[256,20], index: 3, kind: input, shape index: {}]   ;;  %s2619_s4 = inlined_call_operand.vmem [shape: f32[2,20,1], index: 4, kind: input, shape index: {}]   ;;  %s2620_s5 = inlined_call_operand.vmem [shape: f32[2,20,512], index: 5, kind: output, shape index: {}]  }
   0x1   :  { %s2041_s20 = smov 0   ;;  %s2043_s21 = smov 0  }
   0x2   :  { %s2045_s22 = smov 0   ;;  %s2047_s23 = smov 0  }
   0x3   :  { %s2049_s24 = smov 0  }
   0x4 LB: > { %s24_s25 = sadd.s32 1, %s1996_s22  ;;  %s27_s26 = sadd.s32 1, %s2000_s23  ;;  %s2004_s24 = sphi %s2049_s24, %s15_s24   ;;  %s2000_s23 = sphi %s2047_s23, %s2677_s23   ;;  %s1996_s22 = sphi %s2045_s22, %s2676_s22   ;;  %s1992_s21 = sphi %s2043_s21, %s2675_s21   ;;  %s1988_s20 = sphi %s2041_s20, %s2674_s20   ;;  %s1984_s19 = sphi %s2039_s19, %s2673_s19   ;;  %s1980_s18 = sphi %s2037_s18, %s2672_s18  }
   0x5   : > { %p25_p0 = scmp.ge.s32.totalorder %s24_s25, 4  ;;  %s1575_s27 = sadd.s32 4294967295, %s2004_s24  }
   0x6   : > { %p43_p1 = scmp.ne.s32.totalorder %s1984_s19, %s1980_s18  ;;  %p44_p2 = scmp.eq.s32.totalorder %s2004_s24, 0 }
   0x7   : > { %s2679_s25 = smov (%p25_p0, %s24_s25), 0  ;;  %s2681_s26 = smov (!%p25_p0, %s27_s26), %s2000_s23 }
   0x8   : > { %p29_p3 = scmp.ge.s32.totalorder %s2681_s26, 2  ;;  %p164_p4 = scmp.eq.s32.totalorder %s1575_s27, 7 }
   0x9   : > { %s32_s28 = ssub.s32 %s1996_s22, %s2679_s25  ;;  %p45_p5 = por %p44_p2, %p43_p1 }
   0xa   : > { %s2683_s26 = smov (%p29_p3, %s2681_s26), 0  ;;  %p2085_p6 = por %p164_p4, %p43_p1 }
   0xb   : > { %s31_s30 = ssub.s32 %s2000_s23, %s2683_s26  ;;  %s36_s7 = sadd.s32 1, %s1984_s19 }
   0xc   : > { %s33_s6 = sor.u32 %s32_s28, %s31_s30  ;;  %p1578_p8 = scmp.ge.s32.totalorder %s2004_s24, 8 }
   0xd   : > { %p34_p7 = scmp.eq.s32.totalorder %s33_s6, 0 }
   0xe   : > { %195 = sbr.rel (%p1578_p8) target bundleno = 46 (0x2e), region = 28 }
   0xf   : > { %s2093_s8 = scalar_select %p34_p7, %s1984_s19, %s36_s7  }
  0x13   : > { %198 = sbr.rel (!%p45_p5) target bundleno = 46 (0x2e), region = 32  ;;  %s200_s9 = sand.u32 (%p45_p5), 1, %s1984_s19  }
  0x14   : > { %s1580_s10 = sshll.u32 (%p45_p5), %s2000_s23, 7  ;;  %s1579_s11 = sshll.u32 (%p45_p5), %s200_s9, 7 }
  0x15   : > { %s204_s12 = sadd.s32 (%p45_p5), %s1996_s22, %s1580_s10  ;;  %s2107_s17 = scalar_lea.vmem (%p45_p5), [#allocation2], %s1579_s11 }
  0x16   : > { %s1581_s13 = sshll.u32 (%p45_p5), %s204_s12, 2 }
  0x17   : > { %s2102_s16 = scalar_lea.vmem (%p45_p5), %s2615_s0, %s1581_s13 }
  0x18   : > { %v223_v0 = vld [vmem:[%s2102_s16] sm:$0xf]  ;;  %v225_v1 = vld [vmem:[%s2102_s16 + $0x10] sm:$0xf] }
  0x19   : > { %v227_v2 = vld [vmem:[%s2102_s16 + $0x20] sm:$0xf]  ;;  %224 = vst [vmem:[%s2107_s17] sm:$0xf] %v223_v0  ;;  %226 = vst [vmem:[%s2107_s17 + $0x4] sm:$0xf] %v225_v1 }
  0x1a   : > { %228 = vst [vmem:[%s2107_s17 + $0x8] sm:$0xf] %v227_v2  ;;  %v229_v3 = vld [vmem:[%s2102_s16 + $0x30] sm:$0xf]  ;;  %v231_v4 = vld [vmem:[%s2102_s16 + $0x40] sm:$0xf] }
  0x1b   : > { %v233_v5 = vld [vmem:[%s2102_s16 + $0x50] sm:$0xf]  ;;  %230 = vst [vmem:[%s2107_s17 + $0xc] sm:$0xf] %v229_v3  ;;  %232 = vst [vmem:[%s2107_s17 + $0x10] sm:$0xf] %v231_v4 }
  0x1c   : > { %234 = vst [vmem:[%s2107_s17 + $0x14] sm:$0xf] %v233_v5  ;;  %v235_v6 = vld [vmem:[%s2102_s16 + $0x60] sm:$0xf]  ;;  %v237_v7 = vld [vmem:[%s2102_s16 + $0x70] sm:$0xf] }
  0x1d   : > { %v239_v8 = vld [vmem:[%s2102_s16 + $0x80] sm:$0xf]  ;;  %236 = vst [vmem:[%s2107_s17 + $0x18] sm:$0xf] %v235_v6  ;;  %238 = vst [vmem:[%s2107_s17 + $0x1c] sm:$0xf] %v237_v7 }
  0x1e   : > { %240 = vst [vmem:[%s2107_s17 + $0x20] sm:$0xf] %v239_v8  ;;  %v241_v9 = vld [vmem:[%s2102_s16 + $0x90] sm:$0xf]  ;;  %v243_v10 = vld [vmem:[%s2102_s16 + $0xa0] sm:$0xf] }
  0x1f   : > { %v245_v11 = vld [vmem:[%s2102_s16 + $0xb0] sm:$0xf]  ;;  %242 = vst [vmem:[%s2107_s17 + $0x24] sm:$0xf] %v241_v9  ;;  %244 = vst [vmem:[%s2107_s17 + $0x28] sm:$0xf] %v243_v10 }
  0x20   : > { %246 = vst [vmem:[%s2107_s17 + $0x2c] sm:$0xf] %v245_v11  ;;  %v247_v12 = vld [vmem:[%s2102_s16 + $0xc0] sm:$0xf]  ;;  %v249_v13 = vld [vmem:[%s2102_s16 + $0xd0] sm:$0xf] }
  0x21   : > { %v251_v14 = vld [vmem:[%s2102_s16 + $0xe0] sm:$0xf]  ;;  %248 = vst [vmem:[%s2107_s17 + $0x30] sm:$0xf] %v247_v12  ;;  %250 = vst [vmem:[%s2107_s17 + $0x34] sm:$0xf] %v249_v13 }
  0x22   : > { %252 = vst [vmem:[%s2107_s17 + $0x38] sm:$0xf] %v251_v14  ;;  %v253_v15 = vld [vmem:[%s2102_s16 + $0xf0] sm:$0xf]  ;;  %v255_v16 = vld [vmem:[%s2102_s16 + $0x100] sm:$0xf] }
  0x23   : > { %v257_v17 = vld [vmem:[%s2102_s16 + $0x110] sm:$0xf]  ;;  %254 = vst [vmem:[%s2107_s17 + $0x3c] sm:$0xf] %v253_v15  ;;  %256 = vst [vmem:[%s2107_s17 + $0x40] sm:$0xf] %v255_v16 }
  0x24   : > { %258 = vst [vmem:[%s2107_s17 + $0x44] sm:$0xf] %v257_v17  ;;  %v259_v18 = vld [vmem:[%s2102_s16 + $0x120] sm:$0xf]  ;;  %v261_v19 = vld [vmem:[%s2102_s16 + $0x130] sm:$0xf] }
  0x25   : > { %v263_v20 = vld [vmem:[%s2102_s16 + $0x140] sm:$0xf]  ;;  %260 = vst [vmem:[%s2107_s17 + $0x48] sm:$0xf] %v259_v18  ;;  %262 = vst [vmem:[%s2107_s17 + $0x4c] sm:$0xf] %v261_v19 }
  0x26   : > { %264 = vst [vmem:[%s2107_s17 + $0x50] sm:$0xf] %v263_v20  ;;  %v265_v21 = vld [vmem:[%s2102_s16 + $0x150] sm:$0xf]  ;;  %v267_v22 = vld [vmem:[%s2102_s16 + $0x160] sm:$0xf] }
  0x27   : > { %v269_v23 = vld [vmem:[%s2102_s16 + $0x170] sm:$0xf]  ;;  %266 = vst [vmem:[%s2107_s17 + $0x54] sm:$0xf] %v265_v21  ;;  %268 = vst [vmem:[%s2107_s17 + $0x58] sm:$0xf] %v267_v22 }
  0x28   : > { %270 = vst [vmem:[%s2107_s17 + $0x5c] sm:$0xf] %v269_v23  ;;  %v271_v24 = vld [vmem:[%s2102_s16 + $0x180] sm:$0xf]  ;;  %v273_v25 = vld [vmem:[%s2102_s16 + $0x190] sm:$0xf] }
  0x29   : > { %v275_v26 = vld [vmem:[%s2102_s16 + $0x1a0] sm:$0xf]  ;;  %272 = vst [vmem:[%s2107_s17 + $0x60] sm:$0xf] %v271_v24  ;;  %274 = vst [vmem:[%s2107_s17 + $0x64] sm:$0xf] %v273_v25 }
  0x2a   : > { %276 = vst [vmem:[%s2107_s17 + $0x68] sm:$0xf] %v275_v26  ;;  %v277_v27 = vld [vmem:[%s2102_s16 + $0x1b0] sm:$0xf]  ;;  %v279_v28 = vld [vmem:[%s2102_s16 + $0x1c0] sm:$0xf] }
  0x2b   : > { %v281_v29 = vld [vmem:[%s2102_s16 + $0x1d0] sm:$0xf]  ;;  %278 = vst [vmem:[%s2107_s17 + $0x6c] sm:$0xf] %v277_v27  ;;  %280 = vst [vmem:[%s2107_s17 + $0x70] sm:$0xf] %v279_v28 }
  0x2c   : > { %282 = vst [vmem:[%s2107_s17 + $0x74] sm:$0xf] %v281_v29  ;;  %v283_v30 = vld [vmem:[%s2102_s16 + $0x1e0] sm:$0xf]  ;;  %v285_v31 = vld [vmem:[%s2102_s16 + $0x1f0] sm:$0xf] }
  0x2d   : > { %284 = vst [vmem:[%s2107_s17 + $0x78] sm:$0xf] %v283_v30  ;;  %286 = vst [vmem:[%s2107_s17 + $0x7c] sm:$0xf] %v285_v31 }
  0x2e PF: > { %p1582_p9 = scmp.ge.s32.totalorder %s2004_s24, 1  ;;  %p381_p10 = scmp.lt.s32.totalorder %s2004_s24, 9 }
  0x30   : > { %p382_p11 = pnand %p1582_p9, %p381_p10 }
  0x32   : > { %385 = sbr.rel (%p382_p11) target bundleno = 695 (0x2b7), region = 77 }
  0x37   : > { %v1870_v32 = vld [vmem:[%s2616_s1 + $0x80] ss:$8 sps:$4 sm:$0xff]   ;;  %v1874_v34 = vld [vmem:[%s2616_s1 + $0x90] ss:$8 sps:$4 sm:$0xff]   ;;  %s388_s30 = sand.u32 1, %s1980_s18   ;;  %v2006_v17 = vmov 0  }
  0x38   : > { %v1872_v33 = vld [vmem:[%s2616_s1] ss:$8 sps:$4 sm:$0xff]   ;;  %873 = vxpose.xlu0.c.b16.start [1/8] %v1870_v32, 128  ;;  %v1877_v35 = vld [vmem:[%s2616_s1 + $0x10] ss:$8 sps:$4 sm:$0xff]   ;;  %s1583_s11 = sshll.u32 %s388_s30, 7  ;;  %p419_p12 = scmp.lt.s32.totalorder %s1992_s21, 1 }
  0x39   : > { %841 = vxpose.xlu1.c.b16.start [1/8] %v1872_v33, 128  ;;  %v1880_v36 = vld [vmem:[%s2616_s1 + $0xa0] ss:$8 sps:$4 sm:$0xff]   ;;  %v1886_v38 = vld [vmem:[%s2616_s1 + $0xb0] ss:$8 sps:$4 sm:$0xff]   ;;  %s2217_s6 = scalar_lea.vmem [#allocation2], %s1583_s11  ;;  %s1808_s16 = smul.u32 24, %s388_s30 }
  0x3a   : > { %v1883_v37 = vld [vmem:[%s2616_s1 + $0x20] ss:$8 sps:$4 sm:$0xff]   ;;  %v1889_v39 = vld [vmem:[%s2616_s1 + $0x30] ss:$8 sps:$4 sm:$0xff]   ;;  %v1916_v53 = vld [vmem:[%s2616_s1 + $0x84] ss:$8 sps:$4 sm:$0xff]  }
  0x3b   : > { %v1892_v40 = vld [vmem:[%s2616_s1 + $0xc0] ss:$8 sps:$4 sm:$0xff]   ;;  %v1898_v42 = vld [vmem:[%s2616_s1 + $0xd0] ss:$8 sps:$4 sm:$0xff]   ;;  %v1917_v56 = vld [vmem:[%s2616_s1 + $0x4] ss:$8 sps:$4 sm:$0xff]  }
  0x3c   : > { %874 = vxpose.xlu0.c.b16.cont [2/8] %v1874_v34, 128  ;;  %v1895_v41 = vld [vmem:[%s2616_s1 + $0x40] ss:$8 sps:$4 sm:$0xff]   ;;  %v1901_v43 = vld [vmem:[%s2616_s1 + $0x50] ss:$8 sps:$4 sm:$0xff]   ;;  %v1876_v57 = vld [vmem:[%s2616_s1 + $0x94] ss:$8 sps:$4 sm:$0xff]  }
  0x3d   : > { %842 = vxpose.xlu1.c.b16.cont [2/8] %v1877_v35, 128  ;;  %v1904_v44 = vld [vmem:[%s2616_s1 + $0xe0] ss:$8 sps:$4 sm:$0xff]   ;;  %v1918_v46 = vld [vmem:[%s2217_s6 + $0x78] sm:$0xff]   ;;  %v1920_v49 = vld [vmem:[%s2217_s6 + $0x70] sm:$0xff]   ;;  %s420_s7 = scalar_select %p419_p12, %s1992_s21, 1 }
  0x3e   : > { %v1907_v45 = vld [vmem:[%s2616_s1 + $0x60] ss:$8 sps:$4 sm:$0xff]   ;;  %v1919_v47 = vld [vmem:[%s2217_s6 + $0x38] sm:$0xff]   ;;  %1652 = vmatprep.subr.bf16.mxu0 %v1918_v46  ;;  %1792 = vmatprep.subr.bf16.mxu1 %v1918_v46  ;;  %v1921_v50 = vld [vmem:[%s2217_s6 + $0x30] sm:$0xff]   ;;  %s418_s17 = scalar_lea.vmem [#allocation3], %s1808_s16  ;;  %s1810_s18 = smul.u32 (%p2085_p6), 12, %s1992_s21 }
  0x3f   : > { %v1910_v48 = vld [vmem:[%s2616_s1 + $0xf0] ss:$8 sps:$4 sm:$0xff]   ;;  %1653 = vmatpush3.bf16.msra.mxu0 %v1919_v47  ;;  %1800 = vmatpush3.bf16.msra.mxu1 %v1919_v47  ;;  %v1922_v51 = vld [vmem:[%s2217_s6 + $0x68] sm:$0xff]   ;;  %v1924_v55 = vld [vmem:[%s2217_s6 + $0x60] sm:$0xff]   ;;  %s1809_s11 = smul.u32 24, %s420_s7 }
  0x40   : > { %875 = vxpose.xlu0.c.b16.cont [3/8] %v1880_v36, 128  ;;  %1654 = vmatprep.subr.bf16.mxu0 %v1920_v49  ;;  %v1913_v52 = vld [vmem:[%s2616_s1 + $0x70] ss:$8 sps:$4 sm:$0xff]   ;;  %v1923_v54 = vld [vmem:[%s2217_s6 + $0x28] sm:$0xff]   ;;  %v1925_v58 = vld [vmem:[%s2217_s6 + $0x20] sm:$0xff]   ;;  %s1447_s30 = sadd.s32 (%p2085_p6), %s1988_s20, %s1810_s18 }
  0x41   : > { %843 = vxpose.xlu1.c.b16.cont [3/8] %v1883_v37, 128  ;;  %1793 = vmatprep.subr.bf16.mxu1 %v1920_v49  ;;  %v1926_v59 = vld [vmem:[%s2217_s6 + $0x58] sm:$0xff]   ;;  %v1882_v62 = vld [vmem:[%s2616_s1 + $0xa4] ss:$8 sps:$4 sm:$0xff]   ;;  %v1928_v63 = vld [vmem:[%s2217_s6 + $0x50] sm:$0xff]   ;;  %s423_s15 = scalar_lea.vmem %s2619_s4, %s1809_s11  ;;  %s1649_s27 = sshll.u32 (%p2085_p6), %s1447_s30, 3 }
  0x42   : > { %v1879_v60 = vld [vmem:[%s2616_s1 + $0x14] ss:$8 sps:$4 sm:$0xff]   ;;  %v1885_v0 = vld [vmem:[%s2616_s1 + $0x24] ss:$8 sps:$4 sm:$0xff]   ;;  %s1449_s9 = scalar_lea.vmem (%p2085_p6), %s2620_s5, %s1649_s27 }
  0x43   : > { %1655 = vmatpush3.bf16.msra.mxu0 %v1921_v50  ;;  %1801 = vmatpush3.bf16.msra.mxu1 %v1921_v50  ;;  %v1927_v61 = vld [vmem:[%s2217_s6 + $0x18] sm:$0xff]   ;;  %v1929_v1 = vld [vmem:[%s2217_s6 + $0x10] sm:$0xff]   ;;  %v1930_v3 = vld [vmem:[%s2217_s6 + $0x48] sm:$0xff]  }
  0x44   : > { %876 = vxpose.xlu0.c.b16.cont [4/8] %v1886_v38, 128  ;;  %1656 = vmatprep.subr.bf16.mxu0 %v1922_v51  ;;  %v1888_v2 = vld [vmem:[%s2616_s1 + $0xb4] ss:$8 sps:$4 sm:$0xff]   ;;  %v1931_v5 = vld [vmem:[%s2217_s6 + $0x8] sm:$0xff]   ;;  %v1932_v7 = vld [vmem:[%s2217_s6 + $0x40] sm:$0xff]  }
  0x45   : > { %844 = vxpose.xlu1.c.b16.cont [4/8] %v1889_v39, 128  ;;  %1794 = vmatprep.subr.bf16.mxu1 %v1922_v51  ;;  %v1891_v4 = vld [vmem:[%s2616_s1 + $0x34] ss:$8 sps:$4 sm:$0xff]   ;;  %v1894_v6 = vld [vmem:[%s2616_s1 + $0xc4] ss:$8 sps:$4 sm:$0xff]  }
  0x46   : > { %v1897_v8 = vld [vmem:[%s2616_s1 + $0x44] ss:$8 sps:$4 sm:$0xff]   ;;  %v1900_v10 = vld [vmem:[%s2616_s1 + $0xd4] ss:$8 sps:$4 sm:$0xff]  }
  0x47   : > { %1657 = vmatpush3.bf16.msra.mxu0 %v1923_v54  ;;  %1802 = vmatpush3.bf16.msra.mxu1 %v1923_v54  ;;  %v1933_v9 = vld [vmem:[%s2217_s6] sm:$0xff]   ;;  %v1903_v11 = vld [vmem:[%s2616_s1 + $0x54] ss:$8 sps:$4 sm:$0xff]   ;;  %v518_v23 = vld [vmem:[%s2617_s2 + $0xe8] sm:$0xff] }
  0x48   : > { %877 = vxpose.xlu0.c.b16.cont [5/8] %v1892_v40, 128  ;;  %1658 = vmatprep.subr.bf16.mxu0 %v1924_v55  ;;  %v1906_v12 = vld [vmem:[%s2616_s1 + $0xe4] ss:$8 sps:$4 sm:$0xff]   ;;  %v1912_v14 = vld [vmem:[%s2616_s1 + $0xf4] ss:$8 sps:$4 sm:$0xff]  }
  0x49   : > { %845 = vxpose.xlu1.c.b16.cont [5/8] %v1895_v41, 128  ;;  %1795 = vmatprep.subr.bf16.mxu1 %v1924_v55  ;;  %v1909_v13 = vld [vmem:[%s2616_s1 + $0x64] ss:$8 sps:$4 sm:$0xff]   ;;  %v1915_v15 = vld [vmem:[%s2616_s1 + $0x74] ss:$8 sps:$4 sm:$0xff]  }
  0x4a   : > { %v520_v16 = vld [vmem:[%s2617_s2 + $0xf8] sm:$0xff]  ;;  %v519_v18 = vld [vmem:[%s2617_s2 + $0xf0] sm:$0xff]  ;;  %v517_v20 = vld [vmem:[%s2617_s2 + $0xe0] sm:$0xff] }
  0x4b   : > { %1659 = vmatpush3.bf16.msra.mxu0 %v1925_v58  ;;  %1803 = vmatpush3.bf16.msra.mxu1 %v1925_v58  ;;  %v503_v19 = vld [vmem:[%s2617_s2 + $0x70] sm:$0xff]  ;;  %v504_v21 = vld [vmem:[%s2617_s2 + $0x78] sm:$0xff]  ;;  %v501_v22 = vld [vmem:[%s2617_s2 + $0x60] sm:$0xff] }
  0x4c   : > { %878 = vxpose.xlu0.c.b16.cont [6/8] %v1898_v42, 128  ;;  %1660 = vmatprep.subr.bf16.mxu0 %v1926_v59  ;;  %v515_v24 = vld [vmem:[%s2617_s2 + $0xd0] sm:$0xff]  ;;  %v502_v25 = vld [vmem:[%s2617_s2 + $0x68] sm:$0xff]  ;;  %v516_v27 = vld [vmem:[%s2617_s2 + $0xd8] sm:$0xff] }
  0x4d   : > { %846 = vxpose.xlu1.c.b16.cont [6/8] %v1901_v43, 128  ;;  %1796 = vmatprep.subr.bf16.mxu1 %v1926_v59  ;;  %v499_v26 = vld [vmem:[%s2617_s2 + $0x50] sm:$0xff]  ;;  %v513_v28 = vld [vmem:[%s2617_s2 + $0xc0] sm:$0xff]  ;;  %v500_v29 = vld [vmem:[%s2617_s2 + $0x58] sm:$0xff] }
  0x4e   : > { %v497_v30 = vld [vmem:[%s2617_s2 + $0x40] sm:$0xff]  ;;  %v514_v31 = vld [vmem:[%s2617_s2 + $0xc8] sm:$0xff]  ;;  %v511_v32 = vld [vmem:[%s2617_s2 + $0xb0] sm:$0xff] }
  0x4f   : > { %1661 = vmatpush3.bf16.msra.mxu0 %v1927_v61  ;;  %1804 = vmatpush3.bf16.msra.mxu1 %v1927_v61  ;;  %v498_v33 = vld [vmem:[%s2617_s2 + $0x48] sm:$0xff]  ;;  %v495_v36 = vld [vmem:[%s2617_s2 + $0x30] sm:$0xff]  ;;  %v512_v37 = vld [vmem:[%s2617_s2 + $0xb8] sm:$0xff] }
  0x50   : > { %879 = vxpose.xlu0.c.b16.cont [7/8] %v1904_v44, 128  ;;  %1662 = vmatprep.subr.bf16.mxu0 %v1928_v63  ;;  %v509_v40 = vld [vmem:[%s2617_s2 + $0xa0] sm:$0xff]  ;;  %v496_v41 = vld [vmem:[%s2617_s2 + $0x38] sm:$0xff]  ;;  %v494_v49 = vld [vmem:[%s2617_s2 + $0x28] sm:$0xff] }
  0x51   : > { %847 = vxpose.xlu1.c.b16.cont [7/8] %v1907_v45, 128  ;;  %1797 = vmatprep.subr.bf16.mxu1 %v1928_v63  ;;  %v493_v44 = vld [vmem:[%s2617_s2 + $0x20] sm:$0xff]  ;;  %v510_v45 = vld [vmem:[%s2617_s2 + $0xa8] sm:$0xff] }
  0x52   : > { %v506_v61 = vld [vmem:[%s2617_s2 + $0x88] sm:$0xff] }
  0x53   : > { %1663 = vmatpush3.bf16.msra.mxu0 %v1929_v1  ;;  %1805 = vmatpush3.bf16.msra.mxu1 %v1929_v1 }
  0x54   : > { %880 = vxpose.xlu0.c.b16.end [8/8] %v1910_v48, 128  ;;  %1664 = vmatprep.subr.bf16.mxu0 %v1930_v3  ;;  %v507_v48 = vld [vmem:[%s2617_s2 + $0x90] sm:$0xff] }
  0x55   : > { %848 = vxpose.xlu1.c.b16.end [8/8] %v1913_v52, 128  ;;  %1798 = vmatprep.subr.bf16.mxu1 %v1930_v3  ;;  %v491_v52 = vld [vmem:[%s2617_s2 + $0x10] sm:$0xff] }
  0x57   : > { %1665 = vmatpush3.bf16.msra.mxu0 %v1931_v5  ;;  %1806 = vmatpush3.bf16.msra.mxu1 %v1931_v5 }
  0x58   : > { %889 = vxpose.xlu0.c.b16.start [1/8] %v1916_v53, 128  ;;  %1666 = vmatprep.subr.bf16.mxu0 %v1932_v7  ;;  %v508_v53 = vld [vmem:[%s2617_s2 + $0x98] sm:$0xff] }
  0x59   : > { %857 = vxpose.xlu1.c.b16.start [1/8] %v1917_v56, 128  ;;  %1799 = vmatprep.subr.bf16.mxu1 %v1932_v7  ;;  %v505_v56 = vld [vmem:[%s2617_s2 + $0x80] sm:$0xff] }
  0x5b   : > { %1667 = vmatpush3.bf16.msra.mxu0 %v1933_v9  ;;  %1807 = vmatpush3.bf16.msra.mxu1 %v1933_v9 }
  0x5c   : > { %890 = vxpose.xlu0.c.b16.cont [2/8] %v1876_v57, 128  ;;  %v492_v57 = vld [vmem:[%s2617_s2 + $0x18] sm:$0xff] }
  0x5d   : > { %858 = vxpose.xlu1.c.b16.cont [2/8] %v1879_v60, 128  ;;  %v489_v60 = vld [vmem:[%s2617_s2] sm:$0xff] }
  0x60   : > { %891 = vxpose.xlu0.c.b16.cont [3/8] %v1882_v62, 128 }
  0x61   : > { %859 = vxpose.xlu1.c.b16.cont [3/8] %v1885_v0, 128  ;;  %v490_v0 = vld [vmem:[%s2617_s2 + $0x8] sm:$0xff] }
  0x64   : > { %892 = vxpose.xlu0.c.b16.cont [4/8] %v1888_v2, 128 }
  0x65   : > { %860 = vxpose.xlu1.c.b16.cont [4/8] %v1891_v4, 128 }
  0x68   : > { %893 = vxpose.xlu0.c.b16.cont [5/8] %v1894_v6, 128 }
  0x69   : > { %861 = vxpose.xlu1.c.b16.cont [5/8] %v1897_v8, 128 }
  0x6c   : > { %894 = vxpose.xlu0.c.b16.cont [6/8] %v1900_v10, 128  ;;  %v1934_v10 = vld [vmem:[%s2618_s3 + $0x40] sm:$0xff]  }
  0x6d   : > { %862 = vxpose.xlu1.c.b16.cont [6/8] %v1903_v11, 128  ;;  %v1936_v11 = vld [vmem:[%s2618_s3 + $0x48] sm:$0xff]  }
  0x70   : > { %895 = vxpose.xlu0.c.b16.cont [7/8] %v1906_v12, 128 }
  0x71   : > { %863 = vxpose.xlu1.c.b16.cont [7/8] %v1909_v13, 128 }
  0x74   : > { %896 = vxpose.xlu0.c.b16.end [8/8] %v1912_v14, 128  ;;  %v1938_v14 = vld [vmem:[%s2618_s3 + $0x50] sm:$0xff]  }
  0x75   : > { %864 = vxpose.xlu1.c.b16.end [8/8] %v1915_v15, 128  ;;  %v1935_v15 = vld [vmem:[%s2618_s3] sm:$0xff]  }
  0x79   : > { %1869 = vset.pattern.permute.xlu1 %v2006_v17 }
  0x7a   : > { %678 = vperm.xlu1 %1869, %v520_v16   ;;  %v1940_v16 = vld [vmem:[%s2618_s3 + $0x58] sm:$0xff]  }
  0x7d   : > { %1868 = vset.pattern.permute.xlu0 %v2006_v17 }
  0x7e   : > { %673 = vperm.xlu0 %1868, %v519_v18   ;;  %593 = vperm.xlu1 %1869, %v503_v19   ;;  %v1937_v18 = vld [vmem:[%s2618_s3 + $0x8] sm:$0xff]  }
  0x82   : > { %663 = vperm.xlu0 %1868, %v517_v20   ;;  %598 = vperm.xlu1 %1869, %v504_v21   ;;  %v1942_v20 = vld [vmem:[%s2618_s3 + $0x60] sm:$0xff]   ;;  %v1939_v21 = vld [vmem:[%s2618_s3 + $0x10] sm:$0xff]  }
  0x86   : > { %583 = vperm.xlu0 %1868, %v501_v22   ;;  %668 = vperm.xlu1 %1869, %v518_v23   ;;  %v1944_v22 = vld [vmem:[%s2618_s3 + $0x68] sm:$0xff]  }
  0x8a   : > { %653 = vperm.xlu0 %1868, %v515_v24   ;;  %588 = vperm.xlu1 %1869, %v502_v25   ;;  %v1941_v24 = vld [vmem:[%s2618_s3 + $0x18] sm:$0xff]  }
  0x8e   : > { %573 = vperm.xlu0 %1868, %v499_v26   ;;  %658 = vperm.xlu1 %1869, %v516_v27   ;;  %v1946_v26 = vld [vmem:[%s2618_s3 + $0x70] sm:$0xff]   ;;  %v1943_v27 = vld [vmem:[%s2618_s3 + $0x20] sm:$0xff]  }
  0x92   : > { %643 = vperm.xlu0 %1868, %v513_v28   ;;  %578 = vperm.xlu1 %1869, %v500_v29   ;;  %v1948_v28 = vld [vmem:[%s2618_s3 + $0x78] sm:$0xff]  }
  0x96   : > { %563 = vperm.xlu0 %1868, %v497_v30   ;;  %648 = vperm.xlu1 %1869, %v514_v31   ;;  %v1945_v30 = vld [vmem:[%s2618_s3 + $0x28] sm:$0xff]   ;;  %v1947_v31 = vld [vmem:[%s2618_s3 + $0x30] sm:$0xff]  }
  0x9a   : > { %v881_v34 = vpop.trf.xlu0  ;;  %633 = vperm.xlu0 %1868, %v511_v32   ;;  %568 = vperm.xlu1 %1869, %v498_v33   ;;  %v1949_v32 = vld [vmem:[%s2618_s3 + $0x38] sm:$0xff]   ;;  %v1242_v33 = vld [vmem:[%s423_s15] sm:$0xff] }
  0x9b   : > { %1033 = vmatprep.mubr.bf16.mxu0 %v881_v34  ;;  %v849_v35 = vpop.trf.xlu1 }
  0x9c   : > { %1034 = vmatmul.mubr.bf16.vlgmr.msra.gmra.mxu0 %v849_v35  ;;  %v1243_v35 = vld [vmem:[%s423_s15 + $0x8] sm:$0xff] }
  0x9e   : > { %v882_v38 = vpop.trf.xlu0  ;;  %553 = vperm.xlu0 %1868, %v495_v36   ;;  %638 = vperm.xlu1 %1869, %v512_v37   ;;  %v1244_v36 = vld [vmem:[%s423_s15 + $0x10] sm:$0xf] }
  0x9f   : > { %v850_v39 = vpop.trf.xlu1  ;;  %1041 = vmatprep.mubr.bf16.mxu0 %v882_v38 }
  0xa2   : > { %v883_v42 = vpop.trf.xlu0  ;;  %623 = vperm.xlu0 %1868, %v509_v40   ;;  %558 = vperm.xlu1 %1869, %v496_v41  }
  0xa3   : > { %v851_v43 = vpop.trf.xlu1 }
  0xa4   : > { %1042 = vmatmul.mubr.bf16.gmra.mxu0 %v850_v39 }
  0xa5   : > { %1049 = vmatprep.mubr.bf16.mxu0 %v883_v42 }
  0xa6   : > { %v884_v46 = vpop.trf.xlu0  ;;  %543 = vperm.xlu0 %1868, %v493_v44   ;;  %628 = vperm.xlu1 %1869, %v510_v45  }
  0xa7   : > { %v852_v47 = vpop.trf.xlu1 }
  0xaa   : > { %v885_v50 = vpop.trf.xlu0  ;;  %613 = vperm.xlu0 %1868, %v507_v48   ;;  %548 = vperm.xlu1 %1869, %v494_v49  }
  0xab   : > { %v853_v51 = vpop.trf.xlu1 }
  0xac   : > { %1050 = vmatmul.mubr.bf16.gmra.mxu0 %v851_v43 }
  0xad   : > { %1057 = vmatprep.mubr.bf16.mxu0 %v884_v46 }
  0xae   : > { %v886_v54 = vpop.trf.xlu0  ;;  %533 = vperm.xlu0 %1868, %v491_v52   ;;  %618 = vperm.xlu1 %1869, %v508_v53  }
  0xaf   : > { %v854_v55 = vpop.trf.xlu1 }
  0xb2   : > { %v887_v58 = vpop.trf.xlu0  ;;  %603 = vperm.xlu0 %1868, %v505_v56   ;;  %538 = vperm.xlu1 %1869, %v492_v57  }
  0xb3   : > { %v855_v59 = vpop.trf.xlu1 }
  0xb4   : > { %1058 = vmatmul.mubr.bf16.gmra.mxu0 %v852_v47 }
  0xb5   : > { %1065 = vmatprep.mubr.bf16.mxu0 %v885_v50 }
  0xb6   : > { %v888_v62 = vpop.trf.xlu0  ;;  %523 = vperm.xlu0 %1868, %v489_v60   ;;  %608 = vperm.xlu1 %1869, %v506_v61  }
  0xb7   : > { %v856_v63 = vpop.trf.xlu1 }
  0xba   : > { %v897_v1 = vpop.trf.xlu0  ;;  %528 = vperm.xlu1 %1869, %v490_v0  }
  0xbb   : > { %v865_v2 = vpop.trf.xlu1 }
  0xbc   : > { %1066 = vmatmul.mubr.bf16.gmra.mxu0 %v853_v51 }
  0xbd   : > { %1073 = vmatprep.mubr.bf16.mxu0 %v886_v54 }
  0xbe   : > { %v898_v3 = vpop.trf.xlu0 }
  0xbf   : > { %1105 = vmatprep.mubr.bf16.mxu1 %v898_v3  ;;  %v866_v4 = vpop.trf.xlu1 }
  0xc0   : > { %1106 = vmatmul.mubr.bf16.vlgmr.msra.gmra.mxu1 %v866_v4 }
  0xc2   : > { %v899_v5 = vpop.trf.xlu0 }
  0xc3   : > { %1113 = vmatprep.mubr.bf16.mxu1 %v899_v5  ;;  %v867_v6 = vpop.trf.xlu1 }
  0xc4   : > { %1074 = vmatmul.mubr.bf16.gmra.mxu0 %v854_v55 }
  0xc5   : > { %1081 = vmatprep.mubr.bf16.mxu0 %v887_v58 }
  0xc6   : > { %v900_v7 = vpop.trf.xlu0 }
  0xc7   : > { %v868_v8 = vpop.trf.xlu1 }
  0xc8   : > { %1114 = vmatmul.mubr.bf16.gmra.mxu1 %v867_v6 }
  0xc9   : > { %1121 = vmatprep.mubr.bf16.mxu1 %v900_v7 }
  0xca   : > { %v901_v9 = vpop.trf.xlu0 }
  0xcb   : > { %v869_v12 = vpop.trf.xlu1 }
  0xcc   : > { %1082 = vmatmul.mubr.bf16.gmra.mxu0 %v855_v59 }
  0xcd   : > { %1089 = vmatprep.mubr.bf16.mxu0 %v888_v62 }
  0xce   : > { %v902_v13 = vpop.trf.xlu0 }
  0xcf   : > { %v870_v17 = vpop.trf.xlu1 }
  0xd0   : > { %1122 = vmatmul.mubr.bf16.gmra.mxu1 %v868_v8 }
  0xd1   : > { %1129 = vmatprep.mubr.bf16.mxu1 %v901_v9 }
  0xd2   : > { %v903_v19 = vpop.trf.xlu0 }
  0xd3   : > { %v871_v23 = vpop.trf.xlu1 }
  0xd4   : > { %1090 = vmatmul.mubr.bf16.gmra.mxu0 %v856_v63  ;;  %1372 = vxpose.xlu0.c.b16.start [1/8] (narrow) %v1934_v10, 32 }
  0xd5   : > { %1097 = vmatprep.mubr.bf16.mxu0 %v897_v1 }
  0xd6   : > { %v904_v25 = vpop.trf.xlu0 }
  0xd7   : > { %v872_v29 = vpop.trf.xlu1 }
  0xd8   : > { %1130 = vmatmul.mubr.bf16.gmra.mxu1 %v869_v12  ;;  %1373 = vxpose.xlu0.c.b16.cont [2/8] (narrow) %v1936_v11, 32 }
  0xd9   : > { %1137 = vmatprep.mubr.bf16.mxu1 %v902_v13 }
  0xdc   : > { %1098 = vmatmul.mubr.bf16.gmra.mxu0 %v865_v2  ;;  %1374 = vxpose.xlu0.c.b16.cont [3/8] (narrow) %v1938_v14, 32 }
  0xdd   : > { %1356 = vxpose.xlu1.c.b16.start [1/8] (narrow) %v1935_v15, 32 }
  0xe0   : > { %1138 = vmatmul.mubr.bf16.gmra.mxu1 %v870_v17  ;;  %1375 = vxpose.xlu0.c.b16.cont [4/8] (narrow) %v1940_v16, 32 }
  0xe1   : > { %1145 = vmatprep.mubr.bf16.mxu1 %v903_v19  ;;  %1357 = vxpose.xlu1.c.b16.cont [2/8] (narrow) %v1937_v18, 32 }
  0xe4   : > { %1376 = vxpose.xlu0.c.b16.cont [5/8] (narrow) %v1942_v20, 32 }
  0xe5   : > { %1358 = vxpose.xlu1.c.b16.cont [3/8] (narrow) %v1939_v21, 32 }
  0xe8   : > { %1146 = vmatmul.mubr.bf16.gmra.mxu1 %v871_v23  ;;  %1377 = vxpose.xlu0.c.b16.cont [6/8] (narrow) %v1944_v22, 32 }
  0xe9   : > { %1153 = vmatprep.mubr.bf16.mxu1 %v904_v25  ;;  %1359 = vxpose.xlu1.c.b16.cont [4/8] (narrow) %v1941_v24, 32 }
  0xec   : > { %1378 = vxpose.xlu0.c.b16.cont [7/8] (narrow) %v1946_v26, 32 }
  0xed   : > { %1360 = vxpose.xlu1.c.b16.cont [5/8] (narrow) %v1943_v27, 32 }
  0xf0   : > { %1154 = vmatmul.mubr.bf16.gmra.mxu1 %v872_v29  ;;  %1379 = vxpose.xlu0.c.b16.end [8/8] (narrow) %v1948_v28, 32 }
  0xf1   : > { %1361 = vxpose.xlu1.c.b16.cont [6/8] (narrow) %v1945_v30, 32 }
  0xf5   : > { %1362 = vxpose.xlu1.c.b16.cont [7/8] (narrow) %v1947_v31, 32  ;;  %v2444_v39 = vpop.permute.xlu1 %678 }
  0xf9   : > { %v2438_v34 = vpop.permute.xlu0 %673  ;;  %1363 = vxpose.xlu1.c.b16.end [8/8] (narrow) %v1949_v32, 32  ;;  %1247 = vperm.xlu0 %1868, %v1242_v33   ;;  %v2448_v41 = vpop.permute.xlu1 %593 }
  0xfd   : > { %v2440_v37 = vpop.permute.xlu0 %663  ;;  %1252 = vperm.xlu1 %1869, %v1243_v35   ;;  %1257 = vperm.xlu0 %1868, %v1244_v36   ;;  %v2454_v44 = vpop.permute.xlu1 %598 }
 0x101   : > { %v2442_v38 = vpop.permute.xlu0 %583  ;;  %v2458_v46 = vpop.permute.xlu1 %668 }
 0x105   : > { %v2446_v40 = vpop.permute.xlu0 %653  ;;  %v2464_v49 = vpop.permute.xlu1 %588 }
 0x109   : > { %v2450_v42 = vpop.permute.xlu0 %573  ;;  %v2468_v51 = vpop.permute.xlu1 %658 }
 0x10d   : > { %v2452_v43 = vpop.permute.xlu0 %643  ;;  %v2472_v54 = vpop.permute.xlu1 %578 }
 0x111   : > { %v2456_v45 = vpop.permute.xlu0 %563  ;;  %v2474_v56 = vpop.permute.xlu1 %648 }
 0x112   : > { %2622 = vst [vmem:[#allocation4_spill] sm:$0xff] %v2456_v45 }
 0x115   : > { %v2460_v47 = vpop.permute.xlu0 %633  ;;  %v2478_v58 = vpop.permute.xlu1 %568 }
 0x116   : > { %2623 = vst [vmem:[#allocation5_spill] sm:$0xff] %v2460_v47  ;;  %2628 = vst [vmem:[#allocation10_spill] sm:$0xff] %v2478_v58 }
 0x119   : > { %v2462_v48 = vpop.permute.xlu0 %553  ;;  %v2480_v61 = vpop.permute.xlu1 %638 }
 0x11a   : > { %2624 = vst [vmem:[#allocation6_spill] sm:$0xff] %v2462_v48  ;;  %2629 = vst [vmem:[#allocation11_spill] sm:$0xff] %v2480_v61 }
 0x11d   : > { %v2466_v50 = vpop.permute.xlu0 %623  ;;  %v2482_v62 = vpop.permute.xlu1 %558 }
 0x11e   : > { %2625 = vst [vmem:[#allocation7_spill] sm:$0xff] %v2466_v50  ;;  %2630 = vst [vmem:[#allocation12_spill] sm:$0xff] %v2482_v62 }
 0x121   : > { %v2470_v52 = vpop.permute.xlu0 %543  ;;  %v2484_v63 = vpop.permute.xlu1 %628 }
 0x122   : > { %2626 = vst [vmem:[#allocation8_spill] sm:$0xff] %v2470_v52  ;;  %2631 = vst [vmem:[#allocation13_spill] sm:$0xff] %v2484_v63 }
 0x125   : > { %v614_v53 = vpop.permute.xlu0 %613  ;;  %v2486_v0 = vpop.permute.xlu1 %548 }
 0x126   : > { %2632 = vst [vmem:[#allocation14_spill] sm:$0xff] %v2486_v0 }
 0x129   : > { %v534_v55 = vpop.permute.xlu0 %533  ;;  %v619_v1 = vpop.permute.xlu1 %618 }
 0x12d   : > { %v2476_v57 = vpop.permute.xlu0 %603  ;;  %v539_v2 = vpop.permute.xlu1 %538 }
 0x12e   : > { %2627 = vst [vmem:[#allocation9_spill] sm:$0xff] %v2476_v57 }
 0x131   : > { %v524_v59 = vpop.permute.xlu0 %523  ;;  %v2488_v4 = vpop.permute.xlu1 %608 }
 0x132   : > { %2633 = vst [vmem:[#allocation15_spill] sm:$0xff] %v2488_v4 }
 0x135   : > { %v529_v10 = vpop.permute.xlu1 %528 }
 0x136   : > { %v1380_v60 = vpop.trf.xlu0 }
 0x137   : > { %1420 = vmatprep.mubr.bf16.mxu1 %v1380_v60 }
 0x15c   : > { %v1668_v3 = vpop.f32.mrf.mxu0 }
 0x15e   : > { %v1669_v5 = vpop.f32.mrf.mxu0 }
 0x15f   : > { %v1670_v6 = vadd.f32 %v1669_v5, %v1668_v3 }
 0x160   : > { %v1671_v7 = vpop.f32.mrf.mxu0 }
 0x161   : > { %v1036_v8 = vadd.f32 %v1670_v6, %v524_v59 }
 0x162   : > { %v1672_v9 = vpop.f32.mrf.mxu0 }
 0x163   : > { %v1673_v11 = vadd.f32 %v1672_v9, %v1671_v7  ;;  %v1162_v15 = vmax.f32 %v1036_v8, 0.0 }
 0x164   : > { %v1674_v12 = vpop.f32.mrf.mxu0 }
 0x165   : > { %v1039_v13 = vadd.f32 %v1673_v11, %v529_v10 }
 0x166   : > { %v1675_v14 = vpop.f32.mrf.mxu0 }
 0x167   : > { %v1163_v16 = vmax.f32 %v1039_v13, 0.0  ;;  %v1676_v17 = vadd.f32 %v1675_v14, %v1674_v12 }
 0x168   : > { %v1677_v18 = vpop.f32.mrf.mxu0 }
 0x169   : > { %v2490_v19 = vpack.c.bf16 %v1163_v16, %v1162_v15  ;;  %v1044_v20 = vadd.f32 %v1676_v17, %v534_v55 }
 0x16a   : > { %v1678_v21 = vpop.f32.mrf.mxu0 }
 0x16b   : > { %2634 = vst [vmem:[#allocation16_spill] sm:$0xff] %v2490_v19  ;;  %v1679_v22 = vadd.f32 %v1678_v21, %v1677_v18  ;;  %v1164_v26 = vmax.f32 %v1044_v20, 0.0 }
 0x16c   : > { %v1680_v23 = vpop.f32.mrf.mxu0 }
 0x16d   : > { %v1047_v24 = vadd.f32 %v1679_v22, %v539_v2 }
 0x16e   : > { %v1681_v25 = vpop.f32.mrf.mxu0 }
 0x16f   : > { %v1165_v27 = vmax.f32 %v1047_v24, 0.0  ;;  %v2492_v28 = vadd.f32 %v1681_v25, %v1680_v23 }
 0x170   : > { %v2494_v29 = vpop.f32.mrf.mxu0 }
 0x171   : > { %2635 = vst [vmem:[#allocation17_spill] sm:$0xff] %v2492_v28  ;;  %2636 = vst [vmem:[#allocation18_spill] sm:$0xff] %v2494_v29  ;;  %v2496_v30 = vpack.c.bf16 %v1165_v27, %v1164_v26 }
 0x172   : > { %v2498_v31 = vpop.f32.mrf.mxu0 }
 0x173   : > { %2637 = vst [vmem:[#allocation19_spill] sm:$0xff] %v2496_v30  ;;  %2638 = vst [vmem:[#allocation20_spill] sm:$0xff] %v2498_v31 }
 0x174   : > { %v2500_v32 = vpop.f32.mrf.mxu0 }
 0x175   : > { %2639 = vst [vmem:[#allocation21_spill] sm:$0xff] %v2500_v32 }
 0x176   : > { %v2502_v33 = vpop.f32.mrf.mxu0 }
 0x177   : > { %2640 = vst [vmem:[#allocation22_spill] sm:$0xff] %v2502_v33 }
 0x178   : > { %v2504_v35 = vpop.f32.mrf.mxu0 }
 0x17a   : > { %v2506_v36 = vpop.f32.mrf.mxu0 }
 0x17b   : > { %2641 = vst [vmem:[#allocation23_spill] sm:$0xff] %v2506_v36 }
 0x17c   : > { %v2508_v55 = vpop.f32.mrf.mxu0 }
 0x17e   : > { %v2510_v59 = vpop.f32.mrf.mxu0 }
 0x180   : > { %v2512_v60 = vpop.f32.mrf.mxu0  ;;  %v1722_v2 = vpop.f32.mrf.mxu1 }
 0x182   : > { %v2514_v3 = vpop.f32.mrf.mxu0  ;;  %v1723_v5 = vpop.f32.mrf.mxu1 }
 0x183   : > { %v1724_v6 = vadd.f32 %v1723_v5, %v1722_v2 }
 0x184   : > { %v2516_v7 = vpop.f32.mrf.mxu0  ;;  %v1725_v8 = vpop.f32.mrf.mxu1 }
 0x185   : > { %v1108_v10 = vadd.f32 %v1724_v6, %v614_v53 }
 0x186   : > { %v1726_v9 = vpop.f32.mrf.mxu1  ;;  %v2518_v11 = vpop.f32.mrf.mxu0 }
 0x187   : > { %v1727_v12 = vadd.f32 %v1726_v9, %v1725_v8  ;;  %v1180_v16 = vmax.f32 %v1108_v10, 0.0 }
 0x188   : > { %v2520_v13 = vpop.f32.mrf.mxu1  ;;  %v1701_v18 = vpop.f32.mrf.mxu0 }
 0x189   : > { %2642 = vst [vmem:[#allocation24_spill] sm:$0xff] %v2520_v13  ;;  %v1111_v14 = vadd.f32 %v1727_v12, %v619_v1 }
 0x18a   : > { %v2522_v15 = vpop.f32.mrf.mxu1  ;;  %v1702_v23 = vpop.f32.mrf.mxu0 }
 0x18b   : > { %2643 = vst [vmem:[#allocation25_spill] sm:$0xff] %v2522_v15  ;;  %v1181_v17 = vmax.f32 %v1111_v14, 0.0 }
 0x18c   : > { %v2524_v20 = vpop.f32.mrf.mxu1  ;;  %v1704_v25 = vpop.f32.mrf.mxu0 }
 0x18d   : > { %2644 = vst [vmem:[#allocation26_spill] sm:$0xff] %v2524_v20  ;;  %v2526_v21 = vpack.c.bf16 %v1181_v17, %v1180_v16 }
 0x18e   : > { %v2528_v22 = vpop.f32.mrf.mxu1  ;;  %v1705_v1 = vpop.f32.mrf.mxu0 }
 0x18f   : > { %2645 = vst [vmem:[#allocation27_spill] sm:$0xff] %v2526_v21  ;;  %2646 = vst [vmem:[#allocation28_spill] sm:$0xff] %v2528_v22  ;;  %v1706_v58 = vadd.f32 %v1705_v1, %v1704_v25 }
 0x190   : > { %v2530_v24 = vpop.f32.mrf.mxu1  ;;  %v1707_v6 = vpop.f32.mrf.mxu0 }
 0x192   : > { %v2532_v53 = vpop.f32.mrf.mxu1  ;;  %v1708_v10 = vpop.f32.mrf.mxu0 }
 0x193   : > { %v1709_v13 = vadd.f32 %v1708_v10, %v1707_v6 }
 0x194   : > { %v1737_v26 = vpop.f32.mrf.mxu1  ;;  %v1710_v16 = vpop.f32.mrf.mxu0 }
 0x196   : > { %v1738_v27 = vpop.f32.mrf.mxu1  ;;  %v1711_v30 = vpop.f32.mrf.mxu0 }
 0x197   : > { %v1712_v29 = vadd.f32 %v1711_v30, %v1710_v16 }
 0x198   : > { %v1740_v2 = vpop.f32.mrf.mxu1  ;;  %v1713_v4 = vpop.f32.mrf.mxu0 }
 0x199   : > { %v1092_v36 = vadd.f32 %v1712_v29, %v2448_v41  ;;  %v1084_v41 = vadd.f32 %v1706_v58, %v2442_v38  ;;  %v1694_v58 = vadd.f32 %v2510_v59, %v2508_v55  ;;  %v2649_v55 = vld [vmem:[#allocation26_spill] sm:$0xff]  ;;  %v2650_v59 = vld [vmem:[#allocation28_spill] sm:$0xff] }
 0x19a   : > { %v1741_v5 = vpop.f32.mrf.mxu1  ;;  %v1714_v0 = vpop.f32.mrf.mxu0 }
 0x19b   : > { %v1715_v48 = vadd.f32 %v1714_v0, %v1713_v4 }
 0x19c   : > { %v1743_v8 = vpop.f32.mrf.mxu1 }
 0x19d   : > { %v1095_v45 = vadd.f32 %v1715_v48, %v2454_v44 }
 0x19e   : > { %v1744_v9 = vpop.f32.mrf.mxu1 }
 0x19f   : > { %v1177_v4 = vmax.f32 %v1095_v45, 0.0  ;;  %v1745_v44 = vadd.f32 %v1744_v9, %v1743_v8  ;;  %v1697_v45 = vadd.f32 %v2514_v3, %v2512_v60  ;;  %v1736_v60 = vadd.f32 %v2532_v53, %v2530_v24  ;;  %v2653_v24 = vld [vmem:[#allocation22_spill] sm:$0xff]  ;;  %v2657_v8 = vld [vmem:[#allocation5_spill] sm:$0xff] }
 0x1a0   : > { %v1746_v12 = vpop.f32.mrf.mxu1 }
 0x1a1   : > { %v1124_v9 = vadd.f32 %v1736_v60, %v2657_v8  ;;  %v2667_v60 = vld [vmem:[#allocation15_spill] sm:$0xff] }
 0x1a2   : > { %v1747_v14 = vpop.f32.mrf.mxu1 }
 0x1a3   : > { %v1748_v0 = vadd.f32 %v1747_v14, %v1746_v12  ;;  %v2658_v12 = vld [vmem:[#allocation18_spill] sm:$0xff]  ;;  %v2659_v14 = vld [vmem:[#allocation20_spill] sm:$0xff] }
 0x1a4   : > { %v1749_v17 = vpop.f32.mrf.mxu1  ;;  %v1685_v16 = vadd.f32 %v2659_v14, %v2658_v12 }
 0x1a6   : > { %v1750_v19 = vpop.f32.mrf.mxu1 }
 0x1a7   : > { %v1751_v32 = vadd.f32 %v1750_v19, %v1749_v17  ;;  %v2660_v17 = vld [vmem:[#allocation12_spill] sm:$0xff] }
 0x1a8   : > { %v1752_v21 = vpop.f32.mrf.mxu1 }
 0x1a9   : > { %v1143_v48 = vadd.f32 %v1751_v32, %v2468_v51  ;;  %v1135_v32 = vadd.f32 %v1745_v44, %v2474_v56  ;;  %v2647_v56 = vld [vmem:[#allocation23_spill] sm:$0xff] }
 0x1aa   : > { %v1753_v57 = vpop.f32.mrf.mxu1 }
 0x1ab   : > { %v1754_v15 = vadd.f32 %v1753_v57, %v1752_v21  ;;  %v1087_v57 = vadd.f32 %v1709_v13, %v2464_v49  ;;  %v2648_v13 = vld [vmem:[#allocation10_spill] sm:$0xff]  ;;  %v2651_v21 = vld [vmem:[#allocation11_spill] sm:$0xff] }
 0x1ac   : > { %v1755_v28 = vpop.f32.mrf.mxu1 }
 0x1ae   : > { %v1756_v52 = vpop.f32.mrf.mxu1 }
 0x1af   : > { %v1757_v62 = vadd.f32 %v1756_v52, %v1755_v28  ;;  %v1148_v52 = vadd.f32 %v1754_v15, %v2440_v37  ;;  %v2545_v28 = vpop.f32.mrf.mxu0  ;;  %v1742_v37 = vadd.f32 %v1741_v5, %v1740_v2  ;;  %v1071_v15 = vadd.f32 %v1697_v45, %v2648_v13  ;;  %v2656_v5 = vld [vmem:[#allocation25_spill] sm:$0xff] }
 0x1b0   : > { %v1758_v50 = vpop.f32.mrf.mxu1 }
 0x1b1   : > { %v1151_v61 = vadd.f32 %v1757_v62, %v2458_v46  ;;  %v1190_v29 = vmax.f32 %v1148_v52, 0.0  ;;  %v1171_v52 = vmax.f32 %v1071_v15, 0.0 }
 0x1b2   : > { %v1759_v63 = vpop.f32.mrf.mxu1 }
 0x1b3   : > { %v1760_v31 = vadd.f32 %v1759_v63, %v1758_v50  ;;  %v1703_v63 = vadd.f32 %v1702_v23, %v1701_v18  ;;  %v1191_v19 = vmax.f32 %v1151_v61, 0.0  ;;  %v1175_v61 = vmax.f32 %v1087_v57, 0.0 }
 0x1b4   : > { %v1761_v47 = vpop.f32.mrf.mxu1  ;;  %v1187_v23 = vmax.f32 %v1135_v32, 0.0 }
 0x1b5   : > { %v1156_v22 = vadd.f32 %v1760_v31, %v2438_v34  ;;  %v1700_v34 = vadd.f32 %v2518_v11, %v2516_v7  ;;  %v1079_v51 = vadd.f32 %v1703_v63, %v2472_v54  ;;  %v1739_v31 = vadd.f32 %v1738_v27, %v1737_v26  ;;  %v1717_v7 = vpop.f32.mrf.mxu0  ;;  %v2652_v26 = vld [vmem:[#allocation21_spill] sm:$0xff] }
 0x1b6   : > { %v1762_v33 = vpop.f32.mrf.mxu1  ;;  %v1240_v38 = vpack.c.bf16 %v1191_v19, %v1190_v29  ;;  %v1132_v54 = vadd.f32 %v1742_v37, %v2452_v43  ;;  %v1691_v11 = vadd.f32 %v2647_v56, %v2504_v35  ;;  %v1688_v53 = vadd.f32 %v2653_v24, %v2652_v26  ;;  %v2654_v43 = vld [vmem:[#allocation4_spill] sm:$0xff]  ;;  %v2661_v63 = vld [vmem:[#allocation13_spill] sm:$0xff]  ;;  %v2664_v37 = vld [vmem:[#allocation14_spill] sm:$0xff] }
 0x1b7   : > { %v1763_v20 = vadd.f32 %v1762_v33, %v1761_v47  ;;  %v1192_v46 = vmax.f32 %v1156_v22, 0.0  ;;  %v1176_v47 = vmax.f32 %v1092_v36, 0.0  ;;  %v1189_v33 = vmax.f32 %v1143_v48, 0.0  ;;  %v1719_v2 = vpop.f32.mrf.mxu0  ;;  %v2655_v35 = vld [vmem:[#allocation24_spill] sm:$0xff]  ;;  %v2662_v48 = vld [vmem:[#allocation6_spill] sm:$0xff] }
 0x1b8   : > { %v1174_v36 = vmax.f32 %v1084_v41, 0.0  ;;  %v1173_v18 = vmax.f32 %v1079_v51, 0.0  ;;  %v1127_v22 = vadd.f32 %v1739_v31, %v2651_v21  ;;  %v1068_v27 = vadd.f32 %v1694_v58, %v2654_v43  ;;  %v2666_v31 = vld [vmem:[#allocation17_spill] sm:$0xff]  ;;  %v1381_v21 = vpop.trf.xlu0 }
 0x1b9   : > { %v1159_v50 = vadd.f32 %v1763_v20, %v2444_v39  ;;  %v1140_v39 = vadd.f32 %v1748_v0, %v2446_v40  ;;  %v1233_v30 = vpack.c.bf16 %v1177_v4, %v1176_v47  ;;  %v1076_v40 = vadd.f32 %v1700_v34, %v2450_v42  ;;  %v2663_v34 = vld [vmem:[#allocation7_spill] sm:$0xff] }
 0x1ba   : > { %v1232_v20 = vpack.c.bf16 %v1175_v61, %v1174_v36  ;;  %v1733_v42 = vadd.f32 %v2650_v59, %v2649_v55  ;;  %v1730_v6 = vadd.f32 %v2656_v5, %v2655_v35  ;;  %v1186_v10 = vmax.f32 %v1132_v54, 0.0  ;;  %v2669_v55 = vld [vmem:[#allocation27_spill] sm:$0xff] }
 0x1bb   : > { %v1193_v62 = vmax.f32 %v1159_v50, 0.0  ;;  %v1188_v3 = vmax.f32 %v1140_v39, 0.0  ;;  %v1172_v1 = vmax.f32 %v1076_v40, 0.0  ;;  %v1063_v0 = vadd.f32 %v1691_v11, %v2660_v17  ;;  %v2668_v11 = vld [vmem:[#allocation9_spill] sm:$0xff] }
 0x1bc   : > { %v1119_v57 = vadd.f32 %v1733_v42, %v2661_v63  ;;  %v1185_v4 = vmax.f32 %v1127_v22, 0.0  ;;  %v1238_v44 = vpack.c.bf16 %v1187_v23, %v1186_v10  ;;  %v1060_v19 = vadd.f32 %v1688_v53, %v2662_v48  ;;  %v1364_v42 = vpop.trf.xlu1  ;;  %v1248_v24 = vpop.permute.xlu0 %1247 }
 0x1bd   : > { %v1241_v49 = vpack.c.bf16 %v1193_v62, %v1192_v46  ;;  %v1239_v25 = vpack.c.bf16 %v1189_v33, %v1188_v3  ;;  %v1231_v50 = vpack.c.bf16 %v1173_v18, %v1172_v1  ;;  %v1170_v46 = vmax.f32 %v1068_v27, 0.0  ;;  %v1720_v62 = vpop.f32.mrf.mxu0 }
 0x1be   : > { %v1116_v41 = vadd.f32 %v1730_v6, %v2663_v34  ;;  %v1184_v47 = vmax.f32 %v1124_v9, 0.0  ;;  %v1055_v39 = vadd.f32 %v1685_v16, %v2664_v37  ;;  %v1169_v29 = vmax.f32 %v1063_v0, 0.0 }
 0x1bf   : > { %1764 = vmatprep.subr.bf16.mxu1 %v1241_v49  ;;  %v1230_v49 = vpack.c.bf16 %v1171_v52, %v1170_v46  ;;  %v1183_v45 = vmax.f32 %v1119_v57, 0.0  ;;  %v1721_v51 = vadd.f32 %v1720_v62, %v1719_v2  ;;  %v1168_v33 = vmax.f32 %v1060_v19, 0.0 }
 0x1c0   : > { %1765 = vmatpush3.bf16.msra.mxu1 %v1233_v30  ;;  %v1237_v61 = vpack.c.bf16 %v1185_v4, %v1184_v47  ;;  %v2665_v30 = vld [vmem:[#allocation8_spill] sm:$0xff]  ;;  %v1718_v58 = vadd.f32 %v1717_v7, %v2545_v28  ;;  %v1167_v40 = vmax.f32 %v1055_v39, 0.0  ;;  %v2670_v28 = vld [vmem:[#allocation19_spill] sm:$0xff]  ;;  %v1365_v22 = vpop.trf.xlu1  ;;  %v1258_v9 = vpop.permute.xlu0 %1257 }
 0x1c1   : > { %1766 = vmatprep.subr.bf16.mxu1 %v1240_v38  ;;  %v1052_v32 = vadd.f32 %v2666_v31, %v2665_v30  ;;  %v1182_v38 = vmax.f32 %v1116_v41, 0.0  ;;  %v1229_v36 = vpack.c.bf16 %v1169_v29, %v1168_v33  ;;  %v1103_v54 = vadd.f32 %v1721_v51, %v2667_v60  ;;  %v2671_v7 = vld [vmem:[#allocation16_spill] sm:$0xff] }
 0x1c2   : > { %v1100_v13 = vadd.f32 %v1718_v58, %v2668_v11 }
 0x1c3   : > { %v1236_v3 = vpack.c.bf16 %v1183_v45, %v1182_v38  ;;  %v1166_v56 = vmax.f32 %v1052_v32, 0.0  ;;  %v1179_v18 = vmax.f32 %v1103_v54, 0.0 }
 0x1c4   : > { %1767 = vmatpush3.bf16.msra.mxu1 %v1232_v20  ;;  %v1178_v20 = vmax.f32 %v1100_v13, 0.0  ;;  %v1253_v2 = vpop.permute.xlu1 %1252 }
 0x1c5   : > { %1768 = vmatprep.subr.bf16.mxu1 %v1239_v25  ;;  %v1228_v15 = vpack.c.bf16 %v1167_v40, %v1166_v56 }
 0x1c6   : > { %v1234_v59 = vpack.c.bf16 %v1179_v18, %v1178_v20 }
 0x1c8   : > { %1769 = vmatpush3.bf16.msra.mxu1 %v1231_v50 }
 0x1c9   : > { %1770 = vmatprep.subr.bf16.mxu1 %v1238_v44 }
 0x1cc   : > { %1771 = vmatpush3.bf16.msra.mxu1 %v1230_v49 }
 0x1cd   : > { %1772 = vmatprep.subr.bf16.mxu1 %v1237_v61 }
 0x1d0   : > { %1773 = vmatpush3.bf16.msra.mxu1 %v1229_v36 }
 0x1d1   : > { %1774 = vmatprep.subr.bf16.mxu1 %v1236_v3 }
 0x1d4   : > { %1775 = vmatpush3.bf16.msra.mxu1 %v1228_v15 }
 0x1d5   : > { %1776 = vmatprep.subr.bf16.mxu1 %v2669_v55 }
 0x1d8   : > { %1777 = vmatpush3.bf16.msra.mxu1 %v2670_v28 }
 0x1d9   : > { %1778 = vmatprep.subr.bf16.mxu1 %v1234_v59 }
 0x1dc   : > { %1779 = vmatpush3.bf16.msra.mxu1 %v2671_v7 }
 0x1df   : > { %1421 = vmatmul.mubr.bf16.vlgmr.msra.gmra.mxu1 %v1364_v42 }
 0x1e0   : > { %1428 = vmatprep.mubr.bf16.mxu1 %v1381_v21 }
 0x1e7   : > { %1429 = vmatmul.mubr.bf16.gmra.mxu1 %v1365_v22 }
 0x29f   : > { %v1780_v23 = vpop.f32.mrf.mxu1 }
 0x2a1   : > { %v1781_v25 = vpop.f32.mrf.mxu1 }
 0x2a2   : > { %v1782_v26 = vadd.f32 %v1781_v25, %v1780_v23 }
 0x2a3   : > { %v1783_v53 = vpop.f32.mrf.mxu1 }
 0x2a4   : > { %v1423_v43 = vadd.f32 %v1782_v26, %v1248_v24 }
 0x2a5   : > { %v1784_v27 = vpop.f32.mrf.mxu1 }
 0x2a6   : > { %1436 = vst [vmem:[%s418_s17] sm:$0xff] %v1423_v43  ;;  %v1785_v1 = vadd.f32 %v1784_v27, %v1783_v53 }
 0x2a7   : > { %v1786_v35 = vpop.f32.mrf.mxu1 }
 0x2a8   : > { %v1426_v5 = vadd.f32 %v1785_v1, %v1253_v2 }
 0x2a9   : > { %v1787_v6 = vpop.f32.mrf.mxu1 }
 0x2aa   : > { %1437 = vst [vmem:[%s418_s17 + $0x8] sm:$0xff] %v1426_v5  ;;  %v1788_v8 = vadd.f32 %v1787_v6, %v1786_v35  ;;  %1445 = sbr.rel (!%p2085_p6) target bundleno = 695 (0x2b7), region = 85 }
 0x2ab   : > { %v1789_v10 = vpop.f32.mrf.mxu1 }
 0x2ac   : > { %v1431_v12 = vadd.f32 %v1788_v8, %v1258_v9 }
 0x2ad   : > { %v1790_v14 = vpop.f32.mrf.mxu1  ;;  %v1482_v16 = vld [vmem:[%s418_s17] sm:$0xff] (%p2085_p6) }
 0x2ae   : > { %1438 = vst [vmem:[%s418_s17 + $0x10] sm:$0xf] %v1431_v12  ;;  %1483 = vst [vmem:[%s1449_s9] sm:$0xff] (%p2085_p6), %v1482_v16 }
 0x2b1   : > { %v1484_v17 = vld [vmem:[%s418_s17 + $0x8] sm:$0xff] }
 0x2b2   : > { %1485 = vst [vmem:[%s1449_s9 + $0x20] sm:$0xff] %v1484_v17 }
 0x2b5   : > { %v1486_v0 = vld [vmem:[%s418_s17 + $0x10] sm:$0xff] }
 0x2b6   : > { %1487 = vst [vmem:[%s1449_s9 + $0x40] sm:$0xff] %v1486_v0 }
 0x2b7 PF: > { %s15_s24 = sadd.s32 1, %s2004_s24   ;;  %s2672_s18 = smov %s1984_s19 }
 0x2b8   : > { %p12_p13 = scmp.ge.s32.totalorder %s15_s24, 10   ;;  %s2673_s19 = smov %s2093_s8 }
 0x2b9   : > { %s2674_s20 = smov %s1996_s22  ;;  %s2675_s21 = smov %s2000_s23 }
 0x2ba   : > { %s2676_s22 = smov %s2679_s25  ;;  %s2677_s23 = smov %s2683_s26 }
 0x2bb   :  { %14 = sbr.rel (!%p12_p13) target bundleno = 4 (0x4), region = 157 }

// kernel: graphonomy_forward.7
= control target key start
LH: loop header
LB: loop body
LE: loop exit
PB: predicated region body
PF: predicated region fallthrough
CT: control target
= control target key end

     0   :  { %8 = vsyncpa [#allocation4], 0  ;;  %s1040_s0 = inlined_call_operand.vmem [shape: f32[2,20,16,32], index: 0, kind: input, shape index: {}]   ;;  %s1041_s1 = inlined_call_operand.vmem [shape: f32[64,16], index: 1, kind: input, shape index: {}]   ;;  %s1042_s2 = inlined_call_operand.vmem [shape: f32[32,128], index: 2, kind: input, shape index: {}]   ;;  %s1043_s3 = inlined_call_operand.hbm [shape: f32[2,20,64,128], index: 3, kind: output, shape index: {}]  }
   0x1   :  { %10 = vsyncpa [#allocation4 + $0x1], 0  ;;  %s857_s12 = smov 0   ;;  %s859_s13 = smov 0  }
   0x2   :  { %s861_s14 = smov 0   ;;  %s863_s15 = smov 0  }
   0x3   :  { %s865_s16 = smov 0   ;;  %s867_s17 = smov 0  }
   0x4   :  { %s869_s18 = smov 0   ;;  %s871_s19 = smov 0  }
   0x5 LB: > { %s594_s20 = sadd.s32 4294967295, %s832_s19   ;;  %s595_s21 = sadd.s32 4294967294, %s832_s19   ;;  %s832_s19 = sphi %s871_s19, %s16_s19   ;;  %s828_s18 = sphi %s869_s18, %s1052_s18   ;;  %s824_s17 = sphi %s867_s17, %s1051_s17   ;;  %s820_s16 = sphi %s865_s16, %s1050_s16   ;;  %s816_s15 = sphi %s863_s15, %s1049_s15   ;;  %s812_s14 = sphi %s861_s14, %s1048_s14   ;;  %s808_s13 = sphi %s859_s13, %s1047_s13   ;;  %s804_s12 = sphi %s857_s12, %s1046_s12  }
   0x6   : > { %s31_s22 = sadd.s32 1, %s824_s17  ;;  %s35_s23 = sadd.s32 1, %s828_s18 }
   0x7   : > { %p33_p0 = scmp.ge.s32.totalorder %s31_s22, 20  ;;  %p131_p1 = scmp.ne.s32.totalorder %s812_s14, %s808_s13 }
   0x8   : > { %p132_p2 = scmp.eq.s32.totalorder %s594_s20, 39  ;;  %p137_p5 = scmp.ne.s32.totalorder %s808_s13, %s804_s12 }
   0x9   : > { %s1054_s22 = smov (%p33_p0, %s31_s22), 0  ;;  %s1056_s23 = smov (!%p33_p0, %s35_s23), %s828_s18 }
   0xa   : > { %s115_s24 = ssub.s32 %s824_s17, %s1054_s22  ;;  %p908_p3 = por %p132_p2, %p131_p1 }
   0xb   : > { %p37_p4 = scmp.ge.s32.totalorder %s1056_s23, 2  ;;  %p138_p6 = scmp.eq.s32.totalorder %s595_s21, 39 }
   0xc   : > { %p599_p7 = scmp.ge.s32.totalorder %s832_s19, 1  ;;  %p180_p9 = scmp.lt.s32.totalorder %s832_s19, 41 }
   0xd   : > { %s1058_s23 = smov (%p37_p4, %s1056_s23), 0  ;;  %p917_p8 = por %p138_p6, %p137_p5 }
   0xe   : > { %s114_s27 = ssub.s32 %s828_s18, %s1058_s23  ;;  %s121_s28 = sadd.s32 1, %s812_s14 }
   0xf   : > { %s116_s29 = sor.u32 %s115_s24, %s114_s27  ;;  %p181_p10 = pnand %p599_p7, %p180_p9 }
  0x10   : > { %p119_p11 = scmp.eq.s32.totalorder %s116_s29, 0  ;;  %p213_p12 = scmp.lt.s32.totalorder (!%p181_p10), %s820_s16, 1 }
  0x11   : > { %184 = sbr.rel (%p181_p10) target bundleno = 445 (0x1bd), region = 32  ;;  %p215_p13 = scmp.lt.s32.totalorder (!%p181_p10), %s816_s15, 19 }
  0x12   : > { %s926_s30 = scalar_select %p119_p11, %s812_s14, %s121_s28  }
  0x13   : > { %s210_s9 = sand.u32 (!%p181_p10), 1, %s808_s13   ;;  %s614_s20 = sshll.u32 (!%p181_p10), %s816_s15, 3 }
  0x14   : > { %s989_s4 = scalar_lea.sflag (!%p181_p10), [#allocation4], %s210_s9 }
  0x16   : > { %v238_v0 = vld [vmem:[%s1042_s2 + $0x18] sm:$0xff]  ;;  %v237_v1 = vld [vmem:[%s1042_s2 + $0x10] sm:$0xff]  ;;  %v236_v2 = vld [vmem:[%s1042_s2 + $0x8] sm:$0xff]  ;;  %s214_s10 = scalar_select %p213_p12, %s820_s16, 1  ;;  %vm239_vm0 = vcmask 261120   ;;  %vm333_vm1 = vcmask 130048  }
  0x17   : > { %634 = vmatprep.subr.mxu0 %v238_v0  ;;  %s216_s11 = scalar_select %p215_p13, %s816_s15, 19  ;;  %v235_v3 = vld [vmem:[%s1042_s2] sm:$0xff]  ;;  %v325_v6 = vld [vmem:[%s1041_s1 + $0x10] sm:$0xff]  ;;  %v326_v10 = vld [vmem:[%s1041_s1 + $0x18] sm:$0xff] }
  0x18   : > { %635 = vmatpush3.msra.mxu0 %v238_v0  ;;  %s665_s24 = smul.u32 40, %s214_s10  ;;  %652 = vmatprep.mubr.msk.f32.mxu1 %vm333_vm1, %v325_v6  ;;  %v323_v7 = vld [vmem:[%s1041_s1] sm:$0xff]  ;;  %v324_v11 = vld [vmem:[%s1041_s1 + $0x8] sm:$0xff]  ;;  %v329_v14 = vld [vmem:[%s1041_s1 + $0x30] sm:$0xff]  ;;  %s600_s10 = sshll.u32 %s210_s9, 6 }
  0x19   : > { %636 = vmatprep.subr.mxu0 %v237_v1  ;;  %s601_s27 = sshll.u32 %s216_s11, 1  ;;  %v327_v12 = vld [vmem:[%s1041_s1 + $0x20] sm:$0xff]  ;;  %v328_v13 = vld [vmem:[%s1041_s1 + $0x28] sm:$0xff]  ;;  %v330_v15 = vld [vmem:[%s1041_s1 + $0x38] sm:$0xff]  ;;  %s666_s11 = smul.u32 160, %s820_s16 }
  0x1a   : > { %637 = vmatpush3.msra.mxu0 %v237_v1  ;;  %s219_s28 = sadd.s32 %s665_s24, %s601_s27  ;;  %s212_s21 = scalar_lea.vmem [#allocation3], %s600_s10 }
  0x1b   : > { %638 = vmatprep.subr.mxu0 %v236_v2  ;;  %s602_s29 = sshll.u32 %s219_s28, 3  ;;  %s486_s24 = sadd.s32 %s666_s11, %s614_s20 }
  0x1c   : > { %639 = vmatpush3.msra.mxu0 %v236_v2  ;;  %s221_s6 = scalar_lea.vmem %s1040_s0, %s602_s29  ;;  %s489_s27 = sshll.u32 %s212_s21, 4  ;;  %s982_s27 = int_to_ptr.vmem [resolvable:$true] %s489_s27 }
  0x1d   : > { %640 = vmatprep.subr.mxu0 %v235_v3  ;;  %v233_v4 = vld [vmem:[%s221_s6] sm:$0xff]  ;;  %v234_v5 = vld [vmem:[%s221_s6 + $0x8] sm:$0xff]  ;;  %s615_s28 = sshll.u32 %s486_s24, 7  ;;  %s740_s5 = scalar_lea.vmem %s982_s27, 1024 }
  0x1e   : > { %641 = vmatpush3.msra.mxu0 %v235_v3  ;;  %642 = vmatprep.mubr.msk.f32.mxu0 %vm239_vm0, %v233_v4  ;;  %s987_s29 = scalar_lea.hbm %s1043_s3, %s615_s28  ;;  %p741_p0 = scmp.ne.s32.totalorder %s982_s27, %s740_s5 }
  0x1f   : > { %643 = vmatmul.mubr.msk.f32.vlgmr.msra.gmra.mxu0 %vm239_vm0, %v234_v5  ;;  %s834_s6 = smov [#allocation3]  }
  0x20   : > { %649 = vmatprep.mubr.msk.f32.mxu0 %vm333_vm1, %v323_v7  ;;  %p742_p1 = pnand %p741_p0, %p908_p3  ;;  %s744_s7 = sshll.u32 %s834_s6, 4  ;;  %s745_s7 = int_to_ptr.vmem [resolvable:$false] %s744_s7 }
  0x21   : > { %s746_s8 = scalar_lea.vmem %s745_s7, 2048  ;;  %p747_p4 = scmp.lt.s32.totalorder %s982_s27, %s745_s7 }
  0x22   : > { %p743_p2 = pneg %p742_p1  ;;  %p748_p5 = scmp.lt.s32.totalorder %s746_s8, %s740_s5 }
  0x24   : > { %p749_p6 = por %p748_p5, %p747_p4 }
  0x26   : > { %p750_p7 = pnand %p749_p6, %p743_p2 }
  0xdf   : > { %v644_v8 = vpop.f32.mrf.mxu0 }
  0xe0   : > { %645 = vmatprep.subr.mxu0 %v644_v8  ;;  %661 = vmatprep.subr.mxu1 %v644_v8 }
  0xe1   : > { %v312_v9 = vpop.f32.mrf.mxu0  ;;  %646 = vmatpush3.msra.mxu0 %v644_v8  ;;  %663 = vmatpush3.msra.mxu1 %v644_v8 }
  0xe2   : > { %647 = vmatprep.subr.mxu0 %v312_v9  ;;  %662 = vmatprep.subr.mxu1 %v312_v9 }
  0xe3   : > { %648 = vmatpush3.msra.mxu0 %v312_v9  ;;  %664 = vmatpush3.msra.mxu1 %v312_v9 }
  0xe4   : > { %653 = vmatmul.mubr.msk.f32.vlgmr.msra.gmra.mxu1 %vm333_vm1, %v326_v10  ;;  %650 = vmatmul.mubr.msk.f32.vlgmr.msra.gmra.mxu0 %vm333_vm1, %v324_v11 }
  0xe5   : > { %655 = vmatprep.mubr.msk.f32.mxu1 %vm333_vm1, %v327_v12 }
  0xe8   : > { %656 = vmatmul.mubr.msk.f32.gmra.mxu1 %vm333_vm1, %v328_v13 }
  0xe9   : > { %658 = vmatprep.mubr.msk.f32.mxu1 %vm333_vm1, %v329_v14 }
  0xec   : > { %659 = vmatmul.mubr.msk.f32.gmra.mxu1 %vm333_vm1, %v330_v15 }
 0x1a4   : > { %v654_v16 = vpop.f32.mrf.mxu1  ;;  %v651_v17 = vpop.f32.mrf.mxu0 }
 0x1a5   : > { %466 = vst [vmem:[%s212_s21 + $0x18] sm:$0xff] %v654_v16  ;;  %464 = vst [vmem:[%s212_s21 + $0x8] sm:$0xff] %v651_v17 }
 0x1a6   : > { %v434_v18 = vpop.f32.mrf.mxu1  ;;  %v424_v19 = vpop.f32.mrf.mxu0 }
 0x1a7   : > { %465 = vst [vmem:[%s212_s21 + $0x10] sm:$0xff] %v434_v18  ;;  %463 = vst [vmem:[%s212_s21] sm:$0xff] %v424_v19 }
 0x1a8   : > { %v657_v20 = vpop.f32.mrf.mxu1 }
 0x1a9   : > { %468 = vst [vmem:[%s212_s21 + $0x28] sm:$0xff] %v657_v20 }
 0x1aa   : > { %v444_v21 = vpop.f32.mrf.mxu1 }
 0x1ab   : > { %467 = vst [vmem:[%s212_s21 + $0x20] sm:$0xff] %v444_v21 }
 0x1ac   : > { %v660_v22 = vpop.f32.mrf.mxu1 }
 0x1ad   : > { %470 = vst [vmem:[%s212_s21 + $0x38] sm:$0xff] %v660_v22 }
 0x1ae   : > { %v454_v23 = vpop.f32.mrf.mxu1 }
 0x1af   : > { %469 = vst [vmem:[%s212_s21 + $0x30] sm:$0xff] %v454_v23 }
 0x1b0   : > { %753 = shalt.err (!%p750_p7)
}
 0x1b1   : > { %s754_s9 = scalar_lea.hbm %s987_s29, 1024  ;;  %s758_s20 = scalar_lea.hbm %s1043_s3, 40960 }
 0x1b2   : > { %p755_p9 = scmp.ne.s32.totalorder %s987_s29, %s754_s9  ;;  %p759_p12 = scmp.lt.s32.totalorder %s987_s29, %s1043_s3 }
 0x1b3   : > { %p760_p13 = scmp.lt.s32.totalorder %s758_s20, %s754_s9 }
 0x1b4   : > { %p756_p10 = pnand %p755_p9, %p908_p3 }
 0x1b5   : > { %p761_p0 = por %p760_p13, %p759_p12 }
 0x1b6   : > { %p757_p11 = pneg %p756_p10 }
 0x1b8   : > { %p762_p1 = pnand %p761_p0, %p757_p11 }
 0x1ba   : > { %765 = shalt.err (!%p762_p1)
}
 0x1bb   : > { %s835_s28 = smov 128   ;;  %s836_s15 = smov 8  }
 0x1bc   : > { %667 = dma.vmem_to_hbm [thread:$0]  (%p908_p3), %s982_s27, 1024, %s987_s29, %s989_s4, %s835_s28, %s835_s28, %s836_s15  }
 0x1bd PF: > { %p673_p2 = scmp.ge.s32.totalorder %s832_s19, 2  ;;  %s504_s16 = sand.u32 1, %s804_s12  }
 0x1be   : > { %s505_s5 = scalar_lea.sflag [#allocation4], %s504_s16 }
 0x1bf   : > { %p670_p4 = pnand %p673_p2, %p917_p8 }
 0x1c1   : > { %p671_p5 = pneg %p670_p4 }
 0x1c3   : > { %799 = dma.done.wait (%p671_p5), %s505_s5, 1024  }
 0x1c4   : > { %801 = vsyncadd (%p671_p5), %s505_s5, 4294966272  ;;  %s16_s19 = sadd.s32 1, %s832_s19   ;;  %s1046_s12 = smov %s808_s13 }
 0x1c5   : > { %p13_p6 = scmp.ge.s32.totalorder %s16_s19, 42   ;;  %s1047_s13 = smov %s812_s14 }
 0x1c6   : > { %s1048_s14 = smov %s926_s30  ;;  %s1049_s15 = smov %s824_s17 }
 0x1c7   : > { %s1050_s16 = smov %s828_s18  ;;  %s1051_s17 = smov %s1054_s22 }
 0x1c8   : > { %s1052_s18 = smov %s1058_s23  ;;  %15 = sbr.rel (!%p13_p6) target bundleno = 5 (0x5), region = 74 }
 0x1cd   :  { %510 = vsyncpa [#allocation4], 1 }
 0x1ce   :  { %512 = vsyncpa [#allocation4 + $0x1], 1 }

</bundles_post_ra>
